<compile_context>
chip_gen: v7x
topology: tpu7x:2x2x1
jax: 0.10.0
libtpu: 0.0.40
codegen_flags: <defaults>
</compile_context>

<pallas_src>
import math
import jax
import jax.numpy as jnp
from jax.experimental import pallas as pl
from jax.experimental.pallas import tpu as pltpu

# ---- small but structurally faithful config -------------------------------
VOCAB      = 39     # vocab_size (same as module default)
D_MODEL    = 32     # d_model (small)
NHEAD      = 4
NUM_LAYERS = 2
FFN        = 64     # dim_feedforward (small)
OUTPUT     = 64     # output_size (small)
MAX_SEQ    = 16     # max_seq_len (small)
B          = 2      # batch
S          = 8      # sequence length of the example input
HEAD_DIM   = D_MODEL // NHEAD
G          = B * NHEAD          # combined (batch, head) contraction batch
LN_EPS     = 1e-5

SMALL_W    = 128                         # lane width of packed small params
N_SMALL    = NUM_LAYERS * 7 + 1          # 7 small rows per layer + fcb


def _fused_layer_norm(x, g, b):
    # Single pass: sum(x) and sum(x*x) are independent reductions; derive
    # mean/var from them (halves the dependent cross-lane reduction chain).
    inv_n = 1.0 / x.shape[-1]
    mu  = jnp.sum(x, axis=-1, keepdims=True) * inv_n
    ex2 = jnp.sum(x * x, axis=-1, keepdims=True) * inv_n
    var = ex2 - mu * mu
    return (x - mu) * jax.lax.rsqrt(var + LN_EPS) * g + b


# ---------------------------------------------------------------------------
# Pallas kernel: whole forward pass, single program, everything in VMEM.
# ---------------------------------------------------------------------------
def transformer_kernel(tok_ref, emb_ref, pos_ref,
                       wqkv_ref, bqkv_ref, wo_ref,
                       w1_ref, w2_ref, fcw_ref, smallp_ref,
                       out_ref):
    tok = tok_ref[...]                      # (B, S) int32
    emb = emb_ref[...]                      # (V, D)

    # Embedding lookup as a one-hot matmul (MXU-friendly gather) + pos enc
    # (position encoding pre-tiled on host to (B*S, D)).
    iota_v = jax.lax.broadcasted_iota(jnp.int32, (B, S, VOCAB), 2)
    onehot = jnp.where(tok[:, :, None] == iota_v, 1.0, 0.0)        # (B, S, V)
    x2d = jnp.dot(onehot.reshape(B * S, VOCAB), emb,
                  preferred_element_type=jnp.float32)              # (B*S, D)
    x2d = x2d + pos_ref[...]

    scale = 1.0 / math.sqrt(HEAD_DIM)

    for l in range(NUM_LAYERS):
        base = 7 * l
        bo   = smallp_ref[base + 0:base + 1, 0:D_MODEL]            # (1, D)
        ln1g = smallp_ref[base + 1:base + 2, 0:D_MODEL]
        ln1b = smallp_ref[base + 2:base + 3, 0:D_MODEL]
        ln2g = smallp_ref[base + 3:base + 4, 0:D_MODEL]
        ln2b = smallp_ref[base + 4:base + 5, 0:D_MODEL]
        b1   = smallp_ref[base + 5:base + 6, 0:FFN]
        b2   = smallp_ref[base + 6:base + 7, 0:D_MODEL]

        # --- multi-head self-attention, batched over G = B*NHEAD -----------
        # x replicated per head (tiny); head split lives on the host-side
        # weight layout, so no lane slicing / concatenation in the kernel.
        x_g = jnp.broadcast_to(x2d.reshape(B, 1, S, D_MODEL),
                               (B, NHEAD, S, D_MODEL)).reshape(G, S, D_MODEL)

        wq = wqkv_ref[3 * l + 0]            # (G, D, HD), x @ W orientation
        wk = wqkv_ref[3 * l + 1]
        wv = wqkv_ref[3 * l + 2]
        bq = bqkv_ref[3 * l + 0].reshape(G, 1, HEAD_DIM)
        bk = bqkv_ref[3 * l + 1].reshape(G, 1, HEAD_DIM)
        bv = bqkv_ref[3 * l + 2].reshape(G, 1, HEAD_DIM)

        qg = jnp.einsum('gsd,gde->gse', x_g, wq,
                        preferred_element_type=jnp.float32) + bq   # (G, S, HD)
        kg = jnp.einsum('gsd,gde->gse', x_g, wk,
                        preferred_element_type=jnp.float32) + bk
        vg = jnp.einsum('gsd,gde->gse', x_g, wv,
                        preferred_element_type=jnp.float32) + bv

        scores = jnp.einsum('gqd,gkd->gqk', qg, kg,
                            preferred_element_type=jnp.float32) * scale
        scores = scores - jnp.max(scores, axis=-1, keepdims=True)
        p = jnp.exp(scores)
        p = p * pl.reciprocal(jnp.sum(p, axis=-1, keepdims=True), approx=True)
        og = jnp.einsum('gqk,gkd->gqd', p, vg,
                        preferred_element_type=jnp.float32)        # (G, S, HD)

        # Output projection fused with the head merge: wo is stored per head
        # as (G, HD, D); summing the per-head partial products over heads is
        # exactly concat(heads) @ Wo^T.
        attn_per = jnp.einsum('gqd,gdo->gqo', og, wo_ref[l],
                              preferred_element_type=jnp.float32)  # (G, S, D)
        attn = attn_per.reshape(B, NHEAD, S, D_MODEL).sum(axis=1)  # (B, S, D)
        attn2d = attn.reshape(B * S, D_MODEL) + bo

        # --- residual + norm1 ---------------------------------------------
        x2d = _fused_layer_norm(x2d + attn2d, ln1g, ln1b)

        # --- feed-forward (ReLU) + residual + norm2 --------------------------
        h1 = jnp.dot(x2d, w1_ref[l], preferred_element_type=jnp.float32) + b1
        h1 = jnp.maximum(h1, 0.0)
        h2 = jnp.dot(h1, w2_ref[l], preferred_element_type=jnp.float32) + b2
        x2d = _fused_layer_norm(x2d + h2, ln2g, ln2b)

    # --- mean pool over sequence, final linear, sigmoid ----------------------
    pooled = jnp.mean(x2d.reshape(B, S, D_MODEL), axis=1)          # (B, D)
    fcb = smallp_ref[NUM_LAYERS * 7:NUM_LAYERS * 7 + 1, 0:OUTPUT]  # (1, OUT)
    logits = jnp.dot(pooled, fcw_ref[...],
                     preferred_element_type=jnp.float32) + fcb     # (B, OUT)
    sig = pl.reciprocal(1.0 + jnp.exp(-logits), approx=True)

    # Lane-dense store: (B, OUTPUT) -> (1, B*OUTPUT) = (1, 128) via lane concat.
    out_ref[...] = jnp.concatenate([sig[i:i + 1, :] for i in range(B)], axis=1)


# ---------------------------------------------------------------------------
# Host-side glue
# ---------------------------------------------------------------------------
def create_position_encoding(max_seq_len, d_model):
    position = jnp.arange(max_seq_len, dtype=jnp.float32)[:, None]
    div_term = jnp.exp(jnp.arange(0, d_model, 2, dtype=jnp.float32)
                       * -(math.log(10000.0) / d_model))
    pe = jnp.zeros((max_seq_len, d_model), jnp.float32)
    pe = pe.at[:, 0::2].set(jnp.sin(position * div_term))
    pe = pe.at[:, 1::2].set(jnp.cos(position * div_term))
    return pe


def init_params(key):
    """Raw parameters in PyTorch orientation (out, in) — faithful to _init_weights."""
    def xavier(k, shape):
        fan_out, fan_in = shape
        a = math.sqrt(6.0 / (fan_in + fan_out))
        return jax.random.uniform(k, shape, jnp.float32, -a, a)

    ks = jax.random.split(key, 3)
    # kaiming_normal fan_out for the embedding
    emb = jax.random.normal(ks[0], (VOCAB, D_MODEL), jnp.float32) * math.sqrt(2.0 / D_MODEL)

    lk = jax.random.split(ks[1], NUM_LAYERS * 4)
    wqkv = jnp.stack([xavier(lk[4 * l + 0], (3 * D_MODEL, D_MODEL)) for l in range(NUM_LAYERS)])
    wo   = jnp.stack([xavier(lk[4 * l + 1], (D_MODEL, D_MODEL))     for l in range(NUM_LAYERS)])
    w1   = jnp.stack([xavier(lk[4 * l + 2], (FFN, D_MODEL))         for l in range(NUM_LAYERS)])
    w2   = jnp.stack([xavier(lk[4 * l + 3], (D_MODEL, FFN))         for l in range(NUM_LAYERS)])

    zeros = lambda *s: jnp.zeros(s, jnp.float32)
    ones  = lambda *s: jnp.ones(s, jnp.float32)
    return dict(
        emb=emb,
        wqkv=wqkv, bqkv=zeros(NUM_LAYERS, 3 * D_MODEL),
        wo=wo,     bo=zeros(NUM_LAYERS, D_MODEL),
        ln1g=ones(NUM_LAYERS, D_MODEL), ln1b=zeros(NUM_LAYERS, D_MODEL),
        ln2g=ones(NUM_LAYERS, D_MODEL), ln2b=zeros(NUM_LAYERS, D_MODEL),
        w1=w1, b1=zeros(NUM_LAYERS, FFN),
        w2=w2, b2=zeros(NUM_LAYERS, D_MODEL),
        fcw=xavier(ks[2], (OUTPUT, D_MODEL)), fcb=zeros(OUTPUT),
    )


def pack_params(params):
    """Host-side re-layout: pre-transpose weights, head-split + B-tile attention
    weights, and pack all tiny vectors into one (N_SMALL, 128) array."""
    D, H, HD = D_MODEL, NHEAD, HEAD_DIM
    wqkv_g, bqkv_g, wo_g = [], [], []
    for l in range(NUM_LAYERS):
        wqkv = params["wqkv"][l]                        # (3D, D) (out, in)
        bqkv = params["bqkv"][l]                        # (3D,)
        for j in range(3):                              # q, k, v
            wj = wqkv[j * D:(j + 1) * D, :].T           # (D, D) x @ W orientation
            bj = bqkv[j * D:(j + 1) * D]                # (D,)
            w_h = wj.reshape(D, H, HD).transpose(1, 0, 2)   # (H, D, HD)
            b_h = bj.reshape(H, HD)                         # (H, HD)
            wqkv_g.append(jnp.tile(w_h, (B, 1, 1)))         # (G, D, HD), g = b*H + h
            bqkv_g.append(jnp.tile(b_h, (B, 1)))            # (G, HD)
        wo_t = params["wo"][l].T                            # (D, D), rows = h*HD + d
        wo_h = wo_t.reshape(H, HD, D)                       # (H, HD, D)
        wo_g.append(jnp.tile(wo_h, (B, 1, 1)))              # (G, HD, D)

    wqkv_g = jnp.stack(wqkv_g)                              # (L*3, G, D, HD)
    bqkv_g = jnp.stack(bqkv_g)                              # (L*3, G, HD)
    wo_g   = jnp.stack(wo_g)                                # (L,   G, HD, D)

    w1  = jnp.stack([params["w1"][l].T for l in range(NUM_LAYERS)])   # (L, D, FFN)
    w2  = jnp.stack([params["w2"][l].T for l in range(NUM_LAYERS)])   # (L, FFN, D)
    fcw = params["fcw"].T                                             # (D, OUTPUT)

    smallp = jnp.zeros((N_SMALL, SMALL_W), jnp.float32)
    def put(arr, row, vec):
        return arr.at[row, :vec.shape[0]].set(vec)
    for l in range(NUM_LAYERS):
        base = 7 * l
        smallp = put(smallp, base + 0, params["bo"][l])
        smallp = put(smallp, base + 1, params["ln1g"][l])
        smallp = put(smallp, base + 2, params["ln1b"][l])
        smallp = put(smallp, base + 3, params["ln2g"][l])
        smallp = put(smallp, base + 4, params["ln2b"][l])
        smallp = put(smallp, base + 5, params["b1"][l])
        smallp = put(smallp, base + 6, params["b2"][l])
    smallp = put(smallp, NUM_LAYERS * 7, params["fcb"])

    return dict(emb=params["emb"], wqkv_g=wqkv_g, bqkv_g=bqkv_g, wo_g=wo_g,
                w1=w1, w2=w2, fcw=fcw, smallp=smallp)


def transformer_forward(tokens, packed, pos_tiled):
    args = (tokens, packed["emb"], pos_tiled,
            packed["wqkv_g"], packed["bqkv_g"], packed["wo_g"],
            packed["w1"], packed["w2"], packed["fcw"], packed["smallp"])
    vmem = pl.BlockSpec(memory_space=pltpu.MemorySpace.VMEM)
    out_flat = pl.pallas_call(
        transformer_kernel,
        out_shape=jax.ShapeDtypeStruct((1, B * OUTPUT), jnp.float32),
        in_specs=[vmem] * len(args),
        out_specs=vmem,
    )(*args)
    return out_flat.reshape(B, OUTPUT)


# ---------------------------------------------------------------------------
# Pure-JAX reference (same math, raw PyTorch-orientation params).
# ---------------------------------------------------------------------------
def _ln_ref(x, g, b):
    mu = jnp.mean(x, axis=-1, keepdims=True)
    var = jnp.mean((x - mu) ** 2, axis=-1, keepdims=True)
    return (x - mu) * jax.lax.rsqrt(var + LN_EPS) * g + b


def reference_forward(tokens, params, pos_enc):
    seq_len = tokens.shape[1]
    x = params["emb"][tokens] + pos_enc[:seq_len][None]            # (B, S, D)
    for l in range(NUM_LAYERS):
        qkv = x @ params["wqkv"][l].T + params["bqkv"][l]
        q, k, v = jnp.split(qkv, 3, axis=-1)
        heads = lambda t: t.reshape(B, seq_len, NHEAD, HEAD_DIM).transpose(0, 2, 1, 3)
        qh, kh, vh = heads(q), heads(k), heads(v)
        scores = jnp.einsum("bhqd,bhkd->bhqk", qh, kh) / math.sqrt(HEAD_DIM)
        p = jax.nn.softmax(scores, axis=-1)
        attn = jnp.einsum("bhqk,bhkd->bhqd", p, vh).transpose(0, 2, 1, 3)
        attn = attn.reshape(B, seq_len, D_MODEL) @ params["wo"][l].T + params["bo"][l]
        x = _ln_ref(x + attn, params["ln1g"][l], params["ln1b"][l])
        h1 = jnp.maximum(x @ params["w1"][l].T + params["b1"][l], 0.0)
        h2 = h1 @ params["w2"][l].T + params["b2"][l]
        x = _ln_ref(x + h2, params["ln2g"][l], params["ln2b"][l])
    pooled = x.mean(axis=1)
    logits = pooled @ params["fcw"].T + params["fcb"]
    return jax.nn.sigmoid(logits)


if __name__ == "__main__":
    key = jax.random.PRNGKey(0)
    k_tok, k_par, k_pert = jax.random.split(key, 3)

    tokens = jax.random.randint(k_tok, (B, S), 0, VOCAB, dtype=jnp.int32)
    params = init_params(k_par)

    # Perturb the (normally zero / one) bias and LayerNorm affine parameters so
    # the self-test actually exercises every packed-parameter path; the forward
    # math itself is unchanged.
    pert_names = ["bqkv", "bo", "ln1g", "ln1b", "ln2g", "ln2b", "b1", "b2", "fcb"]
    pk = jax.random.split(k_pert, len(pert_names))
    for kk, name in zip(pk, pert_names):
        params[name] = params[name] + 0.05 * jax.random.normal(
            kk, params[name].shape, jnp.float32)

    pos_enc = create_position_encoding(MAX_SEQ, D_MODEL)
    pos_tiled = jnp.tile(pos_enc[:S], (B, 1))          # (B*S, D)

    packed = pack_params(params)

    out = transformer_forward(tokens, packed, pos_tiled)
    out = jax.block_until_ready(out)

    ref = jax.block_until_ready(reference_forward(tokens, params, pos_enc))

    assert out.shape == (B, OUTPUT), out.shape
    assert bool(jnp.all(jnp.isfinite(out)))
    # Tolerance: fp32 everywhere, but the kernel uses the EUP approximate
    # reciprocal for softmax/sigmoid; 1e-2 is far below any layout/packing bug
    # signature (~O(0.1-1)) while safely above the approx-reciprocal error.
    err = float(jnp.max(jnp.abs(out - ref)))
    assert err < 1e-2, f"mismatch vs reference: {err}"

    print("KERNEL_OK")
</pallas_src>

<mosaic_0001>
module attributes {stable_mosaic.version = 11 : i64} {
  func.func @transformer_kernel(%arg0: memref<2x8xi32, #tpu.memory_space<vmem>>, %arg1: memref<39x32xf32, #tpu.memory_space<vmem>>, %arg2: memref<16x32xf32, #tpu.memory_space<vmem>>, %arg3: memref<6x8x32x8xf32, #tpu.memory_space<vmem>>, %arg4: memref<6x8x8xf32, #tpu.memory_space<vmem>>, %arg5: memref<2x8x8x32xf32, #tpu.memory_space<vmem>>, %arg6: memref<2x32x64xf32, #tpu.memory_space<vmem>>, %arg7: memref<2x64x32xf32, #tpu.memory_space<vmem>>, %arg8: memref<32x64xf32, #tpu.memory_space<vmem>>, %arg9: memref<15x128xf32, #tpu.memory_space<vmem>>, %arg10: memref<1x128xf32, #tpu.memory_space<vmem>>) attributes {dimension_semantics = [], scalar_prefetch = 0 : i64, scratch_operands = 0 : i64, tpu.core_type = #tpu.core_type<tc>} {
    %c0 = arith.constant 0 : index
    %c0_0 = arith.constant 0 : index
    %0 = vector.load %arg0[%c0, %c0_0] : memref<2x8xi32, #tpu.memory_space<vmem>>, vector<2x8xi32>
    %c0_1 = arith.constant 0 : index
    %c0_2 = arith.constant 0 : index
    %1 = vector.load %arg1[%c0_1, %c0_2] : memref<39x32xf32, #tpu.memory_space<vmem>>, vector<39x32xf32>
    %2 = tpu.iota {dimensions = array<i32: 2>} : vector<2x8x39xi32>
    %3 = vector.shape_cast %0 : vector<2x8xi32> to vector<2x8x1xi32>
    %4 = vector.broadcast %3 : vector<2x8x1xi32> to vector<2x8x39xi32>
    %5 = arith.cmpi eq, %4, %2 : vector<2x8x39xi32>
    %cst = arith.constant 1.000000e+00 : f32
    %cst_3 = arith.constant 0.000000e+00 : f32
    %6 = vector.broadcast %cst : f32 to vector<2x8x39xf32>
    %7 = vector.broadcast %cst_3 : f32 to vector<2x8x39xf32>
    %8 = arith.select %5, %6, %7 : vector<2x8x39xi1>, vector<2x8x39xf32>
    %9 = vector.shape_cast %8 : vector<2x8x39xf32> to vector<16x39xf32>
    %cst_4 = arith.constant dense<0.000000e+00> : vector<16x32xf32>
    %10 = tpu.matmul %9, %1, %cst_4 {dimension_numbers = #tpu.dot_dimension_numbers<[1], [0], [0], [1], [0, 0, 1, 1], [], []>} : vector<16x39xf32>, vector<39x32xf32>, vector<16x32xf32> -> vector<16x32xf32>
    %c0_5 = arith.constant 0 : index
    %c0_6 = arith.constant 0 : index
    %11 = vector.load %arg2[%c0_5, %c0_6] : memref<16x32xf32, #tpu.memory_space<vmem>>, vector<16x32xf32>
    %12 = arith.addf %10, %11 : vector<16x32xf32>
    %c0_7 = arith.constant 0 : index
    %c0_8 = arith.constant 0 : index
    %13 = vector.load %arg9[%c0_7, %c0_8] : memref<15x128xf32, #tpu.memory_space<vmem>>, vector<1x32xf32>
    %c1 = arith.constant 1 : index
    %c0_9 = arith.constant 0 : index
    %14 = vector.load %arg9[%c1, %c0_9] : memref<15x128xf32, #tpu.memory_space<vmem>>, vector<1x32xf32>
    %c2 = arith.constant 2 : index
    %c0_10 = arith.constant 0 : index
    %15 = vector.load %arg9[%c2, %c0_10] : memref<15x128xf32, #tpu.memory_space<vmem>>, vector<1x32xf32>
    %c3 = arith.constant 3 : index
    %c0_11 = arith.constant 0 : index
    %16 = vector.load %arg9[%c3, %c0_11] : memref<15x128xf32, #tpu.memory_space<vmem>>, vector<1x32xf32>
    %c4 = arith.constant 4 : index
    %c0_12 = arith.constant 0 : index
    %17 = vector.load %arg9[%c4, %c0_12] : memref<15x128xf32, #tpu.memory_space<vmem>>, vector<1x32xf32>
    %c5 = arith.constant 5 : index
    %c0_13 = arith.constant 0 : index
    %18 = vector.load %arg9[%c5, %c0_13] : memref<15x128xf32, #tpu.memory_space<vmem>>, vector<1x64xf32>
    %c6 = arith.constant 6 : index
    %c0_14 = arith.constant 0 : index
    %19 = vector.load %arg9[%c6, %c0_14] : memref<15x128xf32, #tpu.memory_space<vmem>>, vector<1x32xf32>
    %20 = vector.shape_cast %12 : vector<16x32xf32> to vector<2x1x8x32xf32>
    %21 = vector.shape_cast %20 : vector<2x1x8x32xf32> to vector<2x1x8x32xf32>
    %22 = vector.broadcast %21 : vector<2x1x8x32xf32> to vector<2x4x8x32xf32>
    %23 = vector.shape_cast %22 : vector<2x4x8x32xf32> to vector<8x8x32xf32>
    %c0_15 = arith.constant 0 : index
    %c0_16 = arith.constant 0 : index
    %c0_17 = arith.constant 0 : index
    %c0_18 = arith.constant 0 : index
    %24 = vector.load %arg3[%c0_15, %c0_16, %c0_17, %c0_18] : memref<6x8x32x8xf32, #tpu.memory_space<vmem>>, vector<1x8x32x8xf32>
    %25 = vector.shape_cast %24 : vector<1x8x32x8xf32> to vector<8x32x8xf32>
    %c1_19 = arith.constant 1 : index
    %c0_20 = arith.constant 0 : index
    %c0_21 = arith.constant 0 : index
    %c0_22 = arith.constant 0 : index
    %26 = vector.load %arg3[%c1_19, %c0_20, %c0_21, %c0_22] : memref<6x8x32x8xf32, #tpu.memory_space<vmem>>, vector<1x8x32x8xf32>
    %27 = vector.shape_cast %26 : vector<1x8x32x8xf32> to vector<8x32x8xf32>
    %c2_23 = arith.constant 2 : index
    %c0_24 = arith.constant 0 : index
    %c0_25 = arith.constant 0 : index
    %c0_26 = arith.constant 0 : index
    %28 = vector.load %arg3[%c2_23, %c0_24, %c0_25, %c0_26] : memref<6x8x32x8xf32, #tpu.memory_space<vmem>>, vector<1x8x32x8xf32>
    %29 = vector.shape_cast %28 : vector<1x8x32x8xf32> to vector<8x32x8xf32>
    %c0_27 = arith.constant 0 : index
    %c0_28 = arith.constant 0 : index
    %c0_29 = arith.constant 0 : index
    %30 = vector.load %arg4[%c0_27, %c0_28, %c0_29] : memref<6x8x8xf32, #tpu.memory_space<vmem>>, vector<1x8x8xf32>
    %31 = vector.shape_cast %30 : vector<1x8x8xf32> to vector<8x8xf32>
    %32 = vector.shape_cast %31 : vector<8x8xf32> to vector<8x1x8xf32>
    %c1_30 = arith.constant 1 : index
    %c0_31 = arith.constant 0 : index
    %c0_32 = arith.constant 0 : index
    %33 = vector.load %arg4[%c1_30, %c0_31, %c0_32] : memref<6x8x8xf32, #tpu.memory_space<vmem>>, vector<1x8x8xf32>
    %34 = vector.shape_cast %33 : vector<1x8x8xf32> to vector<8x8xf32>
    %35 = vector.shape_cast %34 : vector<8x8xf32> to vector<8x1x8xf32>
    %c2_33 = arith.constant 2 : index
    %c0_34 = arith.constant 0 : index
    %c0_35 = arith.constant 0 : index
    %36 = vector.load %arg4[%c2_33, %c0_34, %c0_35] : memref<6x8x8xf32, #tpu.memory_space<vmem>>, vector<1x8x8xf32>
    %37 = vector.shape_cast %36 : vector<1x8x8xf32> to vector<8x8xf32>
    %38 = vector.shape_cast %37 : vector<8x8xf32> to vector<8x1x8xf32>
    "tpu.trace_start"() <{level = 10 : i32, message = "gsd,gde->gse"}> : () -> ()
    %cst_36 = arith.constant dense<0.000000e+00> : vector<8x8x8xf32>
    %39 = tpu.matmul %23, %25, %cst_36 {dimension_numbers = #tpu.dot_dimension_numbers<[2], [1], [1], [2], [0, 0, 0, 1, 1, 2], [0], [0]>} : vector<8x8x32xf32>, vector<8x32x8xf32>, vector<8x8x8xf32> -> vector<8x8x8xf32>
    "tpu.trace_stop"() : () -> ()
    %40 = vector.broadcast %32 : vector<8x1x8xf32> to vector<8x8x8xf32>
    %41 = arith.addf %39, %40 : vector<8x8x8xf32>
    "tpu.trace_start"() <{level = 10 : i32, message = "gsd,gde->gse"}> : () -> ()
    %cst_37 = arith.constant dense<0.000000e+00> : vector<8x8x8xf32>
    %42 = tpu.matmul %23, %27, %cst_37 {dimension_numbers = #tpu.dot_dimension_numbers<[2], [1], [1], [2], [0, 0, 0, 1, 1, 2], [0], [0]>} : vector<8x8x32xf32>, vector<8x32x8xf32>, vector<8x8x8xf32> -> vector<8x8x8xf32>
    "tpu.trace_stop"() : () -> ()
    %43 = vector.broadcast %35 : vector<8x1x8xf32> to vector<8x8x8xf32>
    %44 = arith.addf %42, %43 : vector<8x8x8xf32>
    "tpu.trace_start"() <{level = 10 : i32, message = "gsd,gde->gse"}> : () -> ()
    %cst_38 = arith.constant dense<0.000000e+00> : vector<8x8x8xf32>
    %45 = tpu.matmul %23, %29, %cst_38 {dimension_numbers = #tpu.dot_dimension_numbers<[2], [1], [1], [2], [0, 0, 0, 1, 1, 2], [0], [0]>} : vector<8x8x32xf32>, vector<8x32x8xf32>, vector<8x8x8xf32> -> vector<8x8x8xf32>
    "tpu.trace_stop"() : () -> ()
    %46 = vector.broadcast %38 : vector<8x1x8xf32> to vector<8x8x8xf32>
    %47 = arith.addf %45, %46 : vector<8x8x8xf32>
    "tpu.trace_start"() <{level = 10 : i32, message = "gqd,gkd->gqk"}> : () -> ()
    %cst_39 = arith.constant dense<0.000000e+00> : vector<8x8x8xf32>
    %48 = tpu.matmul %41, %44, %cst_39 {dimension_numbers = #tpu.dot_dimension_numbers<[2], [2], [1], [1], [0, 0, 0, 1, 1, 1], [0], [0]>} : vector<8x8x8xf32>, vector<8x8x8xf32>, vector<8x8x8xf32> -> vector<8x8x8xf32>
    "tpu.trace_stop"() : () -> ()
    %cst_40 = arith.constant 0.353553385 : f32
    %49 = vector.broadcast %cst_40 : f32 to vector<8x8x8xf32>
    %50 = arith.mulf %48, %49 : vector<8x8x8xf32>
    %cst_41 = arith.constant dense<0xFF800000> : vector<8x8xf32>
    %51 = vector.multi_reduction <maximumf>, %50, %cst_41 [2] : vector<8x8x8xf32> to vector<8x8xf32>
    %52 = vector.shape_cast %51 : vector<8x8xf32> to vector<8x8x1xf32>
    %53 = vector.broadcast %52 : vector<8x8x1xf32> to vector<8x8x8xf32>
    %54 = arith.subf %50, %53 : vector<8x8x8xf32>
    %55 = math.exp %54 : vector<8x8x8xf32>
    %cst_42 = arith.constant dense<0.000000e+00> : vector<8x8xf32>
    %56 = vector.multi_reduction <add>, %55, %cst_42 [2] : vector<8x8x8xf32> to vector<8x8xf32>
    %57 = vector.shape_cast %56 : vector<8x8xf32> to vector<8x8x1xf32>
    %58 = tpu.reciprocal %57 {approx = true} : vector<8x8x1xf32> -> vector<8x8x1xf32>
    %59 = vector.broadcast %58 : vector<8x8x1xf32> to vector<8x8x8xf32>
    %60 = arith.mulf %55, %59 : vector<8x8x8xf32>
    "tpu.trace_start"() <{level = 10 : i32, message = "gqk,gkd->gqd"}> : () -> ()
    %cst_43 = arith.constant dense<0.000000e+00> : vector<8x8x8xf32>
    %61 = tpu.matmul %60, %47, %cst_43 {dimension_numbers = #tpu.dot_dimension_numbers<[2], [1], [1], [2], [0, 0, 0, 1, 1, 2], [0], [0]>} : vector<8x8x8xf32>, vector<8x8x8xf32>, vector<8x8x8xf32> -> vector<8x8x8xf32>
    "tpu.trace_stop"() : () -> ()
    %c0_44 = arith.constant 0 : index
    %c0_45 = arith.constant 0 : index
    %c0_46 = arith.constant 0 : index
    %c0_47 = arith.constant 0 : index
    %62 = vector.load %arg5[%c0_44, %c0_45, %c0_46, %c0_47] : memref<2x8x8x32xf32, #tpu.memory_space<vmem>>, vector<1x8x8x32xf32>
    %63 = vector.shape_cast %62 : vector<1x8x8x32xf32> to vector<8x8x32xf32>
    "tpu.trace_start"() <{level = 10 : i32, message = "gqd,gdo->gqo"}> : () -> ()
    %cst_48 = arith.constant dense<0.000000e+00> : vector<8x8x32xf32>
    %64 = tpu.matmul %61, %63, %cst_48 {dimension_numbers = #tpu.dot_dimension_numbers<[2], [1], [1], [2], [0, 0, 0, 1, 1, 2], [0], [0]>} : vector<8x8x8xf32>, vector<8x8x32xf32>, vector<8x8x32xf32> -> vector<8x8x32xf32>
    "tpu.trace_stop"() : () -> ()
    %65 = vector.shape_cast %64 : vector<8x8x32xf32> to vector<2x4x8x32xf32>
    %cst_49 = arith.constant dense<0.000000e+00> : vector<2x8x32xf32>
    %66 = vector.multi_reduction <add>, %65, %cst_49 [1] : vector<2x4x8x32xf32> to vector<2x8x32xf32>
    %67 = vector.shape_cast %66 : vector<2x8x32xf32> to vector<16x32xf32>
    %68 = vector.broadcast %13 : vector<1x32xf32> to vector<16x32xf32>
    %69 = arith.addf %67, %68 : vector<16x32xf32>
    %70 = arith.addf %12, %69 : vector<16x32xf32>
    %cst_50 = arith.constant dense<0.000000e+00> : vector<16xf32>
    %71 = vector.multi_reduction <add>, %70, %cst_50 [1] : vector<16x32xf32> to vector<16xf32>
    %72 = vector.shape_cast %71 : vector<16xf32> to vector<16x1xf32>
    %cst_51 = arith.constant 3.125000e-02 : f32
    %73 = vector.broadcast %cst_51 : f32 to vector<16x1xf32>
    %74 = arith.mulf %72, %73 : vector<16x1xf32>
    %75 = arith.mulf %70, %70 : vector<16x32xf32>
    %cst_52 = arith.constant dense<0.000000e+00> : vector<16xf32>
    %76 = vector.multi_reduction <add>, %75, %cst_52 [1] : vector<16x32xf32> to vector<16xf32>
    %77 = vector.shape_cast %76 : vector<16xf32> to vector<16x1xf32>
    %cst_53 = arith.constant 3.125000e-02 : f32
    %78 = vector.broadcast %cst_53 : f32 to vector<16x1xf32>
    %79 = arith.mulf %77, %78 : vector<16x1xf32>
    %80 = arith.mulf %74, %74 : vector<16x1xf32>
    %81 = arith.subf %79, %80 : vector<16x1xf32>
    %82 = vector.broadcast %74 : vector<16x1xf32> to vector<16x32xf32>
    %83 = arith.subf %70, %82 : vector<16x32xf32>
    %cst_54 = arith.constant 9.99999974E-6 : f32
    %84 = vector.broadcast %cst_54 : f32 to vector<16x1xf32>
    %85 = arith.addf %81, %84 : vector<16x1xf32>
    %86 = math.rsqrt %85 : vector<16x1xf32>
    %87 = vector.broadcast %86 : vector<16x1xf32> to vector<16x32xf32>
    %88 = arith.mulf %83, %87 : vector<16x32xf32>
    %89 = vector.broadcast %14 : vector<1x32xf32> to vector<16x32xf32>
    %90 = arith.mulf %88, %89 : vector<16x32xf32>
    %91 = vector.broadcast %15 : vector<1x32xf32> to vector<16x32xf32>
    %92 = arith.addf %90, %91 : vector<16x32xf32>
    %c0_55 = arith.constant 0 : index
    %c0_56 = arith.constant 0 : index
    %c0_57 = arith.constant 0 : index
    %93 = vector.load %arg6[%c0_55, %c0_56, %c0_57] : memref<2x32x64xf32, #tpu.memory_space<vmem>>, vector<1x32x64xf32>
    %94 = vector.shape_cast %93 : vector<1x32x64xf32> to vector<32x64xf32>
    %cst_58 = arith.constant dense<0.000000e+00> : vector<16x64xf32>
    %95 = tpu.matmul %92, %94, %cst_58 {dimension_numbers = #tpu.dot_dimension_numbers<[1], [0], [0], [1], [0, 0, 1, 1], [], []>} : vector<16x32xf32>, vector<32x64xf32>, vector<16x64xf32> -> vector<16x64xf32>
    %96 = vector.broadcast %18 : vector<1x64xf32> to vector<16x64xf32>
    %97 = arith.addf %95, %96 : vector<16x64xf32>
    %cst_59 = arith.constant 0.000000e+00 : f32
    %98 = vector.broadcast %cst_59 : f32 to vector<16x64xf32>
    %99 = arith.maximumf %97, %98 : vector<16x64xf32>
    %c0_60 = arith.constant 0 : index
    %c0_61 = arith.constant 0 : index
    %c0_62 = arith.constant 0 : index
    %100 = vector.load %arg7[%c0_60, %c0_61, %c0_62] : memref<2x64x32xf32, #tpu.memory_space<vmem>>, vector<1x64x32xf32>
    %101 = vector.shape_cast %100 : vector<1x64x32xf32> to vector<64x32xf32>
    %cst_63 = arith.constant dense<0.000000e+00> : vector<16x32xf32>
    %102 = tpu.matmul %99, %101, %cst_63 {dimension_numbers = #tpu.dot_dimension_numbers<[1], [0], [0], [1], [0, 0, 1, 1], [], []>} : vector<16x64xf32>, vector<64x32xf32>, vector<16x32xf32> -> vector<16x32xf32>
    %103 = vector.broadcast %19 : vector<1x32xf32> to vector<16x32xf32>
    %104 = arith.addf %102, %103 : vector<16x32xf32>
    %105 = arith.addf %92, %104 : vector<16x32xf32>
    %cst_64 = arith.constant dense<0.000000e+00> : vector<16xf32>
    %106 = vector.multi_reduction <add>, %105, %cst_64 [1] : vector<16x32xf32> to vector<16xf32>
    %107 = vector.shape_cast %106 : vector<16xf32> to vector<16x1xf32>
    %cst_65 = arith.constant 3.125000e-02 : f32
    %108 = vector.broadcast %cst_65 : f32 to vector<16x1xf32>
    %109 = arith.mulf %107, %108 : vector<16x1xf32>
    %110 = arith.mulf %105, %105 : vector<16x32xf32>
    %cst_66 = arith.constant dense<0.000000e+00> : vector<16xf32>
    %111 = vector.multi_reduction <add>, %110, %cst_66 [1] : vector<16x32xf32> to vector<16xf32>
    %112 = vector.shape_cast %111 : vector<16xf32> to vector<16x1xf32>
    %cst_67 = arith.constant 3.125000e-02 : f32
    %113 = vector.broadcast %cst_67 : f32 to vector<16x1xf32>
    %114 = arith.mulf %112, %113 : vector<16x1xf32>
    %115 = arith.mulf %109, %109 : vector<16x1xf32>
    %116 = arith.subf %114, %115 : vector<16x1xf32>
    %117 = vector.broadcast %109 : vector<16x1xf32> to vector<16x32xf32>
    %118 = arith.subf %105, %117 : vector<16x32xf32>
    %cst_68 = arith.constant 9.99999974E-6 : f32
    %119 = vector.broadcast %cst_68 : f32 to vector<16x1xf32>
    %120 = arith.addf %116, %119 : vector<16x1xf32>
    %121 = math.rsqrt %120 : vector<16x1xf32>
    %122 = vector.broadcast %121 : vector<16x1xf32> to vector<16x32xf32>
    %123 = arith.mulf %118, %122 : vector<16x32xf32>
    %124 = vector.broadcast %16 : vector<1x32xf32> to vector<16x32xf32>
    %125 = arith.mulf %123, %124 : vector<16x32xf32>
    %126 = vector.broadcast %17 : vector<1x32xf32> to vector<16x32xf32>
    %127 = arith.addf %125, %126 : vector<16x32xf32>
    %c7 = arith.constant 7 : index
    %c0_69 = arith.constant 0 : index
    %128 = vector.load %arg9[%c7, %c0_69] : memref<15x128xf32, #tpu.memory_space<vmem>>, vector<1x32xf32>
    %c8 = arith.constant 8 : index
    %c0_70 = arith.constant 0 : index
    %129 = vector.load %arg9[%c8, %c0_70] : memref<15x128xf32, #tpu.memory_space<vmem>>, vector<1x32xf32>
    %c9 = arith.constant 9 : index
    %c0_71 = arith.constant 0 : index
    %130 = vector.load %arg9[%c9, %c0_71] : memref<15x128xf32, #tpu.memory_space<vmem>>, vector<1x32xf32>
    %c10 = arith.constant 10 : index
    %c0_72 = arith.constant 0 : index
    %131 = vector.load %arg9[%c10, %c0_72] : memref<15x128xf32, #tpu.memory_space<vmem>>, vector<1x32xf32>
    %c11 = arith.constant 11 : index
    %c0_73 = arith.constant 0 : index
    %132 = vector.load %arg9[%c11, %c0_73] : memref<15x128xf32, #tpu.memory_space<vmem>>, vector<1x32xf32>
    %c12 = arith.constant 12 : index
    %c0_74 = arith.constant 0 : index
    %133 = vector.load %arg9[%c12, %c0_74] : memref<15x128xf32, #tpu.memory_space<vmem>>, vector<1x64xf32>
    %c13 = arith.constant 13 : index
    %c0_75 = arith.constant 0 : index
    %134 = vector.load %arg9[%c13, %c0_75] : memref<15x128xf32, #tpu.memory_space<vmem>>, vector<1x32xf32>
    %135 = vector.shape_cast %127 : vector<16x32xf32> to vector<2x1x8x32xf32>
    %136 = vector.shape_cast %135 : vector<2x1x8x32xf32> to vector<2x1x8x32xf32>
    %137 = vector.broadcast %136 : vector<2x1x8x32xf32> to vector<2x4x8x32xf32>
    %138 = vector.shape_cast %137 : vector<2x4x8x32xf32> to vector<8x8x32xf32>
    %c3_76 = arith.constant 3 : index
    %c0_77 = arith.constant 0 : index
    %c0_78 = arith.constant 0 : index
    %c0_79 = arith.constant 0 : index
    %139 = vector.load %arg3[%c3_76, %c0_77, %c0_78, %c0_79] : memref<6x8x32x8xf32, #tpu.memory_space<vmem>>, vector<1x8x32x8xf32>
    %140 = vector.shape_cast %139 : vector<1x8x32x8xf32> to vector<8x32x8xf32>
    %c4_80 = arith.constant 4 : index
    %c0_81 = arith.constant 0 : index
    %c0_82 = arith.constant 0 : index
    %c0_83 = arith.constant 0 : index
    %141 = vector.load %arg3[%c4_80, %c0_81, %c0_82, %c0_83] : memref<6x8x32x8xf32, #tpu.memory_space<vmem>>, vector<1x8x32x8xf32>
    %142 = vector.shape_cast %141 : vector<1x8x32x8xf32> to vector<8x32x8xf32>
    %c5_84 = arith.constant 5 : index
    %c0_85 = arith.constant 0 : index
    %c0_86 = arith.constant 0 : index
    %c0_87 = arith.constant 0 : index
    %143 = vector.load %arg3[%c5_84, %c0_85, %c0_86, %c0_87] : memref<6x8x32x8xf32, #tpu.memory_space<vmem>>, vector<1x8x32x8xf32>
    %144 = vector.shape_cast %143 : vector<1x8x32x8xf32> to vector<8x32x8xf32>
    %c3_88 = arith.constant 3 : index
    %c0_89 = arith.constant 0 : index
    %c0_90 = arith.constant 0 : index
    %145 = vector.load %arg4[%c3_88, %c0_89, %c0_90] : memref<6x8x8xf32, #tpu.memory_space<vmem>>, vector<1x8x8xf32>
    %146 = vector.shape_cast %145 : vector<1x8x8xf32> to vector<8x8xf32>
    %147 = vector.shape_cast %146 : vector<8x8xf32> to vector<8x1x8xf32>
    %c4_91 = arith.constant 4 : index
    %c0_92 = arith.constant 0 : index
    %c0_93 = arith.constant 0 : index
    %148 = vector.load %arg4[%c4_91, %c0_92, %c0_93] : memref<6x8x8xf32, #tpu.memory_space<vmem>>, vector<1x8x8xf32>
    %149 = vector.shape_cast %148 : vector<1x8x8xf32> to vector<8x8xf32>
    %150 = vector.shape_cast %149 : vector<8x8xf32> to vector<8x1x8xf32>
    %c5_94 = arith.constant 5 : index
    %c0_95 = arith.constant 0 : index
    %c0_96 = arith.constant 0 : index
    %151 = vector.load %arg4[%c5_94, %c0_95, %c0_96] : memref<6x8x8xf32, #tpu.memory_space<vmem>>, vector<1x8x8xf32>
    %152 = vector.shape_cast %151 : vector<1x8x8xf32> to vector<8x8xf32>
    %153 = vector.shape_cast %152 : vector<8x8xf32> to vector<8x1x8xf32>
    "tpu.trace_start"() <{level = 10 : i32, message = "gsd,gde->gse"}> : () -> ()
    %cst_97 = arith.constant dense<0.000000e+00> : vector<8x8x8xf32>
    %154 = tpu.matmul %138, %140, %cst_97 {dimension_numbers = #tpu.dot_dimension_numbers<[2], [1], [1], [2], [0, 0, 0, 1, 1, 2], [0], [0]>} : vector<8x8x32xf32>, vector<8x32x8xf32>, vector<8x8x8xf32> -> vector<8x8x8xf32>
    "tpu.trace_stop"() : () -> ()
    %155 = vector.broadcast %147 : vector<8x1x8xf32> to vector<8x8x8xf32>
    %156 = arith.addf %154, %155 : vector<8x8x8xf32>
    "tpu.trace_start"() <{level = 10 : i32, message = "gsd,gde->gse"}> : () -> ()
    %cst_98 = arith.constant dense<0.000000e+00> : vector<8x8x8xf32>
    %157 = tpu.matmul %138, %142, %cst_98 {dimension_numbers = #tpu.dot_dimension_numbers<[2], [1], [1], [2], [0, 0, 0, 1, 1, 2], [0], [0]>} : vector<8x8x32xf32>, vector<8x32x8xf32>, vector<8x8x8xf32> -> vector<8x8x8xf32>
    "tpu.trace_stop"() : () -> ()
    %158 = vector.broadcast %150 : vector<8x1x8xf32> to vector<8x8x8xf32>
    %159 = arith.addf %157, %158 : vector<8x8x8xf32>
    "tpu.trace_start"() <{level = 10 : i32, message = "gsd,gde->gse"}> : () -> ()
    %cst_99 = arith.constant dense<0.000000e+00> : vector<8x8x8xf32>
    %160 = tpu.matmul %138, %144, %cst_99 {dimension_numbers = #tpu.dot_dimension_numbers<[2], [1], [1], [2], [0, 0, 0, 1, 1, 2], [0], [0]>} : vector<8x8x32xf32>, vector<8x32x8xf32>, vector<8x8x8xf32> -> vector<8x8x8xf32>
    "tpu.trace_stop"() : () -> ()
    %161 = vector.broadcast %153 : vector<8x1x8xf32> to vector<8x8x8xf32>
    %162 = arith.addf %160, %161 : vector<8x8x8xf32>
    "tpu.trace_start"() <{level = 10 : i32, message = "gqd,gkd->gqk"}> : () -> ()
    %cst_100 = arith.constant dense<0.000000e+00> : vector<8x8x8xf32>
    %163 = tpu.matmul %156, %159, %cst_100 {dimension_numbers = #tpu.dot_dimension_numbers<[2], [2], [1], [1], [0, 0, 0, 1, 1, 1], [0], [0]>} : vector<8x8x8xf32>, vector<8x8x8xf32>, vector<8x8x8xf32> -> vector<8x8x8xf32>
    "tpu.trace_stop"() : () -> ()
    %cst_101 = arith.constant 0.353553385 : f32
    %164 = vector.broadcast %cst_101 : f32 to vector<8x8x8xf32>
    %165 = arith.mulf %163, %164 : vector<8x8x8xf32>
    %cst_102 = arith.constant dense<0xFF800000> : vector<8x8xf32>
    %166 = vector.multi_reduction <maximumf>, %165, %cst_102 [2] : vector<8x8x8xf32> to vector<8x8xf32>
    %167 = vector.shape_cast %166 : vector<8x8xf32> to vector<8x8x1xf32>
    %168 = vector.broadcast %167 : vector<8x8x1xf32> to vector<8x8x8xf32>
    %169 = arith.subf %165, %168 : vector<8x8x8xf32>
    %170 = math.exp %169 : vector<8x8x8xf32>
    %cst_103 = arith.constant dense<0.000000e+00> : vector<8x8xf32>
    %171 = vector.multi_reduction <add>, %170, %cst_103 [2] : vector<8x8x8xf32> to vector<8x8xf32>
    %172 = vector.shape_cast %171 : vector<8x8xf32> to vector<8x8x1xf32>
    %173 = tpu.reciprocal %172 {approx = true} : vector<8x8x1xf32> -> vector<8x8x1xf32>
    %174 = vector.broadcast %173 : vector<8x8x1xf32> to vector<8x8x8xf32>
    %175 = arith.mulf %170, %174 : vector<8x8x8xf32>
    "tpu.trace_start"() <{level = 10 : i32, message = "gqk,gkd->gqd"}> : () -> ()
    %cst_104 = arith.constant dense<0.000000e+00> : vector<8x8x8xf32>
    %176 = tpu.matmul %175, %162, %cst_104 {dimension_numbers = #tpu.dot_dimension_numbers<[2], [1], [1], [2], [0, 0, 0, 1, 1, 2], [0], [0]>} : vector<8x8x8xf32>, vector<8x8x8xf32>, vector<8x8x8xf32> -> vector<8x8x8xf32>
    "tpu.trace_stop"() : () -> ()
    %c1_105 = arith.constant 1 : index
    %c0_106 = arith.constant 0 : index
    %c0_107 = arith.constant 0 : index
    %c0_108 = arith.constant 0 : index
    %177 = vector.load %arg5[%c1_105, %c0_106, %c0_107, %c0_108] : memref<2x8x8x32xf32, #tpu.memory_space<vmem>>, vector<1x8x8x32xf32>
    %178 = vector.shape_cast %177 : vector<1x8x8x32xf32> to vector<8x8x32xf32>
    "tpu.trace_start"() <{level = 10 : i32, message = "gqd,gdo->gqo"}> : () -> ()
    %cst_109 = arith.constant dense<0.000000e+00> : vector<8x8x32xf32>
    %179 = tpu.matmul %176, %178, %cst_109 {dimension_numbers = #tpu.dot_dimension_numbers<[2], [1], [1], [2], [0, 0, 0, 1, 1, 2], [0], [0]>} : vector<8x8x8xf32>, vector<8x8x32xf32>, vector<8x8x32xf32> -> vector<8x8x32xf32>
    "tpu.trace_stop"() : () -> ()
    %180 = vector.shape_cast %179 : vector<8x8x32xf32> to vector<2x4x8x32xf32>
    %cst_110 = arith.constant dense<0.000000e+00> : vector<2x8x32xf32>
    %181 = vector.multi_reduction <add>, %180, %cst_110 [1] : vector<2x4x8x32xf32> to vector<2x8x32xf32>
    %182 = vector.shape_cast %181 : vector<2x8x32xf32> to vector<16x32xf32>
    %183 = vector.broadcast %128 : vector<1x32xf32> to vector<16x32xf32>
    %184 = arith.addf %182, %183 : vector<16x32xf32>
    %185 = arith.addf %127, %184 : vector<16x32xf32>
    %cst_111 = arith.constant dense<0.000000e+00> : vector<16xf32>
    %186 = vector.multi_reduction <add>, %185, %cst_111 [1] : vector<16x32xf32> to vector<16xf32>
    %187 = vector.shape_cast %186 : vector<16xf32> to vector<16x1xf32>
    %cst_112 = arith.constant 3.125000e-02 : f32
    %188 = vector.broadcast %cst_112 : f32 to vector<16x1xf32>
    %189 = arith.mulf %187, %188 : vector<16x1xf32>
    %190 = arith.mulf %185, %185 : vector<16x32xf32>
    %cst_113 = arith.constant dense<0.000000e+00> : vector<16xf32>
    %191 = vector.multi_reduction <add>, %190, %cst_113 [1] : vector<16x32xf32> to vector<16xf32>
    %192 = vector.shape_cast %191 : vector<16xf32> to vector<16x1xf32>
    %cst_114 = arith.constant 3.125000e-02 : f32
    %193 = vector.broadcast %cst_114 : f32 to vector<16x1xf32>
    %194 = arith.mulf %192, %193 : vector<16x1xf32>
    %195 = arith.mulf %189, %189 : vector<16x1xf32>
    %196 = arith.subf %194, %195 : vector<16x1xf32>
    %197 = vector.broadcast %189 : vector<16x1xf32> to vector<16x32xf32>
    %198 = arith.subf %185, %197 : vector<16x32xf32>
    %cst_115 = arith.constant 9.99999974E-6 : f32
    %199 = vector.broadcast %cst_115 : f32 to vector<16x1xf32>
    %200 = arith.addf %196, %199 : vector<16x1xf32>
    %201 = math.rsqrt %200 : vector<16x1xf32>
    %202 = vector.broadcast %201 : vector<16x1xf32> to vector<16x32xf32>
    %203 = arith.mulf %198, %202 : vector<16x32xf32>
    %204 = vector.broadcast %129 : vector<1x32xf32> to vector<16x32xf32>
    %205 = arith.mulf %203, %204 : vector<16x32xf32>
    %206 = vector.broadcast %130 : vector<1x32xf32> to vector<16x32xf32>
    %207 = arith.addf %205, %206 : vector<16x32xf32>
    %c1_116 = arith.constant 1 : index
    %c0_117 = arith.constant 0 : index
    %c0_118 = arith.constant 0 : index
    %208 = vector.load %arg6[%c1_116, %c0_117, %c0_118] : memref<2x32x64xf32, #tpu.memory_space<vmem>>, vector<1x32x64xf32>
    %209 = vector.shape_cast %208 : vector<1x32x64xf32> to vector<32x64xf32>
    %cst_119 = arith.constant dense<0.000000e+00> : vector<16x64xf32>
    %210 = tpu.matmul %207, %209, %cst_119 {dimension_numbers = #tpu.dot_dimension_numbers<[1], [0], [0], [1], [0, 0, 1, 1], [], []>} : vector<16x32xf32>, vector<32x64xf32>, vector<16x64xf32> -> vector<16x64xf32>
    %211 = vector.broadcast %133 : vector<1x64xf32> to vector<16x64xf32>
    %212 = arith.addf %210, %211 : vector<16x64xf32>
    %cst_120 = arith.constant 0.000000e+00 : f32
    %213 = vector.broadcast %cst_120 : f32 to vector<16x64xf32>
    %214 = arith.maximumf %212, %213 : vector<16x64xf32>
    %c1_121 = arith.constant 1 : index
    %c0_122 = arith.constant 0 : index
    %c0_123 = arith.constant 0 : index
    %215 = vector.load %arg7[%c1_121, %c0_122, %c0_123] : memref<2x64x32xf32, #tpu.memory_space<vmem>>, vector<1x64x32xf32>
    %216 = vector.shape_cast %215 : vector<1x64x32xf32> to vector<64x32xf32>
    %cst_124 = arith.constant dense<0.000000e+00> : vector<16x32xf32>
    %217 = tpu.matmul %214, %216, %cst_124 {dimension_numbers = #tpu.dot_dimension_numbers<[1], [0], [0], [1], [0, 0, 1, 1], [], []>} : vector<16x64xf32>, vector<64x32xf32>, vector<16x32xf32> -> vector<16x32xf32>
    %218 = vector.broadcast %134 : vector<1x32xf32> to vector<16x32xf32>
    %219 = arith.addf %217, %218 : vector<16x32xf32>
    %220 = arith.addf %207, %219 : vector<16x32xf32>
    %cst_125 = arith.constant dense<0.000000e+00> : vector<16xf32>
    %221 = vector.multi_reduction <add>, %220, %cst_125 [1] : vector<16x32xf32> to vector<16xf32>
    %222 = vector.shape_cast %221 : vector<16xf32> to vector<16x1xf32>
    %cst_126 = arith.constant 3.125000e-02 : f32
    %223 = vector.broadcast %cst_126 : f32 to vector<16x1xf32>
    %224 = arith.mulf %222, %223 : vector<16x1xf32>
    %225 = arith.mulf %220, %220 : vector<16x32xf32>
    %cst_127 = arith.constant dense<0.000000e+00> : vector<16xf32>
    %226 = vector.multi_reduction <add>, %225, %cst_127 [1] : vector<16x32xf32> to vector<16xf32>
    %227 = vector.shape_cast %226 : vector<16xf32> to vector<16x1xf32>
    %cst_128 = arith.constant 3.125000e-02 : f32
    %228 = vector.broadcast %cst_128 : f32 to vector<16x1xf32>
    %229 = arith.mulf %227, %228 : vector<16x1xf32>
    %230 = arith.mulf %224, %224 : vector<16x1xf32>
    %231 = arith.subf %229, %230 : vector<16x1xf32>
    %232 = vector.broadcast %224 : vector<16x1xf32> to vector<16x32xf32>
    %233 = arith.subf %220, %232 : vector<16x32xf32>
    %cst_129 = arith.constant 9.99999974E-6 : f32
    %234 = vector.broadcast %cst_129 : f32 to vector<16x1xf32>
    %235 = arith.addf %231, %234 : vector<16x1xf32>
    %236 = math.rsqrt %235 : vector<16x1xf32>
    %237 = vector.broadcast %236 : vector<16x1xf32> to vector<16x32xf32>
    %238 = arith.mulf %233, %237 : vector<16x32xf32>
    %239 = vector.broadcast %131 : vector<1x32xf32> to vector<16x32xf32>
    %240 = arith.mulf %238, %239 : vector<16x32xf32>
    %241 = vector.broadcast %132 : vector<1x32xf32> to vector<16x32xf32>
    %242 = arith.addf %240, %241 : vector<16x32xf32>
    %243 = vector.shape_cast %242 : vector<16x32xf32> to vector<2x8x32xf32>
    %cst_130 = arith.constant dense<0.000000e+00> : vector<2x32xf32>
    %244 = vector.multi_reduction <add>, %243, %cst_130 [1] : vector<2x8x32xf32> to vector<2x32xf32>
    %cst_131 = arith.constant 8.000000e+00 : f32
    %245 = vector.broadcast %cst_131 : f32 to vector<2x32xf32>
    %246 = arith.divf %244, %245 : vector<2x32xf32>
    %c14 = arith.constant 14 : index
    %c0_132 = arith.constant 0 : index
    %247 = vector.load %arg9[%c14, %c0_132] : memref<15x128xf32, #tpu.memory_space<vmem>>, vector<1x64xf32>
    %c0_133 = arith.constant 0 : index
    %c0_134 = arith.constant 0 : index
    %248 = vector.load %arg8[%c0_133, %c0_134] : memref<32x64xf32, #tpu.memory_space<vmem>>, vector<32x64xf32>
    %cst_135 = arith.constant dense<0.000000e+00> : vector<2x64xf32>
    %249 = tpu.matmul %246, %248, %cst_135 {dimension_numbers = #tpu.dot_dimension_numbers<[1], [0], [0], [1], [0, 0, 1, 1], [], []>} : vector<2x32xf32>, vector<32x64xf32>, vector<2x64xf32> -> vector<2x64xf32>
    %250 = vector.broadcast %247 : vector<1x64xf32> to vector<2x64xf32>
    %251 = arith.addf %249, %250 : vector<2x64xf32>
    %cst_136 = arith.constant 0.000000e+00 : f32
    %252 = vector.broadcast %cst_136 : f32 to vector<2x64xf32>
    %253 = arith.subf %252, %251 : vector<2x64xf32>
    %254 = math.exp %253 : vector<2x64xf32>
    %cst_137 = arith.constant 1.000000e+00 : f32
    %255 = vector.broadcast %cst_137 : f32 to vector<2x64xf32>
    %256 = arith.addf %255, %254 : vector<2x64xf32>
    %257 = tpu.reciprocal %256 {approx = true} : vector<2x64xf32> -> vector<2x64xf32>
    %258 = vector.extract_strided_slice %257 {offsets = [0, 0], sizes = [1, 64], strides = [1, 1]} : vector<2x64xf32> to vector<1x64xf32>
    %259 = vector.extract_strided_slice %257 {offsets = [1, 0], sizes = [1, 64], strides = [1, 1]} : vector<2x64xf32> to vector<1x64xf32>
    %260 = tpu.concatenate %258, %259 in 1 : vector<1x64xf32>, vector<1x64xf32> -> vector<1x128xf32>
    %c0_138 = arith.constant 0 : index
    %c0_139 = arith.constant 0 : index
    %261 = vector.load %arg10[%c0_138, %c0_139] : memref<1x128xf32, #tpu.memory_space<vmem>>, vector<1x128xf32>
    tpu.vector_store %arg10[%c0_138, %c0_139], %260 {strides = array<i32>} : memref<1x128xf32, #tpu.memory_space<vmem>>, vector<1x128xf32>,
    return
  }
}

</mosaic_0001>

<bundles_post_ra>
// kernel: tpu_custom_call.1
= control target key start
LH: loop header
LB: loop body
LE: loop exit
PB: predicated region body
PF: predicated region fallthrough
CT: control target
= control target key end

     0   :  { %v42_v0 = vlaneseq  ;;  %v10788_v8 = vmov 0.0|0.0   ;;  %s12430_s0 = inlined_call_operand.vmem [shape: s32[2,8], index: 0, kind: input, shape index: {}]   ;;  %s12431_s1 = inlined_call_operand.vmem [shape: f32[39,32], index: 1, kind: input, shape index: {}]   ;;  %s12432_s2 = inlined_call_operand.vmem [shape: f32[16,32], index: 2, kind: input, shape index: {}]   ;;  %s12433_s3 = inlined_call_operand.vmem [shape: f32[6,8,32,8], index: 3, kind: input, shape index: {}]   ;;  %s12434_s4 = inlined_call_operand.vmem [shape: f32[6,8,8], index: 4, kind: input, shape index: {}]   ;;  %s12435_s5 = inlined_call_operand.vmem [shape: f32[2,8,8,32], index: 5, kind: input, shape index: {}]   ;;  %s12436_s6 = inlined_call_operand.vmem [shape: f32[2,32,64], index: 6, kind: input, shape index: {}]   ;;  %s12437_s7 = inlined_call_operand.vmem [shape: f32[2,64,32], index: 7, kind: input, shape index: {}]   ;;  %s12438_s8 = inlined_call_operand.vmem [shape: f32[32,64], index: 8, kind: input, shape index: {}]   ;;  %s12439_s9 = inlined_call_operand.vmem [shape: f32[15,128], index: 9, kind: input, shape index: {}]   ;;  %s12440_s10 = inlined_call_operand.hbm [shape: f32[1,128], index: 10, kind: output, shape index: {}]  }
   0x1   :  { %v37_v1 = vld [vmem:[%s12431_s1] sm:$0xff]  ;;  %v38_v2 = vld [vmem:[%s12431_s1 + $0x8] sm:$0xff]  ;;  %v39_v4 = vld [vmem:[%s12431_s1 + $0x10] sm:$0xff]  ;;  %10326 = vmatprep.subr.bf16.mxu1 %v10788_v8 }
   0x2   :  { %v10318_v3 = vpack.c.bf16 %v38_v2, %v37_v1  ;;  %v40_v5 = vld [vmem:[%s12431_s1 + $0x18] sm:$0xff]  ;;  %v10861_v6 = vshrl.u32 %v42_v0, 7  ;;  %v157_v9 = vld [vmem:[%s12433_s3] sm:$0xff]  ;;  %v158_v10 = vld [vmem:[%s12433_s3 + $0x8] sm:$0xff] }
   0x3   :  { %v10322_v7 = vpack.c.bf16 %v40_v5, %v39_v4  ;;  %v36_v11 = vld [vmem:[%s12430_s0] sm:$0x3]  ;;  %v10327_v12 = vpack.c.bf16 %v158_v10, %v157_v9 }
   0x4   :  { %10319 = vmatprep.subr.bf16.mxu0 %v10318_v3 }
   0x5   :  { %15 = vsyncpa [#allocation3], 0  ;;  %v10874_v13 = vsub.s32 0, %v10861_v6  ;;  %v53_v14 = vsub.s32 1, %v10861_v6  ;;  %10321 = vmatpush3.bf16.msra.mxu0 %v10318_v3  ;;  %10328 = vmatpush3.bf16.msra.mxu1 %v10327_v12  ;;  %v41_v16 = vld [vmem:[%s12431_s1 + $0x20] sm:$0x7f] }
   0x6   :  { %10323 = vmatprep.subr.bf16.mxu0 %v10322_v7  ;;  %vm71_vm0 = vcmask 1046528   ;;  %10329 = vmatprep.subr.bf16.mxu1 %v10788_v8  ;;  %v43_v18 = vand.u32 127, %v42_v0  ;;  %vm64_vm1 = vcmask 318464   ;;  %v165_v20 = vld [vmem:[%s12433_s3 + $0x40] sm:$0xff]  ;;  %v166_v21 = vld [vmem:[%s12433_s3 + $0x48] sm:$0xff]  ;;  %v10789_v22 = vmov 0.0  }
   0x7   :  { %v47_v15 = vrot.slane %v36_v11, %v10874_v13  ;;  %v54_v17 = vrot.slane %v36_v11, %v53_v14  ;;  %v10339_v25 = vpack.c.bf16 %v166_v21, %v165_v20  ;;  %v159_v27 = vld [vmem:[%s12433_s3 + $0x10] sm:$0xff]  ;;  %v160_v28 = vld [vmem:[%s12433_s3 + $0x18] sm:$0xff]  ;;  %vm10790_vm4 = vmmov 0   ;;  %v161_v33 = vld [vmem:[%s12433_s3 + $0x20] sm:$0xff]  ;;  %s10793_s27 = smov [#allocation2]  }
   0x8   :  { %v167_v29 = vld [vmem:[%s12433_s3 + $0x50] sm:$0xff]  ;;  %v10330_v30 = vpack.c.bf16 %v160_v28, %v159_v27  ;;  %v168_v31 = vld [vmem:[%s12433_s3 + $0x58] sm:$0xff]  ;;  %9487 = vmatprep.mubr.msk.f32.mxu1 %vm10790_vm4, %v10789_v22  ;;  %v162_v34 = vld [vmem:[%s12433_s3 + $0x28] sm:$0xff]  ;;  %vm450_vm5 = vcmask 261120   ;;  %vm2217_vm6 = vcmask 64512   ;;  %vm4265_vm7 = vcmask 523264  }
   0x9   :  { %49 = vbcast.lane.b32.xlu0 %v47_v15, 256  ;;  %10325 = vmatpush3.bf16.msra.mxu0 %v10322_v7  ;;  %v10342_v32 = vpack.c.bf16 %v168_v31, %v167_v29  ;;  %v173_v35 = vld [vmem:[%s12433_s3 + $0x80] sm:$0xff]  ;;  %v174_v36 = vld [vmem:[%s12433_s3 + $0x88] sm:$0xff]  ;;  %v10333_v40 = vpack.c.bf16 %v162_v34, %v161_v33  ;;  %v163_v42 = vld [vmem:[%s12433_s3 + $0x30] sm:$0xff]  ;;  %vm8662_vm8 = vcmask 1041409   ;;  %s8754_s28 = sshll.u32 %s10793_s27, 4  ;;  %s8755_s28 = int_to_ptr.vmem [resolvable:$true] %s8754_s28 }
   0xa   :  { %9474 = vmatprep.subr.msk.mxu0 %vm71_vm0, %v41_v16  ;;  %10331 = vmatpush3.bf16.msra.mxu1 %v10330_v30  ;;  %v62_v37 = vld [vmem:[%s12432_s2] sm:$0xff]  ;;  %v10351_v41 = vpack.c.bf16 %v174_v36, %v173_v35  ;;  %v164_v44 = vld [vmem:[%s12433_s3 + $0x38] sm:$0xff]  ;;  %v175_v45 = vld [vmem:[%s12433_s3 + $0x90] sm:$0xff]  ;;  %s10768_s0 = scalar_lea.vmem %s8755_s28, 32  ;;  %p10769_p1 = scmp.lt.s32.totalorder %s8755_s28, %s8755_s28 }
   0xb   :  { %10332 = vmatprep.subr.bf16.mxu1 %v10788_v8  ;;  %v176_v46 = vld [vmem:[%s12433_s3 + $0x98] sm:$0xff]  ;;  %v10336_v47 = vpack.c.bf16 %v164_v44, %v163_v42  ;;  %v169_v49 = vld [vmem:[%s12433_s3 + $0x60] sm:$0xff]  ;;  %v170_v50 = vld [vmem:[%s12433_s3 + $0x68] sm:$0xff] }
   0xc   :  { %v10354_v48 = vpack.c.bf16 %v176_v46, %v175_v45  ;;  %v181_v51 = vld [vmem:[%s12433_s3 + $0xc0] sm:$0xff]  ;;  %v182_v52 = vld [vmem:[%s12433_s3 + $0xc8] sm:$0xff]  ;;  %v10345_v54 = vpack.c.bf16 %v170_v50, %v169_v49  ;;  %v171_v56 = vld [vmem:[%s12433_s3 + $0x70] sm:$0xff] }
   0xd   :  { %56 = vbcast.lane.b32.xlu0 %v54_v17, 256  ;;  %9475 = vmatpush3.msk.msra.mxu0 %vm71_vm0, %v41_v16  ;;  %v63_v53 = vld [vmem:[%s12432_s2 + $0x8] sm:$0xff]  ;;  %v10363_v55 = vpack.c.bf16 %v182_v52, %v181_v51  ;;  %v172_v58 = vld [vmem:[%s12433_s3 + $0x78] sm:$0xff]  ;;  %v183_v59 = vld [vmem:[%s12433_s3 + $0xd0] sm:$0xff]  ;;  %s10792_s2 = smov 64  }
   0xe   :  { %10338 = vmatprep.subr.bf16.mxu0 %v10788_v8  ;;  %v184_v60 = vld [vmem:[%s12433_s3 + $0xd8] sm:$0xff]  ;;  %v10348_v61 = vpack.c.bf16 %v172_v58, %v171_v56  ;;  %v177_v63 = vld [vmem:[%s12433_s3 + $0xa0] sm:$0xff]  ;;  %v178_v0 = vld [vmem:[%s12433_s3 + $0xa8] sm:$0xff] }
   0xf   :  { %v10366_v62 = vpack.c.bf16 %v184_v60, %v183_v59  ;;  %v8765_v1 = vld [vmem:[%s12433_s3 + $0x100] sm:$0xff]  ;;  %v8766_v2 = vld [vmem:[%s12433_s3 + $0x108] sm:$0xff]  ;;  %v10357_v3 = vpack.c.bf16 %v178_v0, %v177_v63  ;;  %v179_v5 = vld [vmem:[%s12433_s3 + $0xb0] sm:$0xff] }
  0x10   :  { %v10375_v4 = vpack.c.bf16 %v8766_v2, %v8765_v1  ;;  %v180_v7 = vld [vmem:[%s12433_s3 + $0xb8] sm:$0xff]  ;;  %v8767_v9 = vld [vmem:[%s12433_s3 + $0x110] sm:$0xff]  ;;  %v185_v14 = vld [vmem:[%s12433_s3 + $0xe0] sm:$0xff] }
  0x11   :  { %v8768_v10 = vld [vmem:[%s12433_s3 + $0x118] sm:$0xff]  ;;  %v10360_v11 = vpack.c.bf16 %v180_v7, %v179_v5  ;;  %v186_v15 = vld [vmem:[%s12433_s3 + $0xe8] sm:$0xff]  ;;  %v8773_v16 = vld [vmem:[%s12433_s3 + $0x140] sm:$0xff] }
  0x12   :  { %v10378_v12 = vpack.c.bf16 %v8768_v10, %v8767_v9  ;;  %v8774_v17 = vld [vmem:[%s12433_s3 + $0x148] sm:$0xff]  ;;  %v187_v20 = vld [vmem:[%s12433_s3 + $0xf0] sm:$0xff]  ;;  %v188_v21 = vld [vmem:[%s12433_s3 + $0xf8] sm:$0xff] }
  0x13   :  { %v8769_v27 = vld [vmem:[%s12433_s3 + $0x120] sm:$0xff]  ;;  %v8770_v28 = vld [vmem:[%s12433_s3 + $0x128] sm:$0xff]  ;;  %v8771_v33 = vld [vmem:[%s12433_s3 + $0x130] sm:$0xff] }
  0x14   :  { %v8781_v29 = vld [vmem:[%s12433_s3 + $0x180] sm:$0xff]  ;;  %v8782_v30 = vld [vmem:[%s12433_s3 + $0x188] sm:$0xff]  ;;  %v10381_v31 = vpack.c.bf16 %v8770_v28, %v8769_v27  ;;  %v8772_v34 = vld [vmem:[%s12433_s3 + $0x138] sm:$0xff] }
  0x15   :  { %v8783_v35 = vld [vmem:[%s12433_s3 + $0x190] sm:$0xff]  ;;  %v8784_v36 = vld [vmem:[%s12433_s3 + $0x198] sm:$0xff]  ;;  %v8790_v42 = vld [vmem:[%s12433_s3 + $0x1c8] sm:$0xff] }
  0x16   :  { %v8779_v46 = vld [vmem:[%s12433_s3 + $0x170] sm:$0xff]  ;;  %v8792_v49 = vld [vmem:[%s12433_s3 + $0x1d8] sm:$0xff]  ;;  %v8785_v52 = vld [vmem:[%s12433_s3 + $0x1a0] sm:$0xff] }
  0x17   :  { %v8787_v59 = vld [vmem:[%s12433_s3 + $0x1b0] sm:$0xff]  ;;  %v8788_v60 = vld [vmem:[%s12433_s3 + $0x1b8] sm:$0xff]  ;;  %v8793_v1 = vld [vmem:[%s12433_s3 + $0x1e0] sm:$0xff] }
  0x18   :  { %v10408_v63 = vpack.c.bf16 %v8788_v60, %v8787_v59  ;;  %v8794_v2 = vld [vmem:[%s12433_s3 + $0x1e8] sm:$0xff]  ;;  %v8795_v9 = vld [vmem:[%s12433_s3 + $0x1f0] sm:$0xff]  ;;  %v8796_v10 = vld [vmem:[%s12433_s3 + $0x1f8] sm:$0xff]  ;;  %v10791_v59 = vmov 1966171168  }
  0x19   :  { %v10417_v5 = vpack.c.bf16 %v8794_v2, %v8793_v1  ;;  %v259_v60 = vunpack.c.l.s4 %v10791_v59  ;;  %v8829_v2 = vld [vmem:[%s12434_s4 + $0x8] sm:$0xff] }
  0x7b   :  { %v50_v19 = vpop.permute.xlu0 %49 }
  0x7c   :  { %vm58_vm2 = vcmp.eq.s32.totalorder %v50_v19, %v43_v18  ;;  %v10387_v19 = vpack.c.bf16 %v8774_v17, %v8773_v16  ;;  %v8801_v16 = vld [vmem:[%s12433_s3 + $0x220] sm:$0xff]  ;;  %v8802_v17 = vld [vmem:[%s12433_s3 + $0x228] sm:$0xff] }
  0x7d   :  { %v60_v23 = vsel %vm58_vm2, 1.0, %v10789_v22 }
  0x7e   :  { %9476 = vmatprep.mubr.msk.f32.mxu0 %vm64_vm1, %v60_v23  ;;  %v8775_v23 = vld [vmem:[%s12433_s3 + $0x150] sm:$0xff] }
  0x7f   :  { %v57_v24 = vpop.permute.xlu0 %56 }
  0x80   :  { %vm59_vm3 = vcmp.eq.s32.totalorder %v57_v24, %v43_v18  ;;  %v10369_v18 = vpack.c.bf16 %v186_v15, %v185_v14  ;;  %v8776_v24 = vld [vmem:[%s12433_s3 + $0x158] sm:$0xff]  ;;  %v10420_v14 = vpack.c.bf16 %v8796_v10, %v8795_v9 }
  0x81   :  { %v61_v26 = vsel %vm59_vm3, 1.0, %v10789_v22 }
  0x82   :  { %9477 = vmatmul.mubr.msk.f32.vlgmr.msra.gmra.mrb[0].mxu0 %vm64_vm1, %v61_v26  ;;  %v10390_v26 = vpack.c.bf16 %v8776_v24, %v8775_v23  ;;  %v8803_v23 = vld [vmem:[%s12433_s3 + $0x230] sm:$0xff]  ;;  %v8804_v24 = vld [vmem:[%s12433_s3 + $0x238] sm:$0xff] }
  0x83   :  { %10340 = vmatpush3.bf16.msra.mxu0 %v10339_v25  ;;  %9509 = vmatprep.mubr.msk.f32.mxu0 %vm10790_vm4, %v10789_v22  ;;  %v10372_v25 = vpack.c.bf16 %v188_v21, %v187_v20  ;;  %v10429_v20 = vpack.c.bf16 %v8802_v17, %v8801_v16  ;;  %v10432_v27 = vpack.c.bf16 %v8804_v24, %v8803_v23 }
  0x84   :  { %10341 = vmatprep.subr.bf16.mxu0 %v10788_v8  ;;  %v309_v24 = vcombine.high %v8829_v2, %v8829_v2 }
  0x87   :  { %10343 = vmatpush3.bf16.msra.mxu0 %v10342_v32  ;;  %v10399_v32 = vpack.c.bf16 %v8782_v30, %v8781_v29  ;;  %v8809_v29 = vld [vmem:[%s12433_s3 + $0x260] sm:$0xff]  ;;  %v8810_v30 = vld [vmem:[%s12433_s3 + $0x268] sm:$0xff] }
  0x88   :  { %10350 = vmatprep.subr.bf16.mxu0 %v10788_v8 }
 0x155   :  { %v9478_v38 = vpop.f32.mrb[0].mxu0 }
 0x156   :  { %v141_v39 = vpop.f32.mrb[1].mxu0  ;;  %v10967_v57 = vadd.f32 %v9478_v38, %v63_v53  ;;  %v10402_v38 = vpack.c.bf16 %v8784_v36, %v8783_v35  ;;  %v8786_v53 = vld [vmem:[%s12433_s3 + $0x1a8] sm:$0xff]  ;;  %v8811_v35 = vld [vmem:[%s12433_s3 + $0x270] sm:$0xff]  ;;  %v8812_v36 = vld [vmem:[%s12433_s3 + $0x278] sm:$0xff] }
 0x157   :  { %v10928_v43 = vadd.f32 %v141_v39, %v62_v37  ;;  %v10384_v37 = vpack.c.bf16 %v8772_v34, %v8771_v33  ;;  %v8777_v39 = vld [vmem:[%s12433_s3 + $0x160] sm:$0xff]  ;;  %v10405_v56 = vpack.c.bf16 %v8786_v53, %v8785_v52  ;;  %v10441_v33 = vpack.c.bf16 %v8810_v30, %v8809_v29  ;;  %v8828_v52 = vld [vmem:[%s12433_s3 + $0x2f8] sm:$0xff] }
 0x159   :  { %9488 = vmatmul.mubr.msk.f32.vlgmr.msra.gmra.mrb[0].mxu1 %vm450_vm5, %v10928_v43  ;;  %9510 = vmatmul.mubr.msk.f32.vlgmr.msra.gmra.mrb[2].mxu0 %vm450_vm5, %v10928_v43 }
 0x15a   :  { %10334 = vmatpush3.bf16.msra.mxu1 %v10333_v40  ;;  %10352 = vmatpush3.bf16.msra.mxu0 %v10351_v41  ;;  %v8778_v40 = vld [vmem:[%s12433_s3 + $0x168] sm:$0xff]  ;;  %v8789_v41 = vld [vmem:[%s12433_s3 + $0x1c0] sm:$0xff] }
 0x15b   :  { %10335 = vmatprep.subr.bf16.mxu1 %v10788_v8  ;;  %10353 = vmatprep.subr.bf16.mxu0 %v10788_v8  ;;  %v10393_v44 = vpack.c.bf16 %v8778_v40, %v8777_v39  ;;  %v10411_v45 = vpack.c.bf16 %v8790_v42, %v8789_v41  ;;  %v10444_v39 = vpack.c.bf16 %v8812_v36, %v8811_v35  ;;  %v8817_v41 = vld [vmem:[%s12433_s3 + $0x2a0] sm:$0xff]  ;;  %v8818_v42 = vld [vmem:[%s12433_s3 + $0x2a8] sm:$0xff] }
 0x15c   :  { %9498 = vmatprep.mubr.msk.f32.mxu1 %vm10790_vm4, %v10789_v22  ;;  %9531 = vmatprep.mubr.msk.f32.mxu0 %vm10790_vm4, %v10789_v22 }
 0x15e   :  { %10337 = vmatpush3.bf16.msra.mxu1 %v10336_v47  ;;  %10355 = vmatpush3.bf16.msra.mxu0 %v10354_v48  ;;  %v8780_v47 = vld [vmem:[%s12433_s3 + $0x178] sm:$0xff]  ;;  %v8791_v48 = vld [vmem:[%s12433_s3 + $0x1d0] sm:$0xff] }
 0x15f   :  { %10344 = vmatprep.subr.bf16.mxu1 %v10788_v8  ;;  %10362 = vmatprep.subr.bf16.mxu0 %v10788_v8  ;;  %v10396_v50 = vpack.c.bf16 %v8780_v47, %v8779_v46  ;;  %v10414_v51 = vpack.c.bf16 %v8792_v49, %v8791_v48  ;;  %v8820_v46 = vld [vmem:[%s12433_s3 + $0x2b8] sm:$0xff]  ;;  %v8825_v48 = vld [vmem:[%s12433_s3 + $0x2e0] sm:$0xff]  ;;  %v8826_v49 = vld [vmem:[%s12433_s3 + $0x2e8] sm:$0xff] }
 0x161   :  { %9499 = vmatmul.mubr.msk.f32.vlgmr.msra.gmra.mrb[2].mxu1 %vm450_vm5, %v10928_v43  ;;  %9532 = vmatmul.mubr.msk.f32.vlgmr.msra.gmra.mrb[4].mxu0 %vm450_vm5, %v10967_v57 }
 0x162   :  { %10346 = vmatpush3.bf16.msra.mxu1 %v10345_v54  ;;  %10364 = vmatpush3.bf16.msra.mxu0 %v10363_v55  ;;  %v8797_v54 = vld [vmem:[%s12433_s3 + $0x200] sm:$0xff]  ;;  %v8798_v55 = vld [vmem:[%s12433_s3 + $0x208] sm:$0xff] }
 0x163   :  { %10347 = vmatprep.subr.bf16.mxu1 %v10788_v8  ;;  %10365 = vmatprep.subr.bf16.mxu0 %v10788_v8  ;;  %v10423_v58 = vpack.c.bf16 %v8798_v55, %v8797_v54 }
 0x164   :  { %9520 = vmatprep.mubr.msk.f32.mxu1 %vm10790_vm4, %v10789_v22  ;;  %9553 = vmatprep.mubr.msk.f32.mxu0 %vm10790_vm4, %v10789_v22 }
 0x166   :  { %10349 = vmatpush3.bf16.msra.mxu1 %v10348_v61  ;;  %10367 = vmatpush3.bf16.msra.mxu0 %v10366_v62  ;;  %v8799_v61 = vld [vmem:[%s12433_s3 + $0x210] sm:$0xff]  ;;  %v8800_v62 = vld [vmem:[%s12433_s3 + $0x218] sm:$0xff] }
 0x167   :  { %10356 = vmatprep.subr.bf16.mxu1 %v10788_v8  ;;  %10374 = vmatprep.subr.bf16.mxu0 %v10788_v8  ;;  %v10426_v0 = vpack.c.bf16 %v8800_v62, %v8799_v61  ;;  %v260_v61 = vunpack.c.0.s8 %v259_v60 }
 0x169   :  { %9521 = vmatmul.mubr.msk.f32.vlgmr.msra.gmra.mrb[4].mxu1 %vm450_vm5, %v10928_v43  ;;  %9554 = vmatmul.mubr.msk.f32.vlgmr.msra.gmra.mrb[6].mxu0 %vm450_vm5, %v10967_v57 }
 0x16a   :  { %10358 = vmatpush3.bf16.msra.mxu1 %v10357_v3  ;;  %10376 = vmatpush3.bf16.msra.mxu0 %v10375_v4  ;;  %v8805_v3 = vld [vmem:[%s12433_s3 + $0x240] sm:$0xff]  ;;  %v8806_v4 = vld [vmem:[%s12433_s3 + $0x248] sm:$0xff] }
 0x16b   :  { %10359 = vmatprep.subr.bf16.mxu1 %v10788_v8  ;;  %10377 = vmatprep.subr.bf16.mxu0 %v10788_v8  ;;  %v10435_v7 = vpack.c.bf16 %v8806_v4, %v8805_v3  ;;  %v11332_v3 = vsub.s32 %v260_v61, %v10861_v6 }
 0x16c   :  { %9542 = vmatprep.mubr.msk.f32.mxu1 %vm10790_vm4, %v10789_v22  ;;  %9575 = vmatprep.mubr.msk.f32.mxu0 %vm10790_vm4, %v10789_v22 }
 0x16d   :  { %v316_v4 = vrot.slane %v8829_v2, %v11332_v3  ;;  %v323_v30 = vrot.slane %v309_v24, %v11332_v3 }
 0x16e   :  { %10361 = vmatpush3.bf16.msra.mxu1 %v10360_v11  ;;  %10379 = vmatpush3.bf16.msra.mxu0 %v10378_v12  ;;  %v8807_v11 = vld [vmem:[%s12433_s3 + $0x250] sm:$0xff]  ;;  %v8808_v12 = vld [vmem:[%s12433_s3 + $0x258] sm:$0xff] }
 0x16f   :  { %10368 = vmatprep.subr.bf16.mxu1 %v10788_v8  ;;  %10386 = vmatprep.subr.bf16.mxu0 %v10788_v8  ;;  %v10438_v15 = vpack.c.bf16 %v8808_v12, %v8807_v11  ;;  %v332_v12 = vrot.slane %v316_v4, %v11332_v3  ;;  %v324_v29 = vcombine.high %v316_v4, %v316_v4 }
 0x170   :  { %v325_v4 = vcombine.high %v323_v30, %v323_v30 }
 0x171   :  { %9543 = vmatmul.mubr.msk.f32.vlgmr.msra.gmra.mrb[6].mxu1 %vm450_vm5, %v10967_v57  ;;  %9576 = vmatmul.mubr.msk.f32.vlgmr.msra.gmra.mrb[8].mxu0 %vm450_vm5, %v10928_v43  ;;  %v354_v23 = vcombine.high %v332_v12, %v332_v12 }
 0x172   :  { %10370 = vmatpush3.bf16.msra.mxu1 %v10369_v18  ;;  %10388 = vmatpush3.bf16.msra.mxu0 %v10387_v19  ;;  %v8813_v18 = vld [vmem:[%s12433_s3 + $0x280] sm:$0xff]  ;;  %v8814_v19 = vld [vmem:[%s12433_s3 + $0x288] sm:$0xff] }
 0x173   :  { %10371 = vmatprep.subr.bf16.mxu1 %v10788_v8  ;;  %10389 = vmatprep.subr.bf16.mxu0 %v10788_v8  ;;  %v10447_v21 = vpack.c.bf16 %v8814_v19, %v8813_v18 }
 0x174   :  { %9564 = vmatprep.mubr.msk.f32.mxu1 %vm10790_vm4, %v10789_v22  ;;  %9597 = vmatprep.mubr.msk.f32.mxu0 %vm10790_vm4, %v10789_v22 }
 0x176   :  { %10373 = vmatpush3.bf16.msra.mxu1 %v10372_v25  ;;  %10391 = vmatpush3.bf16.msra.mxu0 %v10390_v26  ;;  %v8815_v25 = vld [vmem:[%s12433_s3 + $0x290] sm:$0xff]  ;;  %v8816_v26 = vld [vmem:[%s12433_s3 + $0x298] sm:$0xff] }
 0x177   :  { %10380 = vmatprep.subr.bf16.mxu1 %v10788_v8  ;;  %10398 = vmatprep.subr.bf16.mxu0 %v10788_v8  ;;  %v10450_v28 = vpack.c.bf16 %v8816_v26, %v8815_v25 }
 0x179   :  { %9565 = vmatmul.mubr.msk.f32.vlgmr.msra.gmra.mrb[8].mxu1 %vm450_vm5, %v10967_v57  ;;  %9598 = vmatmul.mubr.msk.f32.vlgmr.msra.gmra.mrb[10].mxu0 %vm450_vm5, %v10928_v43 }
 0x17a   :  { %10382 = vmatpush3.bf16.msra.mxu1 %v10381_v31  ;;  %10400 = vmatpush3.bf16.msra.mxu0 %v10399_v32  ;;  %v8821_v31 = vld [vmem:[%s12433_s3 + $0x2c0] sm:$0xff]  ;;  %v8822_v32 = vld [vmem:[%s12433_s3 + $0x2c8] sm:$0xff] }
 0x17b   :  { %10383 = vmatprep.subr.bf16.mxu1 %v10788_v8  ;;  %10401 = vmatprep.subr.bf16.mxu0 %v10788_v8  ;;  %v10459_v34 = vpack.c.bf16 %v8822_v32, %v8821_v31 }
 0x17c   :  { %9586 = vmatprep.mubr.msk.f32.mxu1 %vm10790_vm4, %v10789_v22  ;;  %9619 = vmatprep.mubr.msk.f32.mxu0 %vm10790_vm4, %v10789_v22 }
 0x17e   :  { %10385 = vmatpush3.bf16.msra.mxu1 %v10384_v37  ;;  %10403 = vmatpush3.bf16.msra.mxu0 %v10402_v38  ;;  %v8823_v37 = vld [vmem:[%s12433_s3 + $0x2d0] sm:$0xff]  ;;  %v8824_v38 = vld [vmem:[%s12433_s3 + $0x2d8] sm:$0xff] }
 0x17f   :  { %10392 = vmatprep.subr.bf16.mxu1 %v10788_v8  ;;  %10410 = vmatprep.subr.bf16.mxu0 %v10788_v8  ;;  %v10462_v40 = vpack.c.bf16 %v8824_v38, %v8823_v37 }
 0x181   :  { %9587 = vmatmul.mubr.msk.f32.vlgmr.msra.gmra.mrb[10].mxu1 %vm450_vm5, %v10928_v43  ;;  %9620 = vmatmul.mubr.msk.f32.vlgmr.msra.gmra.mrb[12].mxu0 %vm450_vm5, %v10967_v57 }
 0x182   :  { %10394 = vmatpush3.bf16.msra.mxu1 %v10393_v44  ;;  %10412 = vmatpush3.bf16.msra.mxu0 %v10411_v45  ;;  %v10453_v44 = vpack.c.bf16 %v8818_v42, %v8817_v41  ;;  %v8819_v45 = vld [vmem:[%s12433_s3 + $0x2b0] sm:$0xff] }
 0x183   :  { %10395 = vmatprep.subr.bf16.mxu1 %v10788_v8  ;;  %10413 = vmatprep.subr.bf16.mxu0 %v10788_v8  ;;  %v10456_v47 = vpack.c.bf16 %v8820_v46, %v8819_v45 }
 0x184   :  { %9608 = vmatprep.mubr.msk.f32.mxu1 %vm10790_vm4, %v10789_v22  ;;  %9641 = vmatprep.mubr.msk.f32.mxu0 %vm10790_vm4, %v10789_v22 }
 0x186   :  { %10397 = vmatpush3.bf16.msra.mxu1 %v10396_v50  ;;  %10415 = vmatpush3.bf16.msra.mxu0 %v10414_v51  ;;  %v10465_v50 = vpack.c.bf16 %v8826_v49, %v8825_v48  ;;  %v8827_v51 = vld [vmem:[%s12433_s3 + $0x2f0] sm:$0xff] }
 0x187   :  { %10404 = vmatprep.subr.bf16.mxu1 %v10788_v8  ;;  %10422 = vmatprep.subr.bf16.mxu0 %v10788_v8  ;;  %v10468_v53 = vpack.c.bf16 %v8828_v52, %v8827_v51 }
 0x189   :  { %9609 = vmatmul.mubr.msk.f32.vlgmr.msra.gmra.mrb[12].mxu1 %vm450_vm5, %v10928_v43  ;;  %9642 = vmatmul.mubr.msk.f32.vlgmr.msra.gmra.mrb[14].mxu0 %vm450_vm5, %v10967_v57 }
 0x18a   :  { %10406 = vmatpush3.bf16.msra.mxu1 %v10405_v56  ;;  %10424 = vmatpush3.bf16.msra.mxu0 %v10423_v58 }
 0x18b   :  { %10407 = vmatprep.subr.bf16.mxu1 %v10788_v8  ;;  %10425 = vmatprep.subr.bf16.mxu0 %v10788_v8 }
 0x18c   :  { %9630 = vmatprep.mubr.msk.f32.mxu1 %vm10790_vm4, %v10789_v22  ;;  %9663 = vmatprep.mubr.msk.f32.mxu0 %vm10790_vm4, %v10789_v22 }
 0x18e   :  { %10409 = vmatpush3.bf16.msra.mxu1 %v10408_v63  ;;  %10427 = vmatpush3.bf16.msra.mxu0 %v10426_v0 }
 0x18f   :  { %10416 = vmatprep.subr.bf16.mxu1 %v10788_v8  ;;  %10434 = vmatprep.subr.bf16.mxu0 %v10788_v8 }
 0x191   :  { %9631 = vmatmul.mubr.msk.f32.vlgmr.msra.gmra.mrb[14].mxu1 %vm450_vm5, %v10967_v57  ;;  %9664 = vmatmul.mubr.msk.f32.vlgmr.msra.gmra.mrb[16].mxu0 %vm450_vm5, %v10928_v43 }
 0x192   :  { %10418 = vmatpush3.bf16.msra.mxu1 %v10417_v5  ;;  %10436 = vmatpush3.bf16.msra.mxu0 %v10435_v7  ;;  %v255_v5 = vld [vmem:[%s12434_s4] sm:$0xff] }
 0x193   :  { %10419 = vmatprep.subr.bf16.mxu1 %v10788_v8  ;;  %10437 = vmatprep.subr.bf16.mxu0 %v10788_v8 }
 0x194   :  { %9652 = vmatprep.mubr.msk.f32.mxu1 %vm10790_vm4, %v10789_v22  ;;  %9685 = vmatprep.mubr.msk.f32.mxu0 %vm10790_vm4, %v10789_v22 }
 0x196   :  { %10421 = vmatpush3.bf16.msra.mxu1 %v10420_v14  ;;  %10439 = vmatpush3.bf16.msra.mxu0 %v10438_v15  ;;  %v264_v14 = vrot.slane %v255_v5, %v11332_v3  ;;  %v1020_v15 = vrot.slane %v332_v12, %v10874_v13 }
 0x197   :  { %10428 = vmatprep.subr.bf16.mxu1 %v10788_v8  ;;  %10446 = vmatprep.subr.bf16.mxu0 %v10788_v8 }
 0x198   :  { %v280_v6 = vrot.slane %v264_v14, %v11332_v3  ;;  %v272_v32 = vcombine.high %v264_v14, %v264_v14 }
 0x199   :  { %9653 = vmatmul.mubr.msk.f32.vlgmr.msra.gmra.mrb[16].mxu1 %vm450_vm5, %v10967_v57  ;;  %9686 = vmatmul.mubr.msk.f32.vlgmr.msra.gmra.mrb[18].mxu0 %vm450_vm5, %v10928_v43 }
 0x19a   :  { %10430 = vmatpush3.bf16.msra.mxu1 %v10429_v20  ;;  %10448 = vmatpush3.bf16.msra.mxu0 %v10447_v21  ;;  %v413_v16 = vrot.slane %v280_v6, %v10874_v13  ;;  %v302_v26 = vcombine.high %v280_v6, %v280_v6  ;;  %v294_v42 = vrot.slane %v272_v32, %v11332_v3 }
 0x19b   :  { %10431 = vmatprep.subr.bf16.mxu1 %v10788_v8  ;;  %10449 = vmatprep.subr.bf16.mxu0 %v10788_v8 }
 0x19c   :  { %9674 = vmatprep.mubr.msk.f32.mxu1 %vm10790_vm4, %v10789_v22  ;;  %9707 = vmatprep.mubr.msk.f32.mxu0 %vm10790_vm4, %v10789_v22  ;;  %v421_v31 = vrot.slane %v302_v26, %v10874_v13  ;;  %v304_v59 = vcombine.high %v294_v42, %v294_v42 }
 0x19e   :  { %10433 = vmatpush3.bf16.msra.mxu1 %v10432_v27  ;;  %10451 = vmatpush3.bf16.msra.mxu0 %v10450_v28  ;;  %v257_v27 = vcombine.high %v255_v5, %v255_v5  ;;  %v1028_v28 = vrot.slane %v354_v23, %v10874_v13 }
 0x19f   :  { %10440 = vmatprep.subr.bf16.mxu1 %v10788_v8  ;;  %10458 = vmatprep.subr.bf16.mxu0 %v10788_v8 }
 0x1a1   :  { %9675 = vmatmul.mubr.msk.f32.vlgmr.msra.gmra.mrb[18].mxu1 %vm450_vm5, %v10928_v43  ;;  %9708 = vmatmul.mubr.msk.f32.vlgmr.msra.gmra.mrb[20].mxu0 %vm450_vm5, %v10967_v57 }
 0x1a2   :  { %10442 = vmatpush3.bf16.msra.mxu1 %v10441_v33  ;;  %10460 = vmatpush3.bf16.msra.mxu0 %v10459_v34  ;;  %v271_v33 = vrot.slane %v257_v27, %v11332_v3 }
 0x1a3   :  { %10443 = vmatprep.subr.bf16.mxu1 %v10788_v8  ;;  %10461 = vmatprep.subr.bf16.mxu0 %v10788_v8 }
 0x1a4   :  { %9696 = vmatprep.mubr.msk.f32.mxu1 %vm10790_vm4, %v10789_v22  ;;  %9729 = vmatprep.mubr.msk.f32.mxu0 %vm10790_vm4, %v10789_v22 }
 0x1a6   :  { %10445 = vmatpush3.bf16.msra.mxu1 %v10444_v39  ;;  %10463 = vmatpush3.bf16.msra.mxu0 %v10462_v40  ;;  %v346_v39 = vrot.slane %v324_v29, %v11332_v3  ;;  %v339_v40 = vrot.slane %v323_v30, %v11332_v3 }
 0x1a7   :  { %10452 = vmatprep.subr.bf16.mxu1 %v10788_v8  ;;  %9743 = vmatprep.subr.mxu0 %v10789_v22 }
 0x1a8   :  { %v1024_v45 = vrot.slane %v346_v39, %v10874_v13  ;;  %v1036_v46 = vrot.slane %v339_v40, %v10874_v13 }
 0x1a9   :  { %9697 = vmatmul.mubr.msk.f32.vlgmr.msra.gmra.mrb[20].mxu1 %vm450_vm5, %v10928_v43  ;;  %9730 = vmatmul.mubr.msk.f32.vlgmr.msra.gmra.mrb[22].mxu0 %vm450_vm5, %v10967_v57 }
 0x1aa   :  { %10454 = vmatpush3.bf16.msra.mxu1 %v10453_v44  ;;  %9718 = vmatprep.mubr.msk.f32.mxu1 %vm10790_vm4, %v10789_v22  ;;  %v287_v44 = vrot.slane %v271_v33, %v11332_v3 }
 0x1ab   :  { %10455 = vmatprep.subr.bf16.mxu1 %v10788_v8  ;;  %9745 = vmatprep.mubr.msk.f32.mxu0 %vm10790_vm4, %v10789_v22 }
 0x1ac   :  { %v429_v48 = vrot.slane %v287_v44, %v10874_v13 }
 0x1ae   :  { %10457 = vmatpush3.bf16.msra.mxu1 %v10456_v47  ;;  %v417_v47 = vrot.slane %v294_v42, %v10874_v13 }
 0x1af   :  { %10464 = vmatprep.subr.bf16.mxu1 %v10788_v8 }
 0x1b1   :  { %9719 = vmatmul.mubr.msk.f32.vlgmr.msra.gmra.mrb[22].mxu1 %vm450_vm5, %v10967_v57 }
 0x1b2   :  { %10466 = vmatpush3.bf16.msra.mxu1 %v10465_v50  ;;  %9740 = vmatprep.mubr.msk.f32.mxu1 %vm10790_vm4, %v10789_v22 }
 0x1b3   :  { %10467 = vmatprep.subr.bf16.mxu1 %v10788_v8 }
 0x1b6   :  { %10469 = vmatpush3.bf16.msra.mxu1 %v10468_v53 }
 0x1b7   :  { %9753 = vmatprep.subr.mxu1 %v10789_v22 }
 0x1b9   :  { %9741 = vmatmul.mubr.msk.f32.vlgmr.msra.gmra.mrb[24].mxu1 %vm450_vm5, %v10967_v57 }
 0x1ba   :  { %9755 = vmatprep.mubr.msk.f32.mxu1 %vm10790_vm4, %v10789_v22 }
 0x22c   :  { %v520_v54 = vpop.f32.mrb[0].mxu1  ;;  %v660_v55 = vpop.f32.mrb[2].mxu0 }
 0x22d   :  { %v9489_v56 = vpop.f32.mrb[1].mxu1  ;;  %v9511_v58 = vpop.f32.mrb[3].mxu0  ;;  %v521_v25 = vadd.f32 %v520_v54, %v413_v16  ;;  %v661_v41 = vadd.f32 %v660_v55, %v421_v31  ;;  %v356_v55 = vcombine.high %v346_v39, %v346_v39 }
 0x22e   :  { %v355_v56 = vcombine.high %v339_v40, %v339_v40  ;;  %v8830_v58 = vld [vmem:[%s12434_s4 + $0x10] sm:$0xff] }
 0x22f   :  { %v368_v5 = vrot.slane %v8830_v58, %v11332_v3 }
 0x230   :  { %v1044_v2 = vrot.slane %v355_v56, %v10874_v13 }
 0x231   :  { %v376_v39 = vcombine.high %v368_v5, %v368_v5 }
 0x234   :  { %v11324_v62 = vpop.f32.mrb[2].mxu1  ;;  %v11326_v63 = vpop.f32.mrb[4].mxu0 }
 0x235   :  { %v9500_v0 = vpop.f32.mrb[3].mxu1  ;;  %v9533_v1 = vpop.f32.mrb[5].mxu0  ;;  %v591_v60 = vadd.f32 %v11324_v62, %v417_v47  ;;  %v804_v61 = vadd.f32 %v11326_v63, %v429_v48  ;;  %v425_v62 = vrot.slane %v304_v59, %v10874_v13  ;;  %v398_v48 = vrot.slane %v376_v39, %v11332_v3 }
 0x236   :  { %v303_v0 = vcombine.high %v287_v44, %v287_v44  ;;  %v1032_v1 = vrot.slane %v356_v55, %v10874_v13 }
 0x238   :  { %v437_v63 = vrot.slane %v303_v0, %v10874_v13 }
 0x23c   :  { %v11338_v7 = vpop.f32.mrb[4].mxu1  ;;  %v11340_v9 = vpop.f32.mrb[6].mxu0 }
 0x23d   :  { %v9522_v10 = vpop.f32.mrb[5].mxu1  ;;  %v9555_v11 = vpop.f32.mrb[7].mxu0 }
 0x23e   :  { %v273_v10 = vcombine.high %v271_v33, %v271_v33  ;;  %v361_v33 = vcombine.high %v8830_v58, %v8830_v58 }
 0x240   :  { %v301_v23 = vrot.slane %v273_v10, %v11332_v3  ;;  %v375_v40 = vrot.slane %v361_v33, %v11332_v3 }
 0x244   :  { %v11347_v17 = vpop.f32.mrb[6].mxu1  ;;  %v1123_v18 = vpop.f32.mrb[8].mxu0 }
 0x245   :  { %v1124_v19 = vadd.f32 %v1123_v18, %v1020_v15  ;;  %v9544_v20 = vpop.f32.mrb[7].mxu1  ;;  %v9577_v21 = vpop.f32.mrb[9].mxu0  ;;  %v353_v18 = vrot.slane %v325_v4, %v11332_v3 }
 0x246   :  { %v731_v20 = vadd.f32 %v11338_v7, %v425_v62  ;;  %v944_v21 = vadd.f32 %v11340_v9, %v437_v63  ;;  %v433_v7 = vrot.slane %v301_v23, %v10874_v13 }
 0x247   :  { %9744 = vmatpush3.xpose.msk.msra.mxu0 %vm2217_vm6, %v1124_v19  ;;  %v384_v19 = vrot.slane %v368_v5, %v11332_v3  ;;  %v1040_v24 = vrot.slane %v353_v18, %v10874_v13  ;;  %v357_v27 = vcombine.high %v353_v18, %v353_v18 }
 0x248   :  { %9748 = vmatprep.subr.mxu0 %v10789_v22 }
 0x249   :  { %v406_v32 = vcombine.high %v384_v19, %v384_v19 }
 0x24a   :  { %9746 = vmatmul.mubr.msk.f32.vlgmr.msra.gmra.mrb[24].mxu0 %vm2217_vm6, %v521_v25  ;;  %v1620_v25 = vrot.slane %v384_v19, %v10874_v13 }
 0x24b   :  { %9750 = vmatprep.mubr.msk.f32.mxu0 %vm10790_vm4, %v10789_v22 }
 0x24c   :  { %v11358_v34 = vpop.f32.mrb[8].mxu1  ;;  %v1263_v35 = vpop.f32.mrb[10].mxu0 }
 0x24d   :  { %v1264_v36 = vadd.f32 %v1263_v35, %v1028_v28  ;;  %v9566_v37 = vpop.f32.mrb[9].mxu1  ;;  %v9599_v38 = vpop.f32.mrb[11].mxu0  ;;  %v874_v35 = vadd.f32 %v11347_v17, %v433_v7 }
 0x24e   :  { %v1048_v37 = vrot.slane %v357_v27, %v10874_v13  ;;  %v1628_v38 = vrot.slane %v406_v32, %v10874_v13 }
 0x24f   :  { %9754 = vmatpush3.xpose.msk.msra.mxu1 %vm2217_vm6, %v1264_v36  ;;  %v305_v36 = vcombine.high %v301_v23, %v301_v23 }
 0x250   :  { %9763 = vmatprep.subr.mxu1 %v10789_v22 }
 0x252   :  { %9756 = vmatmul.mubr.msk.f32.vlgmr.msra.gmra.mrb[26].mxu1 %vm2217_vm6, %v661_v41  ;;  %v441_v41 = vrot.slane %v305_v36, %v10874_v13 }
 0x253   :  { %9765 = vmatprep.mubr.msk.f32.mxu1 %vm10790_vm4, %v10789_v22 }
 0x254   :  { %v1193_v49 = vpop.f32.mrb[10].mxu1  ;;  %v1403_v50 = vpop.f32.mrb[12].mxu0 }
 0x255   :  { %v1194_v51 = vadd.f32 %v1193_v49, %v1024_v45  ;;  %v1404_v52 = vadd.f32 %v1403_v50, %v1036_v46  ;;  %v9588_v53 = vpop.f32.mrb[11].mxu1  ;;  %v9621_v54 = vpop.f32.mrb[13].mxu0  ;;  %v391_v49 = vrot.slane %v375_v40, %v11332_v3  ;;  %v1014_v50 = vadd.f32 %v11358_v34, %v441_v41 }
 0x257   :  { %9749 = vmatpush3.xpose.msk.msra.mxu0 %vm2217_vm6, %v1194_v51  ;;  %9764 = vmatpush3.xpose.msk.msra.mxu1 %vm2217_vm6, %v1404_v52  ;;  %v1624_v51 = vrot.slane %v398_v48, %v10874_v13  ;;  %v1636_v52 = vrot.slane %v391_v49, %v10874_v13  ;;  %v407_v34 = vcombine.high %v391_v49, %v391_v49 }
 0x258   :  { %9758 = vmatprep.subr.mxu0 %v10789_v22  ;;  %9773 = vmatprep.subr.mxu1 %v10789_v22 }
 0x259   :  { %v1644_v0 = vrot.slane %v407_v34, %v10874_v13 }
 0x25a   :  { %9751 = vmatmul.mubr.msk.f32.vlgmr.msra.gmra.mrb[26].mxu0 %vm2217_vm6, %v591_v60  ;;  %9766 = vmatmul.mubr.msk.f32.vlgmr.msra.gmra.mrb[28].mxu1 %vm2217_vm6, %v804_v61  ;;  %v408_v60 = vcombine.high %v398_v48, %v398_v48 }
 0x25b   :  { %9760 = vmatprep.mubr.msk.f32.mxu0 %vm10790_vm4, %v10789_v22  ;;  %9775 = vmatprep.mubr.msk.f32.mxu1 %vm10790_vm4, %v10789_v22 }
 0x25c   :  { %v1333_v11 = vpop.f32.mrb[12].mxu1  ;;  %v1543_v12 = vpop.f32.mrb[14].mxu0  ;;  %v1632_v61 = vrot.slane %v408_v60, %v10874_v13 }
 0x25d   :  { %v1334_v14 = vadd.f32 %v1333_v11, %v1032_v1  ;;  %v1544_v15 = vadd.f32 %v1543_v12, %v1044_v2  ;;  %v9610_v6 = vpop.f32.mrb[13].mxu1  ;;  %v9643_v16 = vpop.f32.mrb[15].mxu0  ;;  %v377_v1 = vcombine.high %v375_v40, %v375_v40 }
 0x25f   :  { %9759 = vmatpush3.xpose.msk.msra.mxu0 %vm2217_vm6, %v1334_v14  ;;  %9774 = vmatpush3.xpose.msk.msra.mxu1 %vm2217_vm6, %v1544_v15  ;;  %v405_v11 = vrot.slane %v377_v1, %v11332_v3 }
 0x260   :  { %9768 = vmatprep.subr.mxu0 %v10789_v22  ;;  %9783 = vmatprep.subr.mxu1 %v10789_v22 }
 0x261   :  { %v1640_v12 = vrot.slane %v405_v11, %v10874_v13  ;;  %v409_v16 = vcombine.high %v405_v11, %v405_v11 }
 0x262   :  { %9761 = vmatmul.mubr.msk.f32.vlgmr.msra.gmra.mrb[28].mxu0 %vm2217_vm6, %v731_v20  ;;  %9776 = vmatmul.mubr.msk.f32.vlgmr.msra.gmra.mrb[30].mxu1 %vm2217_vm6, %v944_v21 }
 0x263   :  { %9770 = vmatprep.mubr.msk.f32.mxu0 %vm10790_vm4, %v10789_v22  ;;  %9785 = vmatprep.mubr.msk.f32.mxu1 %vm10790_vm4, %v10789_v22  ;;  %v1648_v18 = vrot.slane %v409_v16, %v10874_v13 }
 0x264   :  { %v1473_v9 = vpop.f32.mrb[14].mxu1  ;;  %v1723_v26 = vpop.f32.mrb[16].mxu0 }
 0x265   :  { %v1474_v28 = vadd.f32 %v1473_v9, %v1040_v24  ;;  %v1724_v29 = vadd.f32 %v1723_v26, %v1620_v25  ;;  %v9632_v30 = vpop.f32.mrb[15].mxu1  ;;  %v9665_v31 = vpop.f32.mrb[17].mxu0 }
 0x267   :  { %9769 = vmatpush3.xpose.msk.msra.mxu0 %vm2217_vm6, %v1474_v28  ;;  %9784 = vmatpush3.msra.mxu1 %v1724_v29 }
 0x268   :  { %9778 = vmatprep.subr.mxu0 %v10789_v22  ;;  %9793 = vmatprep.subr.mxu1 %v10789_v22 }
 0x26a   :  { %9771 = vmatmul.mubr.msk.f32.vlgmr.msra.gmra.mrb[30].mxu0 %vm2217_vm6, %v874_v35 }
 0x26b   :  { %9780 = vmatprep.mubr.msk.f32.mxu0 %vm10790_vm4, %v10789_v22 }
 0x26c   :  { %v1613_v17 = vpop.f32.mrb[16].mxu1  ;;  %v1863_v42 = vpop.f32.mrb[18].mxu0 }
 0x26d   :  { %v1614_v44 = vadd.f32 %v1613_v17, %v1048_v37  ;;  %v11422_v45 = vadd.f32 %v1863_v42, %v1628_v38  ;;  %v9654_v46 = vpop.f32.mrb[17].mxu1  ;;  %v9687_v47 = vpop.f32.mrb[19].mxu0 }
 0x26f   :  { %9779 = vmatpush3.xpose.msk.msra.mxu0 %vm2217_vm6, %v1614_v44 }
 0x270   :  { %9788 = vmatprep.subr.mxu0 %v10789_v22 }
 0x272   :  { %9781 = vmatmul.mubr.msk.f32.vlgmr.msra.gmra.mrb[32].mxu0 %vm2217_vm6, %v1014_v50 }
 0x273   :  { %9790 = vmatprep.mubr.msk.f32.mxu0 %vm10790_vm4, %v10789_v22 }
 0x274   :  { %v1793_v53 = vpop.f32.mrb[18].mxu1  ;;  %v2003_v54 = vpop.f32.mrb[20].mxu0 }
 0x275   :  { %v1794_v55 = vadd.f32 %v1793_v53, %v1624_v51  ;;  %v11434_v56 = vadd.f32 %v2003_v54, %v1636_v52  ;;  %v9676_v58 = vpop.f32.mrb[19].mxu1  ;;  %v9709_v59 = vpop.f32.mrb[21].mxu0 }
 0x277   :  { %9789 = vmatpush3.msra.mxu0 %v1794_v55 }
 0x278   :  { %9798 = vmatprep.subr.mxu0 %v10789_v22 }
 0x27c   :  { %v1933_v2 = vpop.f32.mrb[20].mxu1  ;;  %v2143_v4 = vpop.f32.mrb[22].mxu0 }
 0x27d   :  { %v11439_v5 = vadd.f32 %v1933_v2, %v1632_v61  ;;  %v11441_v62 = vadd.f32 %v2143_v4, %v1644_v0  ;;  %v9698_v63 = vpop.f32.mrb[21].mxu1  ;;  %v9731_v10 = vpop.f32.mrb[23].mxu0 }
 0x284   :  { %v2073_v14 = vpop.f32.mrb[22].mxu1 }
 0x285   :  { %v11445_v15 = vadd.f32 %v2073_v14, %v1640_v12  ;;  %v9720_v6 = vpop.f32.mrb[23].mxu1 }
 0x28c   :  { %v2213_v19 = vpop.f32.mrb[24].mxu1 }
 0x28d   :  { %v11448_v20 = vadd.f32 %v2213_v19, %v1648_v18  ;;  %v9742_v21 = vpop.f32.mrb[25].mxu1 }
 0x31d   :  { %v2290_v23 = vpop.f32.mrb[24].mxu0 }
 0x31e   :  { %v2826_v24 = vmul.f32 0.35355338, %v2290_v23  ;;  %v9747_v25 = vpop.f32.mrb[25].mxu0 }
 0x320   :  { %v2834_v7 = vsel %vm2217_vm6, %v2826_v24, -inf }
 0x321   :  { %2835 = vmax.xlane.f32.xlu1 %v2834_v7 }
 0x325   :  { %v2442_v9 = vpop.f32.mrb[26].mxu1 }
 0x326   :  { %v2828_v26 = vmul.f32 0.35355338, %v2442_v9  ;;  %v9757_v27 = vpop.f32.mrb[27].mxu1 }
 0x328   :  { %v2840_v28 = vsel %vm2217_vm6, %v2828_v26, -inf }
 0x329   :  { %2841 = vmax.xlane.f32.xlu0 %v2840_v28 }
 0x32d   :  { %v2366_v29 = vpop.f32.mrb[26].mxu0  ;;  %v2594_v30 = vpop.f32.mrb[28].mxu1 }
 0x32e   :  { %v2827_v31 = vmul.f32 0.35355338, %v2366_v29  ;;  %v9752_v32 = vpop.f32.mrb[27].mxu0  ;;  %v9767_v33 = vpop.f32.mrb[29].mxu1  ;;  %v2830_v35 = vmul.f32 0.35355338, %v2594_v30 }
 0x330   :  { %v2837_v36 = vsel %vm2217_vm6, %v2827_v31, -inf  ;;  %v2846_v37 = vsel %vm2217_vm6, %v2830_v35, -inf }
 0x331   :  { %2838 = vmax.xlane.f32.xlu1 %v2837_v36 }
 0x335   :  { %v2518_v38 = vpop.f32.mrb[28].mxu0  ;;  %2847 = vmax.xlane.f32.xlu1 %v2846_v37  ;;  %v2746_v39 = vpop.f32.mrb[30].mxu1 }
 0x336   :  { %v2829_v40 = vmul.f32 0.35355338, %v2518_v38  ;;  %v9762_v41 = vpop.f32.mrb[29].mxu0  ;;  %v9777_v17 = vpop.f32.mrb[31].mxu1  ;;  %v2832_v42 = vmul.f32 0.35355338, %v2746_v39 }
 0x338   :  { %v2843_v44 = vsel %vm2217_vm6, %v2829_v40, -inf  ;;  %v2852_v46 = vsel %vm2217_vm6, %v2832_v42, -inf }
 0x339   :  { %2844 = vmax.xlane.f32.xlu1 %v2843_v44 }
 0x33d   :  { %v2670_v47 = vpop.f32.mrb[30].mxu0  ;;  %2853 = vmax.xlane.f32.xlu1 %v2852_v46 }
 0x33e   :  { %v2831_v48 = vmul.f32 0.35355338, %v2670_v47  ;;  %v9772_v49 = vpop.f32.mrb[31].mxu0 }
 0x340   :  { %v2849_v50 = vsel %vm2217_vm6, %v2831_v48, -inf }
 0x341   :  { %2850 = vmax.xlane.f32.xlu1 %v2849_v50 }
 0x345   :  { %v2822_v51 = vpop.f32.mrb[32].mxu0 }
 0x346   :  { %v2833_v52 = vmul.f32 0.35355338, %v2822_v51  ;;  %v9782_v53 = vpop.f32.mrb[33].mxu0 }
 0x348   :  { %v2855_v54 = vsel %vm2217_vm6, %v2833_v52, -inf }
 0x349   :  { %2856 = vmax.xlane.f32.xlu1 %v2855_v54 }
 0x3ae   :  { %v2836_v55 = vpop.xlane.xlu1 %2835 }
 0x3af   :  { %v2858_v58 = vsub.f32 %v2826_v24, %v2836_v55 }
 0x3b1   :  { %v2866_v59 = vmul.f32 1.442695, %v2858_v58 }
 0x3b3   :  { %10680 = vpow2.f32 %v2866_v59 }
 0x3b6   :  { %v2842_v60 = vpop.xlane.xlu0 %2841 }
 0x3b7   :  { %v2860_v61 = vsub.f32 %v2828_v26, %v2842_v60 }
 0x3b9   :  { %v2870_v4 = vmul.f32 1.442695, %v2860_v61 }
 0x3bd   :  { %v10681_v34 = vpop.eup %10680 }
 0x3be   :  { %v2839_v0 = vpop.xlane.xlu1 %2838  ;;  %v2882_v1 = vsel %vm2217_vm6, %v10681_v34, 0.0 }
 0x3bf   :  { %v2859_v2 = vsub.f32 %v2827_v31, %v2839_v0  ;;  %2883 = vadd.xlane.f32.xlu1 %v2882_v1  ;;  %v3506_v1 = vld [vmem:[%s12435_s5] sm:$0xff] }
 0x3c1   :  { %v2868_v63 = vmul.f32 1.442695, %v2859_v2  ;;  %v3508_v2 = vld [vmem:[%s12435_s5 + $0x10] sm:$0xff] }
 0x3c2   :  { %v2848_v10 = vpop.xlane.xlu1 %2847 }
 0x3c3   :  { %10682 = vpow2.f32 %v2868_v63  ;;  %v2862_v11 = vsub.f32 %v2830_v35, %v2848_v10  ;;  %v3509_v10 = vld [vmem:[%s12435_s5 + $0x18] sm:$0xff] }
 0x3c4   :  { %10684 = vpow2.f32 %v2870_v4 }
 0x3c5   :  { %v2874_v12 = vmul.f32 1.442695, %v2862_v11 }
 0x3c6   :  { %v2845_v14 = vpop.xlane.xlu1 %2844 }
 0x3c7   :  { %v2861_v6 = vsub.f32 %v2829_v40, %v2845_v14  ;;  %10686 = vpow2.f32 %v2874_v12  ;;  %v3510_v14 = vld [vmem:[%s12435_s5 + $0x20] sm:$0xff] }
 0x3c9   :  { %v2872_v16 = vmul.f32 1.442695, %v2861_v6 }
 0x3ca   :  { %v2854_v18 = vpop.xlane.xlu1 %2853 }
 0x3cb   :  { %10688 = vpow2.f32 %v2872_v16  ;;  %v2864_v19 = vsub.f32 %v2832_v42, %v2854_v18  ;;  %v3511_v18 = vld [vmem:[%s12435_s5 + $0x28] sm:$0xff] }
 0x3cd   :  { %v10683_v21 = vpop.eup %10682  ;;  %v2878_v23 = vmul.f32 1.442695, %v2864_v19 }
 0x3ce   :  { %v2851_v24 = vpop.xlane.xlu1 %2850  ;;  %v2885_v25 = vsel %vm2217_vm6, %v10683_v21, 0.0  ;;  %v10685_v7 = vpop.eup %10684 }
 0x3cf   :  { %10690 = vpow2.f32 %v2878_v23  ;;  %v2863_v9 = vsub.f32 %v2831_v48, %v2851_v24  ;;  %2886 = vadd.xlane.f32.xlu1 %v2885_v25  ;;  %v2888_v27 = vsel %vm2217_vm6, %v10685_v7, 0.0 }
 0x3d1   :  { %v2876_v26 = vmul.f32 1.442695, %v2863_v9  ;;  %v10687_v28 = vpop.eup %10686 }
 0x3d2   :  { %v2894_v32 = vsel %vm2217_vm6, %v10687_v28, 0.0 }
 0x3d3   :  { %10692 = vpow2.f32 %v2876_v26  ;;  %2889 = vadd.xlane.f32.xlu1 %v2888_v27  ;;  %v3513_v26 = vld [vmem:[%s12435_s5 + $0x38] sm:$0xff] }
 0x3d5   :  { %v10689_v29 = vpop.eup %10688 }
 0x3d6   :  { %v2857_v30 = vpop.xlane.xlu1 %2856  ;;  %v2891_v31 = vsel %vm2217_vm6, %v10689_v29, 0.0 }
 0x3d7   :  { %v2865_v33 = vsub.f32 %v2833_v52, %v2857_v30  ;;  %2892 = vadd.xlane.f32.xlu0 %v2891_v31  ;;  %2895 = vadd.xlane.f32.xlu1 %v2894_v32 }
 0x3d9   :  { %v10691_v35 = vpop.eup %10690  ;;  %v2880_v36 = vmul.f32 1.442695, %v2865_v33 }
 0x3da   :  { %v2900_v37 = vsel %vm2217_vm6, %v10691_v35, 0.0 }
 0x3db   :  { %10694 = vpow2.f32 %v2880_v36  ;;  %2901 = vadd.xlane.f32.xlu1 %v2900_v37 }
 0x3dd   :  { %v10693_v38 = vpop.eup %10692 }
 0x3de   :  { %v2897_v39 = vsel %vm2217_vm6, %v10693_v38, 0.0 }
 0x3df   :  { %2898 = vadd.xlane.f32.xlu0 %v2897_v39 }
 0x3e5   :  { %v10695_v40 = vpop.eup %10694 }
 0x3e6   :  { %v2903_v41 = vsel %vm2217_vm6, %v10695_v40, 0.0 }
 0x3e7   :  { %2904 = vadd.xlane.f32.xlu0 %v2903_v41 }
 0x44c   :  { %v2884_v17 = vpop.xlane.xlu1 %2883 }
 0x44d   :  { %10696 = vrcp.f32 %v2884_v17 }
 0x457   :  { %v10697_v42 = vpop.eup %10696 }
 0x458   :  { %v2914_v44 = vmul.f32 %v10697_v42, %v10681_v34 }
 0x45a   :  { %9786 = vmatmul.mubr.msk.f32.vlgmr.msra.gmra.mrb[32].mxu1 %vm2217_vm6, %v2914_v44  ;;  %v8887_v44 = vld [vmem:[%s12439_s9] ss:$0 sm:$0xff] }
 0x45b   :  { %9794 = vmatpush3.msra.mxu1 %v11422_v45  ;;  %9795 = vmatprep.mubr.msk.f32.mxu1 %vm10790_vm4, %v10789_v22 }
 0x45c   :  { %v2887_v46 = vpop.xlane.xlu1 %2886  ;;  %9803 = vmatprep.subr.mxu1 %v10789_v22 }
 0x45d   :  { %10698 = vrcp.f32 %v2887_v46 }
 0x460   :  { %v2890_v47 = vpop.xlane.xlu1 %2889 }
 0x461   :  { %10700 = vrcp.f32 %v2890_v47 }
 0x464   :  { %v2893_v48 = vpop.xlane.xlu0 %2892  ;;  %v2896_v49 = vpop.xlane.xlu1 %2895 }
 0x465   :  { %10702 = vrcp.f32 %v2893_v48 }
 0x466   :  { %10704 = vrcp.f32 %v2896_v49 }
 0x467   :  { %v10699_v50 = vpop.eup %10698 }
 0x468   :  { %v2915_v51 = vmul.f32 %v10699_v50, %v10683_v21  ;;  %v2902_v52 = vpop.xlane.xlu1 %2901  ;;  %v3512_v21 = vld [vmem:[%s12435_s5 + $0x30] sm:$0xff] }
 0x469   :  { %10706 = vrcp.f32 %v2902_v52 }
 0x46a   :  { %9791 = vmatmul.mubr.msk.f32.vlgmr.msra.gmra.mrb[34].mxu0 %vm2217_vm6, %v2915_v51 }
 0x46b   :  { %v10701_v45 = vpop.eup %10700  ;;  %9799 = vmatpush3.msra.mxu0 %v11439_v5  ;;  %9800 = vmatprep.mubr.msk.f32.mxu0 %vm10790_vm4, %v10789_v22 }
 0x46c   :  { %v2916_v53 = vmul.f32 %v10701_v45, %v10685_v7  ;;  %v2899_v54 = vpop.xlane.xlu0 %2898  ;;  %9808 = vmatprep.subr.mxu0 %v10789_v22 }
 0x46d   :  { %10708 = vrcp.f32 %v2899_v54 }
 0x46e   :  { %9796 = vmatmul.mubr.msk.f32.vlgmr.msra.gmra.mrb[34].mxu1 %vm2217_vm6, %v2916_v53 }
 0x46f   :  { %v10703_v55 = vpop.eup %10702  ;;  %9804 = vmatpush3.msra.mxu1 %v11434_v56  ;;  %9805 = vmatprep.mubr.msk.f32.mxu1 %vm10790_vm4, %v10789_v22 }
 0x470   :  { %v10705_v58 = vpop.eup %10704  ;;  %v2917_v59 = vmul.f32 %v10703_v55, %v10689_v29  ;;  %9813 = vmatprep.subr.mxu1 %v10789_v22 }
 0x471   :  { %v2918_v5 = vmul.f32 %v10705_v58, %v10687_v28 }
 0x472   :  { %9801 = vmatmul.mubr.msk.f32.vlgmr.msra.gmra.mrb[36].mxu0 %vm2217_vm6, %v2917_v59 }
 0x473   :  { %v10707_v60 = vpop.eup %10706  ;;  %9806 = vmatmul.mubr.msk.f32.vlgmr.msra.gmra.mrb[36].mxu1 %vm2217_vm6, %v2918_v5  ;;  %9809 = vmatpush3.msra.mxu0 %v11445_v15 }
 0x474   :  { %v2920_v34 = vmul.f32 %v10707_v60, %v10691_v35  ;;  %9814 = vmatpush3.msra.mxu1 %v11441_v62  ;;  %v2905_v61 = vpop.xlane.xlu0 %2904  ;;  %9815 = vmatprep.mubr.msk.f32.mxu1 %vm10790_vm4, %v10789_v22 }
 0x475   :  { %10710 = vrcp.f32 %v2905_v61  ;;  %9810 = vmatprep.mubr.msk.f32.mxu0 %vm10790_vm4, %v10789_v22  ;;  %9818 = vmatprep.subr.mxu0 %v10789_v22 }
 0x476   :  { %9823 = vmatprep.subr.mxu1 %v10789_v22 }
 0x477   :  { %v10709_v56 = vpop.eup %10708  ;;  %9816 = vmatmul.mubr.msk.f32.vlgmr.msra.gmra.mrb[38].mxu1 %vm2217_vm6, %v2920_v34 }
 0x478   :  { %v2919_v0 = vmul.f32 %v10709_v56, %v10693_v38  ;;  %9825 = vmatprep.mubr.msk.f32.mxu1 %vm10790_vm4, %v10789_v22  ;;  %9824 = vmatpush3.msra.mxu1 %v3506_v1 }
 0x479   :  { %9833 = vmatprep.subr.mxu1 %v10789_v22 }
 0x47a   :  { %9811 = vmatmul.mubr.msk.f32.vlgmr.msra.gmra.mrb[38].mxu0 %vm2217_vm6, %v2919_v0 }
 0x47b   :  { %9819 = vmatpush3.msra.mxu0 %v11448_v20  ;;  %9820 = vmatprep.mubr.msk.f32.mxu0 %vm10790_vm4, %v10789_v22  ;;  %v3507_v20 = vld [vmem:[%s12435_s5 + $0x8] sm:$0xff] }
 0x47c   :  { %9828 = vmatprep.subr.mxu0 %v10789_v22 }
 0x47f   :  { %v10711_v62 = vpop.eup %10710 }
 0x480   :  { %v2921_v15 = vmul.f32 %v10711_v62, %v10695_v40 }
 0x482   :  { %9821 = vmatmul.mubr.msk.f32.vlgmr.msra.gmra.mrb[40].mxu0 %vm2217_vm6, %v2921_v15 }
 0x483   :  { %9830 = vmatprep.mubr.msk.f32.mxu0 %vm10790_vm4, %v10789_v22  ;;  %9829 = vmatpush3.msra.mxu0 %v3507_v20 }
 0x484   :  { %9838 = vmatprep.subr.mxu0 %v10789_v22 }
 0x52d   :  { %v2991_v4 = vpop.f32.mrb[32].mxu1 }
 0x52e   :  { %v9787_v63 = vpop.f32.mrb[33].mxu1  ;;  %9826 = vmatmul.mubr.msk.f32.vlgmr.msra.gmra.mrb[40].mxu1 %vm2217_vm6, %v2991_v4 }
 0x52f   :  { %9834 = vmatpush3.msra.mxu1 %v3508_v2  ;;  %9835 = vmatprep.mubr.msk.f32.mxu1 %vm10790_vm4, %v10789_v22 }
 0x530   :  { %9843 = vmatprep.subr.mxu1 %v10789_v22 }
 0x53d   :  { %v3064_v11 = vpop.f32.mrb[34].mxu0 }
 0x53e   :  { %v9792_v12 = vpop.f32.mrb[35].mxu0  ;;  %9831 = vmatmul.mubr.msk.f32.vlgmr.msra.gmra.mrb[42].mxu0 %vm2217_vm6, %v3064_v11  ;;  %v4162_v11 = vld [vmem:[%s12436_s6] sm:$0xff] }
 0x53f   :  { %9839 = vmatpush3.msra.mxu0 %v3509_v10  ;;  %9840 = vmatprep.mubr.msk.f32.mxu0 %vm10790_vm4, %v10789_v22  ;;  %v4163_v12 = vld [vmem:[%s12436_s6 + $0x8] sm:$0xff] }
 0x540   :  { %9848 = vmatprep.subr.mxu0 %v10789_v22 }
 0x541   :  { %v3137_v6 = vpop.f32.mrb[34].mxu1 }
 0x542   :  { %v9797_v16 = vpop.f32.mrb[35].mxu1  ;;  %9836 = vmatmul.mubr.msk.f32.vlgmr.msra.gmra.mrb[42].mxu1 %vm2217_vm6, %v3137_v6  ;;  %v4165_v6 = vld [vmem:[%s12436_s6 + $0x18] sm:$0xff] }
 0x543   :  { %9844 = vmatpush3.msra.mxu1 %v3510_v14  ;;  %9845 = vmatprep.mubr.msk.f32.mxu1 %vm10790_vm4, %v10789_v22  ;;  %v10470_v14 = vpack.c.bf16 %v4163_v12, %v4162_v11 }
 0x544   :  { %9853 = vmatprep.subr.mxu1 %v10789_v22 }
 0x545   :  { %v3210_v19 = vpop.f32.mrb[36].mxu0 }
 0x546   :  { %v3283_v23 = vpop.f32.mrb[36].mxu1  ;;  %v9802_v24 = vpop.f32.mrb[37].mxu0  ;;  %9841 = vmatmul.mubr.msk.f32.vlgmr.msra.gmra.mrb[44].mxu0 %vm2217_vm6, %v3210_v19  ;;  %v4254_v19 = vld [vmem:[%s12437_s7 + $0x8] sm:$0xff] }
 0x547   :  { %v9807_v25 = vpop.f32.mrb[37].mxu1  ;;  %9846 = vmatmul.mubr.msk.f32.vlgmr.msra.gmra.mrb[44].mxu1 %vm2217_vm6, %v3283_v23  ;;  %9849 = vmatpush3.msra.mxu0 %v3511_v18  ;;  %v4253_v18 = vld [vmem:[%s12437_s7] sm:$0xff]  ;;  %v4256_v24 = vld [vmem:[%s12437_s7 + $0x18] sm:$0xff] }
 0x548   :  { %9854 = vmatpush3.msra.mxu1 %v3512_v21  ;;  %9855 = vmatprep.mubr.msk.f32.mxu1 %vm10790_vm4, %v10789_v22  ;;  %v4255_v21 = vld [vmem:[%s12437_s7 + $0x10] sm:$0xff]  ;;  %v10478_v23 = vpack.c.bf16 %v4254_v19, %v4253_v18  ;;  %v8906_v18 = vld [vmem:[%s12433_s3 + $0x340] sm:$0xff] }
 0x549   :  { %9850 = vmatprep.mubr.msk.f32.mxu0 %vm10790_vm4, %v10789_v22  ;;  %9858 = vmatprep.subr.mxu0 %v10789_v22  ;;  %v10482_v25 = vpack.c.bf16 %v4256_v24, %v4255_v21  ;;  %v8907_v21 = vld [vmem:[%s12433_s3 + $0x348] sm:$0xff]  ;;  %v8900_v24 = vld [vmem:[%s12433_s3 + $0x310] sm:$0xff] }
 0x54a   :  { %v3429_v7 = vpop.f32.mrb[38].mxu1  ;;  %10471 = vmatprep.subr.bf16.mxu1 %v10470_v14 }
 0x54b   :  { %v9817_v9 = vpop.f32.mrb[39].mxu1  ;;  %9856 = vmatmul.mubr.msk.f32.vlgmr.msra.gmra.mrb[46].mxu1 %vm2217_vm6, %v3429_v7  ;;  %v4257_v7 = vld [vmem:[%s12437_s7 + $0x20] sm:$0xff] }
 0x54c   :  { %10473 = vmatpush3.bf16.msra.mxu1 %v10470_v14  ;;  %v4258_v9 = vld [vmem:[%s12437_s7 + $0x28] sm:$0xff] }
 0x54d   :  { %v3356_v27 = vpop.f32.mrb[38].mxu0 }
 0x54e   :  { %v9812_v28 = vpop.f32.mrb[39].mxu0  ;;  %9851 = vmatmul.mubr.msk.f32.vlgmr.msra.gmra.mrb[46].mxu0 %vm2217_vm6, %v3356_v27 }
 0x54f   :  { %9859 = vmatpush3.msra.mxu0 %v3513_v26  ;;  %9860 = vmatprep.mubr.msk.f32.mxu0 %vm10790_vm4, %v10789_v22  ;;  %v10486_v26 = vpack.c.bf16 %v4258_v9, %v4257_v7  ;;  %v8908_v7 = vld [vmem:[%s12433_s3 + $0x350] sm:$0xff] }
 0x550   :  { %10479 = vmatprep.subr.bf16.mxu0 %v10478_v23 }
 0x555   :  { %v3502_v29 = vpop.f32.mrb[40].mxu0 }
 0x556   :  { %v9822_v30 = vpop.f32.mrb[41].mxu0  ;;  %9861 = vmatmul.mubr.msk.f32.vlgmr.msra.gmra.mrb[48].mxu0 %vm2217_vm6, %v3502_v29 }
 0x557   :  { %10481 = vmatpush3.bf16.msra.mxu0 %v10478_v23  ;;  %v10507_v23 = vpack.c.bf16 %v8907_v21, %v8906_v18  ;;  %v8918_v18 = vld [vmem:[%s12433_s3 + $0x3a0] sm:$0xff] }
 0x558   :  { %10483 = vmatprep.subr.bf16.mxu0 %v10482_v25  ;;  %v8930_v21 = vld [vmem:[%s12433_s3 + $0x400] sm:$0xff] }
 0x55b   :  { %10485 = vmatpush3.bf16.msra.mxu0 %v10482_v25  ;;  %v8901_v25 = vld [vmem:[%s12433_s3 + $0x318] sm:$0xff] }
 0x55c   :  { %10487 = vmatprep.subr.bf16.mxu0 %v10486_v26  ;;  %v10498_v9 = vpack.c.bf16 %v8901_v25, %v8900_v24 }
 0x55f   :  { %10489 = vmatpush3.bf16.msra.mxu0 %v10486_v26  ;;  %v8909_v26 = vld [vmem:[%s12433_s3 + $0x358] sm:$0xff] }
 0x601   :  { %v3583_v31 = vpop.f32.mrb[40].mxu1 }
 0x602   :  { %v9827_v32 = vpop.f32.mrb[41].mxu1  ;;  %v4098_v35 = vsel %vm450_vm5, %v3583_v31, 0.0 }
 0x611   :  { %v3656_v33 = vpop.f32.mrb[42].mxu0 }
 0x612   :  { %v4099_v36 = vsel %vm450_vm5, %v3656_v33, 0.0  ;;  %v9832_v37 = vpop.f32.mrb[43].mxu0 }
 0x613   :  { %v4100_v38 = vadd.f32 %v4099_v36, %v4098_v35 }
 0x615   :  { %v3729_v39 = vpop.f32.mrb[42].mxu1 }
 0x616   :  { %v4101_v40 = vsel %vm450_vm5, %v3729_v39, 0.0  ;;  %v9837_v41 = vpop.f32.mrb[43].mxu1 }
 0x617   :  { %v4102_v17 = vadd.f32 %v4101_v40, %v4100_v38 }
 0x619   :  { %v3802_v42 = vpop.f32.mrb[44].mxu0 }
 0x61a   :  { %v4103_v46 = vsel %vm450_vm5, %v3802_v42, 0.0  ;;  %v3875_v47 = vpop.f32.mrb[44].mxu1  ;;  %v9842_v48 = vpop.f32.mrb[45].mxu0 }
 0x61b   :  { %v4104_v49 = vadd.f32 %v4103_v46, %v4102_v17  ;;  %v9847_v50 = vpop.f32.mrb[45].mxu1  ;;  %v4105_v59 = vsel %vm450_vm5, %v3875_v47, 0.0  ;;  %v8888_v17 = vld [vmem:[%s12439_s9 + $0x1] ss:$0 sm:$0xff]  ;;  %v8889_v46 = vld [vmem:[%s12439_s9 + $0x2] ss:$0 sm:$0xff] }
 0x61d   :  { %v4116_v51 = vadd.f32 %v8887_v44, %v4104_v49 }
 0x61e   :  { %v4021_v52 = vpop.f32.mrb[46].mxu1 }
 0x61f   :  { %v9857_v45 = vpop.f32.mrb[47].mxu1  ;;  %v11560_v53 = vadd.f32 %v4116_v51, %v10928_v43  ;;  %v4108_v61 = vsel %vm450_vm5, %v4021_v52, 0.0 }
 0x621   :  { %v3948_v54 = vpop.f32.mrb[46].mxu0  ;;  %v4120_v55 = vsel %vm450_vm5, %v11560_v53, 0.0  ;;  %v4128_v58 = vmul.f32 %v11560_v53, %v11560_v53 }
 0x622   :  { %v4106_v5 = vsel %vm450_vm5, %v3948_v54, 0.0  ;;  %v9852_v60 = vpop.f32.mrb[47].mxu0  ;;  %4121 = vadd.xlane.f32.xlu1 %v4120_v55  ;;  %v4259_v54 = vld [vmem:[%s12437_s7 + $0x30] sm:$0xff]  ;;  %v4260_v55 = vld [vmem:[%s12437_s7 + $0x38] sm:$0xff] }
 0x623   :  { %v4107_v34 = vadd.f32 %v4106_v5, %v4105_v59  ;;  %v4130_v56 = vsel %vm450_vm5, %v4128_v58, 0.0  ;;  %v10490_v58 = vpack.c.bf16 %v4260_v55, %v4259_v54  ;;  %v8890_v59 = vld [vmem:[%s12439_s9 + $0x5] ss:$0 sm:$0xff] }
 0x625   :  { %v4109_v43 = vadd.f32 %v4108_v61, %v4107_v34  ;;  %10491 = vmatprep.subr.bf16.mxu0 %v10490_v58 }
 0x626   :  { %4131 = vadd.xlane.f32.xlu1 %v4130_v56  ;;  %10493 = vmatpush3.bf16.msra.mxu0 %v10490_v58 }
 0x627   :  { %10506 = vmatprep.subr.bf16.mxu0 %v10788_v8 }
 0x629   :  { %v4094_v0 = vpop.f32.mrb[48].mxu0 }
 0x62a   :  { %v4110_v62 = vsel %vm450_vm5, %v4094_v0, 0.0  ;;  %v9862_v15 = vpop.f32.mrb[49].mxu0  ;;  %v8893_v0 = vld [vmem:[%s12439_s9 + $0x6] ss:$0 sm:$0xff] }
 0x62b   :  { %v4111_v1 = vadd.f32 %v4110_v62, %v4109_v43 }
 0x62d   :  { %v4117_v20 = vadd.f32 %v8887_v44, %v4111_v1 }
 0x62f   :  { %v4119_v2 = vadd.f32 %v4117_v20, %v10967_v57  ;;  %v4164_v57 = vld [vmem:[%s12436_s6 + $0x10] sm:$0xff] }
 0x630   :  { %v10474_v16 = vpack.c.bf16 %v4165_v6, %v4164_v57  ;;  %v8898_v6 = vld [vmem:[%s12433_s3 + $0x300] sm:$0xff] }
 0x631   :  { %v4123_v4 = vsel %vm450_vm5, %v4119_v2, 0.0  ;;  %v4129_v63 = vmul.f32 %v4119_v2, %v4119_v2 }
 0x632   :  { %4124 = vadd.xlane.f32.xlu0 %v4123_v4  ;;  %10475 = vmatprep.subr.bf16.mxu1 %v10474_v16 }
 0x633   :  { %v4133_v10 = vsel %vm450_vm5, %v4129_v63, 0.0  ;;  %10477 = vmatpush3.bf16.msra.mxu1 %v10474_v16  ;;  %v8899_v16 = vld [vmem:[%s12433_s3 + $0x308] sm:$0xff] }
 0x634   :  { %10494 = vmatprep.subr.bf16.mxu1 %v10788_v8  ;;  %v10495_v19 = vpack.c.bf16 %v8899_v16, %v8898_v6 }
 0x636   :  { %4134 = vadd.xlane.f32.xlu0 %v4133_v10 }
 0x6af   :  { %v4122_v27 = vpop.xlane.xlu1 %4121 }
 0x6b0   :  { %v4126_v28 = vmul.f32 0.03125, %v4122_v27  ;;  %v10510_v27 = vpack.c.bf16 %v8909_v26, %v8908_v7  ;;  %v8920_v7 = vld [vmem:[%s12433_s3 + $0x3b0] sm:$0xff] }
 0x6b1   :  { %v8932_v26 = vld [vmem:[%s12433_s3 + $0x410] sm:$0xff] }
 0x6b2   :  { %v4138_v30 = vmul.f32 %v4126_v28, %v4126_v28  ;;  %v4142_v37 = vsub.f32 %v11560_v53, %v4126_v28 }
 0x6b3   :  { %v4132_v29 = vpop.xlane.xlu1 %4131 }
 0x6b4   :  { %v4136_v31 = vmul.f32 0.03125, %v4132_v29 }
 0x6b6   :  { %v4140_v32 = vsub.f32 %v4136_v31, %v4138_v30 }
 0x6b8   :  { %v4144_v33 = vadd.f32 1e-05, %v4140_v32 }
 0x6ba   :  { %10712 = vrsqrt.f32 %v4144_v33 }
 0x6bf   :  { %v4125_v35 = vpop.xlane.xlu0 %4124 }
 0x6c0   :  { %v4127_v36 = vmul.f32 0.03125, %v4125_v35 }
 0x6c2   :  { %v4139_v40 = vmul.f32 %v4127_v36, %v4127_v36  ;;  %v4143_v50 = vsub.f32 %v4119_v2, %v4127_v36 }
 0x6c3   :  { %v4135_v38 = vpop.xlane.xlu0 %4134 }
 0x6c4   :  { %v10713_v39 = vpop.eup %10712  ;;  %v4137_v41 = vmul.f32 0.03125, %v4135_v38 }
 0x6c5   :  { %v4148_v42 = vmul.f32 %v10713_v39, %v4142_v37 }
 0x6c6   :  { %v4141_v44 = vsub.f32 %v4137_v41, %v4139_v40 }
 0x6c7   :  { %v4154_v47 = vmul.f32 %v8888_v17, %v4148_v42 }
 0x6c8   :  { %v4145_v48 = vadd.f32 1e-05, %v4141_v44 }
 0x6c9   :  { %v4160_v49 = vadd.f32 %v8889_v46, %v4154_v47  ;;  %v8902_v47 = vld [vmem:[%s12433_s3 + $0x320] sm:$0xff] }
 0x6ca   :  { %10714 = vrsqrt.f32 %v4145_v48 }
 0x6cb   :  { %9871 = vmatprep.mubr.msk.f32.mxu1 %vm450_vm5, %v4160_v49 }
 0x6d4   :  { %v10715_v51 = vpop.eup %10714 }
 0x6d5   :  { %v4149_v52 = vmul.f32 %v10715_v51, %v4143_v50  ;;  %v8914_v50 = vld [vmem:[%s12433_s3 + $0x380] sm:$0xff]  ;;  %v8915_v51 = vld [vmem:[%s12433_s3 + $0x388] sm:$0xff] }
 0x6d6   :  { %v10519_v58 = vpack.c.bf16 %v8915_v51, %v8914_v50  ;;  %v8936_v50 = vld [vmem:[%s12433_s3 + $0x430] sm:$0xff]  ;;  %v8937_v51 = vld [vmem:[%s12433_s3 + $0x438] sm:$0xff] }
 0x6d7   :  { %v4155_v45 = vmul.f32 %v8888_v17, %v4149_v52  ;;  %v8897_v52 = vld [vmem:[%s12439_s9 + $0x4] ss:$0 sm:$0xff] }
 0x6d9   :  { %v4161_v53 = vadd.f32 %v8889_v46, %v4155_v45  ;;  %v8896_v46 = vld [vmem:[%s12439_s9 + $0x3] ss:$0 sm:$0xff] }
 0x6db   :  { %9872 = vmatmul.mubr.msk.f32.vlgmr.msra.gmra.mrb[48].mxu1 %vm450_vm5, %v4161_v53 }
 0x6dc   :  { %9901 = vmatprep.mubr.msk.f32.mxu1 %vm10790_vm4, %v10789_v22  ;;  %10496 = vmatpush3.bf16.msra.mxu1 %v10495_v19  ;;  %v8919_v19 = vld [vmem:[%s12433_s3 + $0x3a8] sm:$0xff] }
 0x6dd   :  { %10497 = vmatprep.subr.bf16.mxu1 %v10788_v8  ;;  %v10525_v24 = vpack.c.bf16 %v8919_v19, %v8918_v18 }
 0x6e0   :  { %10499 = vmatpush3.bf16.msra.mxu1 %v10498_v9  ;;  %v8921_v9 = vld [vmem:[%s12433_s3 + $0x3b8] sm:$0xff] }
 0x6e1   :  { %10500 = vmatprep.subr.bf16.mxu1 %v10788_v8 }
 0x7ae   :  { %v9873_v5 = vpop.f32.mrb[48].mxu1 }
 0x7af   :  { %v4248_v60 = vadd.f32 %v9873_v5, %v8890_v59  ;;  %v4242_v34 = vpop.f32.mrb[49].mxu1 }
 0x7b0   :  { %v4243_v61 = vadd.f32 %v8890_v59, %v4242_v34  ;;  %v8904_v59 = vld [vmem:[%s12433_s3 + $0x330] sm:$0xff]  ;;  %v8905_v34 = vld [vmem:[%s12433_s3 + $0x338] sm:$0xff] }
 0x7b1   :  { %v4252_v43 = vmax.f32 %v4248_v60, 0.0 }
 0x7b2   :  { %v4251_v56 = vmax.f32 %v4243_v61, 0.0  ;;  %v8916_v61 = vld [vmem:[%s12433_s3 + $0x390] sm:$0xff] }
 0x7b4   :  { %9890 = vmatprep.mubr.msk.f32.mxu0 %vm4265_vm7, %v4251_v56  ;;  %v8917_v56 = vld [vmem:[%s12433_s3 + $0x398] sm:$0xff] }
 0x7b5   :  { %9891 = vmatmul.mubr.msk.f32.vlgmr.msra.gmra.mrb[50].mxu0 %vm4265_vm7, %v4252_v43  ;;  %v10504_v43 = vpack.c.bf16 %v8905_v34, %v8904_v59  ;;  %v8954_v59 = vld [vmem:[%s12433_s3 + $0x4c0] sm:$0xff] }
 0x7b6   :  { %9923 = vmatprep.mubr.msk.f32.mxu0 %vm10790_vm4, %v10789_v22  ;;  %10508 = vmatpush3.bf16.msra.mxu0 %v10507_v23  ;;  %v8931_v23 = vld [vmem:[%s12433_s3 + $0x408] sm:$0xff] }
 0x7b7   :  { %10509 = vmatprep.subr.bf16.mxu0 %v10788_v8  ;;  %v10543_v25 = vpack.c.bf16 %v8931_v23, %v8930_v21  ;;  %v8958_v21 = vld [vmem:[%s12433_s3 + $0x4e0] sm:$0xff]  ;;  %v8959_v23 = vld [vmem:[%s12433_s3 + $0x4e8] sm:$0xff] }
 0x7ba   :  { %10511 = vmatpush3.bf16.msra.mxu0 %v10510_v27  ;;  %v8933_v27 = vld [vmem:[%s12433_s3 + $0x418] sm:$0xff] }
 0x7bb   :  { %10518 = vmatprep.subr.bf16.mxu0 %v10788_v8 }
 0x888   :  { %v9892_v62 = vpop.f32.mrb[50].mxu0 }
 0x889   :  { %v4344_v15 = vadd.f32 %v9892_v62, %v8893_v0  ;;  %v4338_v1 = vpop.f32.mrb[51].mxu0  ;;  %v8910_v62 = vld [vmem:[%s12433_s3 + $0x360] sm:$0xff] }
 0x88a   :  { %v4339_v20 = vadd.f32 %v8893_v0, %v4338_v1  ;;  %v10522_v0 = vpack.c.bf16 %v8917_v56, %v8916_v61  ;;  %v8911_v1 = vld [vmem:[%s12433_s3 + $0x368] sm:$0xff]  ;;  %v8944_v56 = vld [vmem:[%s12433_s3 + $0x470] sm:$0xff] }
 0x88b   :  { %v11633_v2 = vadd.f32 %v4344_v15, %v4161_v53 }
 0x88c   :  { %v4347_v4 = vadd.f32 %v4339_v20, %v4160_v49  ;;  %v8903_v49 = vld [vmem:[%s12433_s3 + $0x328] sm:$0xff]  ;;  %v8922_v20 = vld [vmem:[%s12433_s3 + $0x3c0] sm:$0xff] }
 0x88d   :  { %v4358_v12 = vmul.f32 %v11633_v2, %v11633_v2  ;;  %v4352_v14 = vsel %vm450_vm5, %v11633_v2, 0.0  ;;  %v10501_v55 = vpack.c.bf16 %v8903_v49, %v8902_v47  ;;  %v8947_v47 = vld [vmem:[%s12433_s3 + $0x488] sm:$0xff] }
 0x88e   :  { %v4349_v63 = vsel %vm450_vm5, %v4347_v4, 0.0  ;;  %v4357_v10 = vmul.f32 %v4347_v4, %v4347_v4 }
 0x88f   :  { %4350 = vadd.xlane.f32.xlu1 %v4349_v63  ;;  %v4362_v57 = vsel %vm450_vm5, %v4358_v12, 0.0  ;;  %v8913_v12 = vld [vmem:[%s12433_s3 + $0x378] sm:$0xff] }
 0x890   :  { %v4359_v11 = vsel %vm450_vm5, %v4357_v10, 0.0  ;;  %v8912_v10 = vld [vmem:[%s12433_s3 + $0x370] sm:$0xff] }
 0x891   :  { %4360 = vadd.xlane.f32.xlu0 %v4359_v11  ;;  %v10516_v6 = vpack.c.bf16 %v8913_v12, %v8912_v10 }
 0x893   :  { %4353 = vadd.xlane.f32.xlu1 %v4352_v14  ;;  %v8924_v14 = vld [vmem:[%s12433_s3 + $0x3d0] sm:$0xff] }
 0x895   :  { %4363 = vadd.xlane.f32.xlu0 %v4362_v57  ;;  %v8925_v57 = vld [vmem:[%s12433_s3 + $0x3d8] sm:$0xff] }
 0x896   :  { %v10534_v16 = vpack.c.bf16 %v8925_v57, %v8924_v14  ;;  %v8952_v14 = vld [vmem:[%s12433_s3 + $0x4b0] sm:$0xff]  ;;  %v8953_v57 = vld [vmem:[%s12433_s3 + $0x4b8] sm:$0xff] }
 0x897   :  { %v10576_v18 = vpack.c.bf16 %v8953_v57, %v8952_v14 }
 0x91c   :  { %v4351_v28 = vpop.xlane.xlu1 %4350 }
 0x91d   :  { %v4355_v29 = vmul.f32 0.03125, %v4351_v28  ;;  %v10528_v28 = vpack.c.bf16 %v8921_v9, %v8920_v7  ;;  %v10585_v7 = vpack.c.bf16 %v8959_v23, %v8958_v21  ;;  %v8994_v21 = vld [vmem:[%s12434_s4 + $0x18] sm:$0xff] }
 0x91e   :  { %v4361_v30 = vpop.xlane.xlu0 %4360 }
 0x91f   :  { %v4367_v31 = vmul.f32 %v4355_v29, %v4355_v29  ;;  %v4365_v32 = vmul.f32 0.03125, %v4361_v30  ;;  %v4371_v42 = vsub.f32 %v4347_v4, %v4355_v29  ;;  %v10513_v4 = vpack.c.bf16 %v8911_v1, %v8910_v62  ;;  %v8926_v30 = vld [vmem:[%s12433_s3 + $0x3e0] sm:$0xff]  ;;  %v8957_v62 = vld [vmem:[%s12433_s3 + $0x4d8] sm:$0xff] }
 0x920   :  { %v4354_v33 = vpop.xlane.xlu1 %4353  ;;  %v10546_v29 = vpack.c.bf16 %v8933_v27, %v8932_v26  ;;  %v8960_v26 = vld [vmem:[%s12433_s3 + $0x4f0] sm:$0xff]  ;;  %v8961_v27 = vld [vmem:[%s12433_s3 + $0x4f8] sm:$0xff] }
 0x921   :  { %v4369_v35 = vsub.f32 %v4365_v32, %v4367_v31  ;;  %v4356_v36 = vmul.f32 0.03125, %v4354_v33  ;;  %v8927_v31 = vld [vmem:[%s12433_s3 + $0x3e8] sm:$0xff]  ;;  %v8938_v32 = vld [vmem:[%s12433_s3 + $0x440] sm:$0xff] }
 0x922   :  { %v4364_v37 = vpop.xlane.xlu0 %4363  ;;  %v8939_v33 = vld [vmem:[%s12433_s3 + $0x448] sm:$0xff] }
 0x923   :  { %v4373_v38 = vadd.f32 1e-05, %v4369_v35  ;;  %v4368_v39 = vmul.f32 %v4356_v36, %v4356_v36  ;;  %v4366_v40 = vmul.f32 0.03125, %v4364_v37  ;;  %v4372_v53 = vsub.f32 %v11633_v2, %v4356_v36  ;;  %v8923_v2 = vld [vmem:[%s12433_s3 + $0x3c8] sm:$0xff]  ;;  %v8928_v37 = vld [vmem:[%s12433_s3 + $0x3f0] sm:$0xff] }
 0x924   :  { %v10531_v63 = vpack.c.bf16 %v8923_v2, %v8922_v20  ;;  %v10537_v35 = vpack.c.bf16 %v8927_v31, %v8926_v30  ;;  %v10555_v36 = vpack.c.bf16 %v8939_v33, %v8938_v32  ;;  %v8950_v20 = vld [vmem:[%s12433_s3 + $0x4a0] sm:$0xff]  ;;  %v8951_v2 = vld [vmem:[%s12433_s3 + $0x4a8] sm:$0xff]  ;;  %v10588_v30 = vpack.c.bf16 %v8961_v27, %v8960_v26 }
 0x925   :  { %10716 = vrsqrt.f32 %v4373_v38  ;;  %v4370_v41 = vsub.f32 %v4366_v40, %v4368_v39  ;;  %v8929_v38 = vld [vmem:[%s12433_s3 + $0x3f8] sm:$0xff]  ;;  %v8940_v39 = vld [vmem:[%s12433_s3 + $0x450] sm:$0xff]  ;;  %v10573_v10 = vpack.c.bf16 %v8951_v2, %v8950_v20  ;;  %v8966_v32 = vld [vmem:[%s12433_s3 + $0x520] sm:$0xff]  ;;  %v4507_v26 = vrot.slane %v8994_v21, %v11332_v3 }
 0x926   :  { %v8941_v40 = vld [vmem:[%s12433_s3 + $0x458] sm:$0xff]  ;;  %v8967_v33 = vld [vmem:[%s12433_s3 + $0x528] sm:$0xff] }
 0x927   :  { %v4374_v17 = vadd.f32 1e-05, %v4370_v41  ;;  %v10540_v41 = vpack.c.bf16 %v8929_v38, %v8928_v37  ;;  %v10597_v37 = vpack.c.bf16 %v8967_v33, %v8966_v32  ;;  %v8993_v20 = vld [vmem:[%s12433_s3 + $0x5f8] sm:$0xff] }
 0x929   :  { %10718 = vrsqrt.f32 %v4374_v17  ;;  %v10558_v17 = vpack.c.bf16 %v8941_v40, %v8940_v39  ;;  %v8968_v39 = vld [vmem:[%s12433_s3 + $0x530] sm:$0xff]  ;;  %v8969_v40 = vld [vmem:[%s12433_s3 + $0x538] sm:$0xff] }
 0x92f   :  { %v10717_v44 = vpop.eup %10716 }
 0x930   :  { %v4377_v48 = vmul.f32 %v10717_v44, %v4371_v42  ;;  %v8934_v42 = vld [vmem:[%s12433_s3 + $0x420] sm:$0xff]  ;;  %v8935_v44 = vld [vmem:[%s12433_s3 + $0x428] sm:$0xff] }
 0x932   :  { %v4383_v45 = vmul.f32 %v8896_v46, %v4377_v48  ;;  %v10549_v48 = vpack.c.bf16 %v8935_v44, %v8934_v42  ;;  %v10600_v42 = vpack.c.bf16 %v8969_v40, %v8968_v39  ;;  %v4500_v40 = vcombine.high %v8994_v21, %v8994_v21 }
 0x933   :  { %v10719_v54 = vpop.eup %10718 }
 0x934   :  { %v11692_v5 = vadd.f32 %v8897_v52, %v4383_v45  ;;  %v4378_v60 = vmul.f32 %v10719_v54, %v4372_v53  ;;  %v8949_v45 = vld [vmem:[%s12433_s3 + $0x498] sm:$0xff]  ;;  %v10552_v53 = vpack.c.bf16 %v8937_v51, %v8936_v50 }
 0x936   :  { %9902 = vmatmul.mubr.msk.f32.vlgmr.msra.gmra.mrb[50].mxu1 %vm450_vm5, %v11692_v5  ;;  %9924 = vmatmul.mubr.msk.f32.vlgmr.msra.gmra.mrb[52].mxu0 %vm450_vm5, %v11692_v5  ;;  %v4384_v15 = vmul.f32 %v8896_v46, %v4378_v60  ;;  %v8946_v46 = vld [vmem:[%s12433_s3 + $0x480] sm:$0xff]  ;;  %v8955_v60 = vld [vmem:[%s12433_s3 + $0x4c8] sm:$0xff] }
 0x937   :  { %10502 = vmatpush3.bf16.msra.mxu1 %v10501_v55  ;;  %10520 = vmatpush3.bf16.msra.mxu0 %v10519_v58  ;;  %v10567_v49 = vpack.c.bf16 %v8947_v47, %v8946_v46  ;;  %v8942_v55 = vld [vmem:[%s12433_s3 + $0x460] sm:$0xff]  ;;  %v8943_v58 = vld [vmem:[%s12433_s3 + $0x468] sm:$0xff]  ;;  %v10579_v61 = vpack.c.bf16 %v8955_v60, %v8954_v59 }
 0x938   :  { %10503 = vmatprep.subr.bf16.mxu1 %v10788_v8  ;;  %10521 = vmatprep.subr.bf16.mxu0 %v10788_v8  ;;  %v11728_v11 = vadd.f32 %v8897_v52, %v4384_v15  ;;  %v8948_v52 = vld [vmem:[%s12433_s3 + $0x490] sm:$0xff]  ;;  %v10561_v34 = vpack.c.bf16 %v8943_v58, %v8942_v55  ;;  %v8974_v46 = vld [vmem:[%s12433_s3 + $0x560] sm:$0xff]  ;;  %v8975_v47 = vld [vmem:[%s12433_s3 + $0x568] sm:$0xff] }
 0x939   :  { %9912 = vmatprep.mubr.msk.f32.mxu1 %vm10790_vm4, %v10789_v22  ;;  %9945 = vmatprep.mubr.msk.f32.mxu0 %vm10790_vm4, %v10789_v22  ;;  %v10570_v54 = vpack.c.bf16 %v8949_v45, %v8948_v52  ;;  %v10609_v50 = vpack.c.bf16 %v8975_v47, %v8974_v46  ;;  %v8976_v52 = vld [vmem:[%s12433_s3 + $0x570] sm:$0xff]  ;;  %v8977_v45 = vld [vmem:[%s12433_s3 + $0x578] sm:$0xff]  ;;  %v8982_v59 = vld [vmem:[%s12433_s3 + $0x5a0] sm:$0xff]  ;;  %v4515_v46 = vcombine.high %v4507_v26, %v4507_v26 }
 0x93a   :  { %v10612_v55 = vpack.c.bf16 %v8977_v45, %v8976_v52  ;;  %v8983_v60 = vld [vmem:[%s12433_s3 + $0x5a8] sm:$0xff]  ;;  %v4514_v47 = vrot.slane %v4500_v40, %v11332_v3 }
 0x93b   :  { %10505 = vmatpush3.bf16.msra.mxu1 %v10504_v43  ;;  %10523 = vmatpush3.bf16.msra.mxu0 %v10522_v0  ;;  %v8945_v43 = vld [vmem:[%s12433_s3 + $0x478] sm:$0xff]  ;;  %v8956_v0 = vld [vmem:[%s12433_s3 + $0x4d0] sm:$0xff] }
 0x93c   :  { %10512 = vmatprep.subr.bf16.mxu1 %v10788_v8  ;;  %10530 = vmatprep.subr.bf16.mxu0 %v10788_v8  ;;  %v10564_v15 = vpack.c.bf16 %v8945_v43, %v8944_v56  ;;  %v10582_v1 = vpack.c.bf16 %v8957_v62, %v8956_v0  ;;  %v8985_v56 = vld [vmem:[%s12433_s3 + $0x5b8] sm:$0xff]  ;;  %v8990_v0 = vld [vmem:[%s12433_s3 + $0x5e0] sm:$0xff]  ;;  %v8991_v62 = vld [vmem:[%s12433_s3 + $0x5e8] sm:$0xff] }
 0x93e   :  { %9913 = vmatmul.mubr.msk.f32.vlgmr.msra.gmra.mrb[52].mxu1 %vm450_vm5, %v11692_v5  ;;  %9946 = vmatmul.mubr.msk.f32.vlgmr.msra.gmra.mrb[54].mxu0 %vm450_vm5, %v11728_v11 }
 0x93f   :  { %10514 = vmatpush3.bf16.msra.mxu1 %v10513_v4  ;;  %10532 = vmatpush3.bf16.msra.mxu0 %v10531_v63  ;;  %v8962_v4 = vld [vmem:[%s12433_s3 + $0x500] sm:$0xff]  ;;  %v8963_v63 = vld [vmem:[%s12433_s3 + $0x508] sm:$0xff] }
 0x940   :  { %10515 = vmatprep.subr.bf16.mxu1 %v10788_v8  ;;  %10533 = vmatprep.subr.bf16.mxu0 %v10788_v8  ;;  %v10591_v12 = vpack.c.bf16 %v8963_v63, %v8962_v4 }
 0x941   :  { %9934 = vmatprep.mubr.msk.f32.mxu1 %vm10790_vm4, %v10789_v22  ;;  %9967 = vmatprep.mubr.msk.f32.mxu0 %vm10790_vm4, %v10789_v22 }
 0x943   :  { %10517 = vmatpush3.bf16.msra.mxu1 %v10516_v6  ;;  %10535 = vmatpush3.bf16.msra.mxu0 %v10534_v16  ;;  %v8964_v6 = vld [vmem:[%s12433_s3 + $0x510] sm:$0xff]  ;;  %v8965_v16 = vld [vmem:[%s12433_s3 + $0x518] sm:$0xff] }
 0x944   :  { %10524 = vmatprep.subr.bf16.mxu1 %v10788_v8  ;;  %10542 = vmatprep.subr.bf16.mxu0 %v10788_v8  ;;  %v10594_v19 = vpack.c.bf16 %v8965_v16, %v8964_v6 }
 0x946   :  { %9935 = vmatmul.mubr.msk.f32.vlgmr.msra.gmra.mrb[54].mxu1 %vm450_vm5, %v11692_v5  ;;  %9968 = vmatmul.mubr.msk.f32.vlgmr.msra.gmra.mrb[56].mxu0 %vm450_vm5, %v11728_v11 }
 0x947   :  { %10526 = vmatpush3.bf16.msra.mxu1 %v10525_v24  ;;  %10544 = vmatpush3.bf16.msra.mxu0 %v10543_v25  ;;  %v8970_v24 = vld [vmem:[%s12433_s3 + $0x540] sm:$0xff]  ;;  %v8971_v25 = vld [vmem:[%s12433_s3 + $0x548] sm:$0xff] }
 0x948   :  { %10527 = vmatprep.subr.bf16.mxu1 %v10788_v8  ;;  %10545 = vmatprep.subr.bf16.mxu0 %v10788_v8  ;;  %v10603_v9 = vpack.c.bf16 %v8971_v25, %v8970_v24 }
 0x949   :  { %9956 = vmatprep.mubr.msk.f32.mxu1 %vm10790_vm4, %v10789_v22  ;;  %9989 = vmatprep.mubr.msk.f32.mxu0 %vm10790_vm4, %v10789_v22 }
 0x94b   :  { %10529 = vmatpush3.bf16.msra.mxu1 %v10528_v28  ;;  %10547 = vmatpush3.bf16.msra.mxu0 %v10546_v29  ;;  %v8972_v28 = vld [vmem:[%s12433_s3 + $0x550] sm:$0xff]  ;;  %v8973_v29 = vld [vmem:[%s12433_s3 + $0x558] sm:$0xff] }
 0x94c   :  { %10536 = vmatprep.subr.bf16.mxu1 %v10788_v8  ;;  %10554 = vmatprep.subr.bf16.mxu0 %v10788_v8  ;;  %v10606_v31 = vpack.c.bf16 %v8973_v29, %v8972_v28  ;;  %v4523_v28 = vrot.slane %v4507_v26, %v11332_v3 }
 0x94e   :  { %9957 = vmatmul.mubr.msk.f32.vlgmr.msra.gmra.mrb[56].mxu1 %vm450_vm5, %v11728_v11  ;;  %9990 = vmatmul.mubr.msk.f32.vlgmr.msra.gmra.mrb[58].mxu0 %vm450_vm5, %v11692_v5  ;;  %v4656_v29 = vrot.slane %v4523_v28, %v10874_v13  ;;  %v4545_v39 = vcombine.high %v4523_v28, %v4523_v28 }
 0x94f   :  { %10538 = vmatpush3.bf16.msra.mxu1 %v10537_v35  ;;  %10556 = vmatpush3.bf16.msra.mxu0 %v10555_v36  ;;  %v8978_v35 = vld [vmem:[%s12433_s3 + $0x580] sm:$0xff]  ;;  %v8979_v36 = vld [vmem:[%s12433_s3 + $0x588] sm:$0xff] }
 0x950   :  { %10539 = vmatprep.subr.bf16.mxu1 %v10788_v8  ;;  %10557 = vmatprep.subr.bf16.mxu0 %v10788_v8  ;;  %v10615_v38 = vpack.c.bf16 %v8979_v36, %v8978_v35 }
 0x951   :  { %9978 = vmatprep.mubr.msk.f32.mxu1 %vm10790_vm4, %v10789_v22  ;;  %10011 = vmatprep.mubr.msk.f32.mxu0 %vm10790_vm4, %v10789_v22 }
 0x953   :  { %10541 = vmatpush3.bf16.msra.mxu1 %v10540_v41  ;;  %10559 = vmatpush3.bf16.msra.mxu0 %v10558_v17  ;;  %v8980_v41 = vld [vmem:[%s12433_s3 + $0x590] sm:$0xff]  ;;  %v8981_v17 = vld [vmem:[%s12433_s3 + $0x598] sm:$0xff] }
 0x954   :  { %10548 = vmatprep.subr.bf16.mxu1 %v10788_v8  ;;  %10566 = vmatprep.subr.bf16.mxu0 %v10788_v8  ;;  %v10618_v44 = vpack.c.bf16 %v8981_v17, %v8980_v41 }
 0x956   :  { %9979 = vmatmul.mubr.msk.f32.vlgmr.msra.gmra.mrb[58].mxu1 %vm450_vm5, %v11728_v11  ;;  %10012 = vmatmul.mubr.msk.f32.vlgmr.msra.gmra.mrb[60].mxu0 %vm450_vm5, %v11692_v5 }
 0x957   :  { %10550 = vmatpush3.bf16.msra.mxu1 %v10549_v48  ;;  %10568 = vmatpush3.bf16.msra.mxu0 %v10567_v49  ;;  %v8986_v48 = vld [vmem:[%s12433_s3 + $0x5c0] sm:$0xff]  ;;  %v8987_v49 = vld [vmem:[%s12433_s3 + $0x5c8] sm:$0xff] }
 0x958   :  { %10551 = vmatprep.subr.bf16.mxu1 %v10788_v8  ;;  %10569 = vmatprep.subr.bf16.mxu0 %v10788_v8  ;;  %v10627_v51 = vpack.c.bf16 %v8987_v49, %v8986_v48 }
 0x959   :  { %10000 = vmatprep.mubr.msk.f32.mxu1 %vm10790_vm4, %v10789_v22  ;;  %10033 = vmatprep.mubr.msk.f32.mxu0 %vm10790_vm4, %v10789_v22 }
 0x95b   :  { %10553 = vmatpush3.bf16.msra.mxu1 %v10552_v53  ;;  %10571 = vmatpush3.bf16.msra.mxu0 %v10570_v54  ;;  %v8988_v53 = vld [vmem:[%s12433_s3 + $0x5d0] sm:$0xff]  ;;  %v8989_v54 = vld [vmem:[%s12433_s3 + $0x5d8] sm:$0xff] }
 0x95c   :  { %10560 = vmatprep.subr.bf16.mxu1 %v10788_v8  ;;  %10578 = vmatprep.subr.bf16.mxu0 %v10788_v8  ;;  %v10630_v58 = vpack.c.bf16 %v8989_v54, %v8988_v53 }
 0x95e   :  { %10001 = vmatmul.mubr.msk.f32.vlgmr.msra.gmra.mrb[60].mxu1 %vm450_vm5, %v11692_v5  ;;  %10034 = vmatmul.mubr.msk.f32.vlgmr.msra.gmra.mrb[62].mxu0 %vm450_vm5, %v11728_v11 }
 0x95f   :  { %10562 = vmatpush3.bf16.msra.mxu1 %v10561_v34  ;;  %10580 = vmatpush3.bf16.msra.mxu0 %v10579_v61  ;;  %v10621_v34 = vpack.c.bf16 %v8983_v60, %v8982_v59  ;;  %v8984_v61 = vld [vmem:[%s12433_s3 + $0x5b0] sm:$0xff] }
 0x960   :  { %10563 = vmatprep.subr.bf16.mxu1 %v10788_v8  ;;  %10581 = vmatprep.subr.bf16.mxu0 %v10788_v8  ;;  %v10624_v43 = vpack.c.bf16 %v8985_v56, %v8984_v61 }
 0x961   :  { %10022 = vmatprep.mubr.msk.f32.mxu1 %vm10790_vm4, %v10789_v22  ;;  %10055 = vmatprep.mubr.msk.f32.mxu0 %vm10790_vm4, %v10789_v22 }
 0x963   :  { %10565 = vmatpush3.bf16.msra.mxu1 %v10564_v15  ;;  %10583 = vmatpush3.bf16.msra.mxu0 %v10582_v1  ;;  %v10633_v15 = vpack.c.bf16 %v8991_v62, %v8990_v0  ;;  %v8992_v1 = vld [vmem:[%s12433_s3 + $0x5f0] sm:$0xff] }
 0x964   :  { %10572 = vmatprep.subr.bf16.mxu1 %v10788_v8  ;;  %10590 = vmatprep.subr.bf16.mxu0 %v10788_v8  ;;  %v10636_v2 = vpack.c.bf16 %v8993_v20, %v8992_v1 }
 0x966   :  { %10023 = vmatmul.mubr.msk.f32.vlgmr.msra.gmra.mrb[62].mxu1 %vm450_vm5, %v11692_v5  ;;  %10056 = vmatmul.mubr.msk.f32.vlgmr.msra.gmra.mrb[64].mxu0 %vm450_vm5, %v11728_v11 }
 0x967   :  { %10574 = vmatpush3.bf16.msra.mxu1 %v10573_v10  ;;  %10592 = vmatpush3.bf16.msra.mxu0 %v10591_v12 }
 0x968   :  { %10575 = vmatprep.subr.bf16.mxu1 %v10788_v8  ;;  %10593 = vmatprep.subr.bf16.mxu0 %v10788_v8 }
 0x969   :  { %10044 = vmatprep.mubr.msk.f32.mxu1 %vm10790_vm4, %v10789_v22  ;;  %10077 = vmatprep.mubr.msk.f32.mxu0 %vm10790_vm4, %v10789_v22 }
 0x96b   :  { %10577 = vmatpush3.bf16.msra.mxu1 %v10576_v18  ;;  %10595 = vmatpush3.bf16.msra.mxu0 %v10594_v19  ;;  %v8995_v18 = vld [vmem:[%s12434_s4 + $0x20] sm:$0xff] }
 0x96c   :  { %10584 = vmatprep.subr.bf16.mxu1 %v10788_v8  ;;  %10602 = vmatprep.subr.bf16.mxu0 %v10788_v8  ;;  %v4559_v19 = vrot.slane %v8995_v18, %v11332_v3 }
 0x96e   :  { %10045 = vmatmul.mubr.msk.f32.vlgmr.msra.gmra.mrb[64].mxu1 %vm450_vm5, %v11728_v11  ;;  %10078 = vmatmul.mubr.msk.f32.vlgmr.msra.gmra.mrb[66].mxu0 %vm450_vm5, %v11692_v5  ;;  %v4567_v17 = vcombine.high %v4559_v19, %v4559_v19 }
 0x96f   :  { %10586 = vmatpush3.bf16.msra.mxu1 %v10585_v7  ;;  %10604 = vmatpush3.bf16.msra.mxu0 %v10603_v9  ;;  %v4575_v9 = vrot.slane %v4559_v19, %v11332_v3 }
 0x970   :  { %10587 = vmatprep.subr.bf16.mxu1 %v10788_v8  ;;  %10605 = vmatprep.subr.bf16.mxu0 %v10788_v8  ;;  %v4589_v45 = vrot.slane %v4567_v17, %v11332_v3 }
 0x971   :  { %10066 = vmatprep.mubr.msk.f32.mxu1 %vm10790_vm4, %v10789_v22  ;;  %10099 = vmatprep.mubr.msk.f32.mxu0 %vm10790_vm4, %v10789_v22  ;;  %v5262_v27 = vrot.slane %v4575_v9, %v10874_v13  ;;  %v4597_v36 = vcombine.high %v4575_v9, %v4575_v9 }
 0x972   :  { %v5266_v59 = vrot.slane %v4589_v45, %v10874_v13  ;;  %v4599_v20 = vcombine.high %v4589_v45, %v4589_v45 }
 0x973   :  { %10589 = vmatpush3.bf16.msra.mxu1 %v10588_v30  ;;  %10607 = vmatpush3.bf16.msra.mxu0 %v10606_v31  ;;  %v5270_v41 = vrot.slane %v4597_v36, %v10874_v13 }
 0x974   :  { %10596 = vmatprep.subr.bf16.mxu1 %v10788_v8  ;;  %10614 = vmatprep.subr.bf16.mxu0 %v10788_v8 }
 0x976   :  { %10067 = vmatmul.mubr.msk.f32.vlgmr.msra.gmra.mrb[66].mxu1 %vm450_vm5, %v11728_v11  ;;  %10100 = vmatmul.mubr.msk.f32.vlgmr.msra.gmra.mrb[68].mxu0 %vm450_vm5, %v11692_v5 }
 0x977   :  { %10598 = vmatpush3.bf16.msra.mxu1 %v10597_v37  ;;  %10616 = vmatpush3.bf16.msra.mxu0 %v10615_v38  ;;  %v4552_v37 = vcombine.high %v8995_v18, %v8995_v18 }
 0x978   :  { %10599 = vmatprep.subr.bf16.mxu1 %v10788_v8  ;;  %10617 = vmatprep.subr.bf16.mxu0 %v10788_v8 }
 0x979   :  { %10088 = vmatprep.mubr.msk.f32.mxu1 %vm10790_vm4, %v10789_v22  ;;  %10121 = vmatprep.mubr.msk.f32.mxu0 %vm10790_vm4, %v10789_v22 }
 0x97b   :  { %10601 = vmatpush3.bf16.msra.mxu1 %v10600_v42  ;;  %10619 = vmatpush3.bf16.msra.mxu0 %v10618_v44  ;;  %v4566_v42 = vrot.slane %v4552_v37, %v11332_v3  ;;  %v4664_v44 = vrot.slane %v4545_v39, %v10874_v13 }
 0x97c   :  { %10608 = vmatprep.subr.bf16.mxu1 %v10788_v8  ;;  %10626 = vmatprep.subr.bf16.mxu0 %v10788_v8 }
 0x97d   :  { %v4582_v53 = vrot.slane %v4566_v42, %v11332_v3  ;;  %v4568_v19 = vcombine.high %v4566_v42, %v4566_v42 }
 0x97e   :  { %10089 = vmatmul.mubr.msk.f32.vlgmr.msra.gmra.mrb[68].mxu1 %vm450_vm5, %v11692_v5  ;;  %10122 = vmatmul.mubr.msk.f32.vlgmr.msra.gmra.mrb[70].mxu0 %vm450_vm5, %v11728_v11 }
 0x97f   :  { %10610 = vmatpush3.bf16.msra.mxu1 %v10609_v50  ;;  %10628 = vmatpush3.bf16.msra.mxu0 %v10627_v51  ;;  %v5278_v60 = vrot.slane %v4582_v53, %v10874_v13 }
 0x980   :  { %10611 = vmatprep.subr.bf16.mxu1 %v10788_v8  ;;  %10629 = vmatprep.subr.bf16.mxu0 %v10788_v8 }
 0x981   :  { %10110 = vmatprep.mubr.msk.f32.mxu1 %vm10790_vm4, %v10789_v22  ;;  %10143 = vmatprep.mubr.msk.f32.mxu0 %vm10790_vm4, %v10789_v22 }
 0x983   :  { %10613 = vmatpush3.bf16.msra.mxu1 %v10612_v55  ;;  %10631 = vmatpush3.bf16.msra.mxu0 %v10630_v58  ;;  %v4537_v55 = vrot.slane %v4515_v46, %v11332_v3  ;;  %v4530_v58 = vrot.slane %v4514_v47, %v11332_v3 }
 0x984   :  { %10620 = vmatprep.subr.bf16.mxu1 %v10788_v8  ;;  %10157 = vmatprep.subr.mxu0 %v10789_v22 }
 0x985   :  { %v4672_v61 = vrot.slane %v4530_v58, %v10874_v13 }
 0x986   :  { %10111 = vmatmul.mubr.msk.f32.vlgmr.msra.gmra.mrb[70].mxu1 %vm450_vm5, %v11692_v5  ;;  %10144 = vmatmul.mubr.msk.f32.vlgmr.msra.gmra.mrb[72].mxu0 %vm450_vm5, %v11728_v11 }
 0x987   :  { %10622 = vmatpush3.bf16.msra.mxu1 %v10621_v34  ;;  %10132 = vmatprep.mubr.msk.f32.mxu1 %vm10790_vm4, %v10789_v22  ;;  %v4660_v34 = vrot.slane %v4537_v55, %v10874_v13 }
 0x988   :  { %10623 = vmatprep.subr.bf16.mxu1 %v10788_v8  ;;  %10159 = vmatprep.mubr.msk.f32.mxu0 %vm10790_vm4, %v10789_v22 }
 0x98b   :  { %10625 = vmatpush3.bf16.msra.mxu1 %v10624_v43 }
 0x98c   :  { %10632 = vmatprep.subr.bf16.mxu1 %v10788_v8 }
 0x98e   :  { %10133 = vmatmul.mubr.msk.f32.vlgmr.msra.gmra.mrb[72].mxu1 %vm450_vm5, %v11728_v11 }
 0x98f   :  { %10634 = vmatpush3.bf16.msra.mxu1 %v10633_v15  ;;  %10154 = vmatprep.mubr.msk.f32.mxu1 %vm10790_vm4, %v10789_v22 }
 0x990   :  { %10635 = vmatprep.subr.bf16.mxu1 %v10788_v8 }
 0x993   :  { %10637 = vmatpush3.bf16.msra.mxu1 %v10636_v2  ;;  %v4598_v2 = vcombine.high %v4582_v53, %v4582_v53 }
 0x994   :  { %10167 = vmatprep.subr.mxu1 %v10789_v22 }
 0x995   :  { %v5286_v18 = vrot.slane %v4598_v2, %v10874_v13 }
 0x996   :  { %10155 = vmatmul.mubr.msk.f32.vlgmr.msra.gmra.mrb[74].mxu1 %vm450_vm5, %v11728_v11 }
 0x997   :  { %10169 = vmatprep.mubr.msk.f32.mxu1 %vm10790_vm4, %v10789_v22 }
 0xa09   :  { %v4762_v4 = vpop.f32.mrb[50].mxu1  ;;  %v4902_v63 = vpop.f32.mrb[52].mxu0 }
 0xa0a   :  { %v9903_v10 = vpop.f32.mrb[51].mxu1  ;;  %v9925_v12 = vpop.f32.mrb[53].mxu0  ;;  %v4763_v38 = vadd.f32 %v4762_v4, %v4656_v29  ;;  %v4903_v54 = vadd.f32 %v4902_v63, %v4664_v44  ;;  %v8996_v4 = vld [vmem:[%s12434_s4 + $0x28] sm:$0xff]  ;;  %v4547_v63 = vcombine.high %v4537_v55, %v4537_v55 }
 0xa0b   :  { %v4611_v21 = vrot.slane %v8996_v4, %v11332_v3 }
 0xa0d   :  { %v4619_v45 = vcombine.high %v4611_v21, %v4611_v21 }
 0xa11   :  { %v12085_v14 = vpop.f32.mrb[52].mxu1  ;;  %v12087_v57 = vpop.f32.mrb[54].mxu0 }
 0xa12   :  { %v9914_v6 = vpop.f32.mrb[53].mxu1  ;;  %v9947_v16 = vpop.f32.mrb[55].mxu0  ;;  %v4833_v10 = vadd.f32 %v12085_v14, %v4660_v34  ;;  %v5046_v12 = vadd.f32 %v12087_v57, %v4672_v61  ;;  %v4668_v14 = vrot.slane %v4547_v63, %v10874_v13  ;;  %v4641_v61 = vrot.slane %v4619_v45, %v11332_v3 }
 0xa13   :  { %v4546_v6 = vcombine.high %v4530_v58, %v4530_v58  ;;  %v5274_v16 = vrot.slane %v4599_v20, %v10874_v13 }
 0xa15   :  { %v4680_v57 = vrot.slane %v4546_v6, %v10874_v13 }
 0xa19   :  { %v12096_v23 = vpop.f32.mrb[54].mxu1  ;;  %v12098_v24 = vpop.f32.mrb[56].mxu0 }
 0xa1a   :  { %v9936_v25 = vpop.f32.mrb[55].mxu1  ;;  %v9969_v7 = vpop.f32.mrb[57].mxu0 }
 0xa1b   :  { %v4516_v25 = vcombine.high %v4514_v47, %v4514_v47  ;;  %v4604_v47 = vcombine.high %v8996_v4, %v8996_v4 }
 0xa1d   :  { %v4544_v36 = vrot.slane %v4516_v25, %v11332_v3  ;;  %v4618_v53 = vrot.slane %v4604_v47, %v11332_v3 }
 0xa21   :  { %v12105_v30 = vpop.f32.mrb[56].mxu1  ;;  %v5365_v31 = vpop.f32.mrb[58].mxu0 }
 0xa22   :  { %v5366_v32 = vadd.f32 %v5365_v31, %v5262_v27  ;;  %v9958_v33 = vpop.f32.mrb[57].mxu1  ;;  %v9991_v35 = vpop.f32.mrb[59].mxu0  ;;  %v4596_v31 = vrot.slane %v4568_v19, %v11332_v3 }
 0xa23   :  { %v4973_v33 = vadd.f32 %v12096_v23, %v4668_v14  ;;  %v5186_v35 = vadd.f32 %v12098_v24, %v4680_v57  ;;  %v4676_v23 = vrot.slane %v4544_v36, %v10874_v13 }
 0xa24   :  { %10158 = vmatpush3.xpose.msk.msra.mxu0 %vm2217_vm6, %v5366_v32  ;;  %v4627_v32 = vrot.slane %v4611_v21, %v11332_v3  ;;  %v5282_v37 = vrot.slane %v4596_v31, %v10874_v13  ;;  %v4600_v40 = vcombine.high %v4596_v31, %v4596_v31 }
 0xa25   :  { %10162 = vmatprep.subr.mxu0 %v10789_v22 }
 0xa26   :  { %v4649_v46 = vcombine.high %v4627_v32, %v4627_v32 }
 0xa27   :  { %10160 = vmatmul.mubr.msk.f32.vlgmr.msra.gmra.mrb[74].mxu0 %vm2217_vm6, %v4763_v38  ;;  %v5862_v38 = vrot.slane %v4627_v32, %v10874_v13 }
 0xa28   :  { %10164 = vmatprep.mubr.msk.f32.mxu0 %vm10790_vm4, %v10789_v22 }
 0xa29   :  { %v12116_v48 = vpop.f32.mrb[58].mxu1  ;;  %v5505_v49 = vpop.f32.mrb[60].mxu0 }
 0xa2a   :  { %v5506_v50 = vadd.f32 %v5505_v49, %v5270_v41  ;;  %v9980_v51 = vpop.f32.mrb[59].mxu1  ;;  %v10013_v52 = vpop.f32.mrb[61].mxu0  ;;  %v5116_v49 = vadd.f32 %v12105_v30, %v4676_v23 }
 0xa2b   :  { %v5290_v51 = vrot.slane %v4600_v40, %v10874_v13  ;;  %v5870_v52 = vrot.slane %v4649_v46, %v10874_v13 }
 0xa2c   :  { %10168 = vmatpush3.xpose.msk.msra.mxu1 %vm2217_vm6, %v5506_v50  ;;  %v4548_v50 = vcombine.high %v4544_v36, %v4544_v36 }
 0xa2d   :  { %10177 = vmatprep.subr.mxu1 %v10789_v22 }
 0xa2f   :  { %10170 = vmatmul.mubr.msk.f32.vlgmr.msra.gmra.mrb[76].mxu1 %vm2217_vm6, %v4903_v54  ;;  %v4684_v54 = vrot.slane %v4548_v50, %v10874_v13 }
 0xa30   :  { %10179 = vmatprep.mubr.msk.f32.mxu1 %vm10790_vm4, %v10789_v22 }
 0xa31   :  { %v5435_v56 = vpop.f32.mrb[60].mxu1  ;;  %v5645_v43 = vpop.f32.mrb[62].mxu0 }
 0xa32   :  { %v5436_v0 = vadd.f32 %v5435_v56, %v5266_v59  ;;  %v5646_v62 = vadd.f32 %v5645_v43, %v5278_v60  ;;  %v10002_v15 = vpop.f32.mrb[61].mxu1  ;;  %v10035_v1 = vpop.f32.mrb[63].mxu0  ;;  %v4634_v56 = vrot.slane %v4618_v53, %v11332_v3  ;;  %v5256_v43 = vadd.f32 %v12116_v48, %v4684_v54 }
 0xa34   :  { %10163 = vmatpush3.xpose.msk.msra.mxu0 %vm2217_vm6, %v5436_v0  ;;  %10178 = vmatpush3.xpose.msk.msra.mxu1 %vm2217_vm6, %v5646_v62  ;;  %v5866_v0 = vrot.slane %v4641_v61, %v10874_v13  ;;  %v5878_v62 = vrot.slane %v4634_v56, %v10874_v13  ;;  %v4650_v48 = vcombine.high %v4634_v56, %v4634_v56 }
 0xa35   :  { %10172 = vmatprep.subr.mxu0 %v10789_v22  ;;  %10187 = vmatprep.subr.mxu1 %v10789_v22 }
 0xa36   :  { %v5886_v6 = vrot.slane %v4650_v48, %v10874_v13 }
 0xa37   :  { %10165 = vmatmul.mubr.msk.f32.vlgmr.msra.gmra.mrb[76].mxu0 %vm2217_vm6, %v4833_v10  ;;  %10180 = vmatmul.mubr.msk.f32.vlgmr.msra.gmra.mrb[78].mxu1 %vm2217_vm6, %v5046_v12  ;;  %v4651_v10 = vcombine.high %v4641_v61, %v4641_v61 }
 0xa38   :  { %10174 = vmatprep.mubr.msk.f32.mxu0 %vm10790_vm4, %v10789_v22  ;;  %10189 = vmatprep.mubr.msk.f32.mxu1 %vm10790_vm4, %v10789_v22 }
 0xa39   :  { %v5575_v7 = vpop.f32.mrb[62].mxu1  ;;  %v5785_v9 = vpop.f32.mrb[64].mxu0  ;;  %v5874_v12 = vrot.slane %v4651_v10, %v10874_v13 }
 0xa3a   :  { %v5576_v26 = vadd.f32 %v5575_v7, %v5274_v16  ;;  %v5786_v27 = vadd.f32 %v5785_v9, %v5286_v18  ;;  %v10024_v28 = vpop.f32.mrb[63].mxu1  ;;  %v10057_v29 = vpop.f32.mrb[65].mxu0  ;;  %v4620_v16 = vcombine.high %v4618_v53, %v4618_v53 }
 0xa3c   :  { %10173 = vmatpush3.xpose.msk.msra.mxu0 %vm2217_vm6, %v5576_v26  ;;  %10188 = vmatpush3.xpose.msk.msra.mxu1 %vm2217_vm6, %v5786_v27  ;;  %v4648_v7 = vrot.slane %v4620_v16, %v11332_v3 }
 0xa3d   :  { %10182 = vmatprep.subr.mxu0 %v10789_v22  ;;  %10197 = vmatprep.subr.mxu1 %v10789_v22 }
 0xa3e   :  { %v5882_v9 = vrot.slane %v4648_v7, %v10874_v13  ;;  %v4652_v29 = vcombine.high %v4648_v7, %v4648_v7 }
 0xa3f   :  { %10175 = vmatmul.mubr.msk.f32.vlgmr.msra.gmra.mrb[78].mxu0 %vm2217_vm6, %v4973_v33  ;;  %10190 = vmatmul.mubr.msk.f32.vlgmr.msra.gmra.mrb[80].mxu1 %vm2217_vm6, %v5186_v35 }
 0xa40   :  { %10184 = vmatprep.mubr.msk.f32.mxu0 %vm10790_vm4, %v10789_v22  ;;  %10199 = vmatprep.mubr.msk.f32.mxu1 %vm10790_vm4, %v10789_v22  ;;  %v5890_v31 = vrot.slane %v4652_v29, %v10874_v13 }
 0xa41   :  { %v5715_v24 = vpop.f32.mrb[64].mxu1  ;;  %v5965_v39 = vpop.f32.mrb[66].mxu0 }
 0xa42   :  { %v5716_v41 = vadd.f32 %v5715_v24, %v5282_v37  ;;  %v5966_v17 = vadd.f32 %v5965_v39, %v5862_v38  ;;  %v10046_v42 = vpop.f32.mrb[65].mxu1  ;;  %v10079_v44 = vpop.f32.mrb[67].mxu0 }
 0xa44   :  { %10183 = vmatpush3.xpose.msk.msra.mxu0 %vm2217_vm6, %v5716_v41  ;;  %10198 = vmatpush3.msra.mxu1 %v5966_v17 }
 0xa45   :  { %10192 = vmatprep.subr.mxu0 %v10789_v22  ;;  %10207 = vmatprep.subr.mxu1 %v10789_v22 }
 0xa47   :  { %10185 = vmatmul.mubr.msk.f32.vlgmr.msra.gmra.mrb[80].mxu0 %vm2217_vm6, %v5116_v49 }
 0xa48   :  { %10194 = vmatprep.mubr.msk.f32.mxu0 %vm10790_vm4, %v10789_v22 }
 0xa49   :  { %v5855_v30 = vpop.f32.mrb[66].mxu1  ;;  %v6105_v55 = vpop.f32.mrb[68].mxu0 }
 0xa4a   :  { %v5856_v58 = vadd.f32 %v5855_v30, %v5290_v51  ;;  %v12180_v59 = vadd.f32 %v6105_v55, %v5870_v52  ;;  %v10068_v60 = vpop.f32.mrb[67].mxu1  ;;  %v10101_v34 = vpop.f32.mrb[69].mxu0 }
 0xa4c   :  { %10193 = vmatpush3.xpose.msk.msra.mxu0 %vm2217_vm6, %v5856_v58 }
 0xa4d   :  { %10202 = vmatprep.subr.mxu0 %v10789_v22 }
 0xa4f   :  { %10195 = vmatmul.mubr.msk.f32.vlgmr.msra.gmra.mrb[82].mxu0 %vm2217_vm6, %v5256_v43 }
 0xa50   :  { %10204 = vmatprep.mubr.msk.f32.mxu0 %vm10790_vm4, %v10789_v22 }
 0xa51   :  { %v6035_v15 = vpop.f32.mrb[68].mxu1  ;;  %v6245_v1 = vpop.f32.mrb[70].mxu0 }
 0xa52   :  { %v6036_v20 = vadd.f32 %v6035_v15, %v5866_v0  ;;  %v12192_v2 = vadd.f32 %v6245_v1, %v5878_v62  ;;  %v10090_v4 = vpop.f32.mrb[69].mxu1  ;;  %v10123_v63 = vpop.f32.mrb[71].mxu0 }
 0xa54   :  { %10203 = vmatpush3.msra.mxu0 %v6036_v20 }
 0xa55   :  { %10212 = vmatprep.subr.mxu0 %v10789_v22 }
 0xa59   :  { %v6175_v18 = vpop.f32.mrb[70].mxu1  ;;  %v6385_v19 = vpop.f32.mrb[72].mxu0 }
 0xa5a   :  { %v12197_v21 = vadd.f32 %v6175_v18, %v5874_v12  ;;  %v12199_v14 = vadd.f32 %v6385_v19, %v5886_v6  ;;  %v10112_v57 = vpop.f32.mrb[71].mxu1  ;;  %v10145_v25 = vpop.f32.mrb[73].mxu0 }
 0xa61   :  { %v6315_v26 = vpop.f32.mrb[72].mxu1 }
 0xa62   :  { %v12203_v27 = vadd.f32 %v6315_v26, %v5882_v9  ;;  %v10134_v28 = vpop.f32.mrb[73].mxu1 }
 0xa69   :  { %v6455_v32 = vpop.f32.mrb[74].mxu1 }
 0xa6a   :  { %v12206_v33 = vadd.f32 %v6455_v32, %v5890_v31  ;;  %v10156_v35 = vpop.f32.mrb[75].mxu1 }
 0xafa   :  { %v6531_v36 = vpop.f32.mrb[74].mxu0 }
 0xafb   :  { %v7067_v37 = vmul.f32 0.35355338, %v6531_v36  ;;  %v10161_v38 = vpop.f32.mrb[75].mxu0 }
 0xafd   :  { %v7075_v23 = vsel %vm2217_vm6, %v7067_v37, -inf }
 0xafe   :  { %7076 = vmax.xlane.f32.xlu1 %v7075_v23 }
 0xb02   :  { %v6683_v3 = vpop.f32.mrb[76].mxu1 }
 0xb03   :  { %v7069_v24 = vmul.f32 0.35355338, %v6683_v3  ;;  %v10171_v39 = vpop.f32.mrb[77].mxu1 }
 0xb05   :  { %v7081_v40 = vsel %vm2217_vm6, %v7069_v24, -inf }
 0xb06   :  { %7082 = vmax.xlane.f32.xlu1 %v7081_v40 }
 0xb0a   :  { %v6607_v41 = vpop.f32.mrb[76].mxu0  ;;  %v6835_v17 = vpop.f32.mrb[78].mxu1 }
 0xb0b   :  { %v7068_v42 = vmul.f32 0.35355338, %v6607_v41  ;;  %v7071_v13 = vmul.f32 0.35355338, %v6835_v17  ;;  %v10166_v44 = vpop.f32.mrb[77].mxu0  ;;  %v10181_v46 = vpop.f32.mrb[79].mxu1 }
 0xb0d   :  { %v7087_v47 = vsel %vm2217_vm6, %v7071_v13, -inf  ;;  %v7078_v49 = vsel %vm2217_vm6, %v7068_v42, -inf }
 0xb0e   :  { %7088 = vmax.xlane.f32.xlu1 %v7087_v47  ;;  %7079 = vmax.xlane.f32.xlu0 %v7078_v49 }
 0xb12   :  { %v6759_v50 = vpop.f32.mrb[78].mxu0  ;;  %v6987_v51 = vpop.f32.mrb[80].mxu1 }
 0xb13   :  { %v7070_v52 = vmul.f32 0.35355338, %v6759_v50  ;;  %v7073_v45 = vmul.f32 0.35355338, %v6987_v51  ;;  %v10176_v53 = vpop.f32.mrb[79].mxu0  ;;  %v10191_v54 = vpop.f32.mrb[81].mxu1 }
 0xb15   :  { %v7093_v30 = vsel %vm2217_vm6, %v7073_v45, -inf  ;;  %v7084_v55 = vsel %vm2217_vm6, %v7070_v52, -inf }
 0xb16   :  { %7094 = vmax.xlane.f32.xlu1 %v7093_v30  ;;  %7085 = vmax.xlane.f32.xlu0 %v7084_v55 }
 0xb1a   :  { %v6911_v58 = vpop.f32.mrb[80].mxu0 }
 0xb1b   :  { %v7072_v60 = vmul.f32 0.35355338, %v6911_v58  ;;  %v10186_v34 = vpop.f32.mrb[81].mxu0 }
 0xb1d   :  { %v7090_v61 = vsel %vm2217_vm6, %v7072_v60, -inf }
 0xb1e   :  { %7091 = vmax.xlane.f32.xlu0 %v7090_v61 }
 0xb22   :  { %v7063_v56 = vpop.f32.mrb[82].mxu0 }
 0xb23   :  { %v7074_v43 = vmul.f32 0.35355338, %v7063_v56  ;;  %v10196_v0 = vpop.f32.mrb[83].mxu0 }
 0xb25   :  { %v7096_v62 = vsel %vm2217_vm6, %v7074_v43, -inf }
 0xb26   :  { %7097 = vmax.xlane.f32.xlu0 %v7096_v62 }
 0xb8b   :  { %v7077_v15 = vpop.xlane.xlu1 %7076 }
 0xb8c   :  { %v7099_v1 = vsub.f32 %v7067_v37, %v7077_v15 }
 0xb8e   :  { %v7107_v20 = vmul.f32 1.442695, %v7099_v1 }
 0xb90   :  { %10720 = vpow2.f32 %v7107_v20 }
 0xb93   :  { %v7083_v4 = vpop.xlane.xlu1 %7082 }
 0xb94   :  { %v7101_v63 = vsub.f32 %v7069_v24, %v7083_v4 }
 0xb96   :  { %v7111_v10 = vmul.f32 1.442695, %v7101_v63 }
 0xb98   :  { %10722 = vpow2.f32 %v7111_v10  ;;  %v9045_v10 = vld [vmem:[%s12435_s5 + $0x40] sm:$0xff] }
 0xb9a   :  { %v10721_v48 = vpop.eup %10720 }
 0xb9b   :  { %v7089_v12 = vpop.xlane.xlu1 %7088  ;;  %v7080_v6 = vpop.xlane.xlu0 %7079  ;;  %v7123_v16 = vsel %vm2217_vm6, %v10721_v48, 0.0 }
 0xb9c   :  { %v7103_v18 = vsub.f32 %v7071_v13, %v7089_v12  ;;  %v7100_v19 = vsub.f32 %v7068_v42, %v7080_v6  ;;  %7124 = vadd.xlane.f32.xlu1 %v7123_v16  ;;  %v9049_v16 = vld [vmem:[%s12435_s5 + $0x60] sm:$0xff] }
 0xb9e   :  { %v7115_v57 = vmul.f32 1.442695, %v7103_v18  ;;  %v7109_v25 = vmul.f32 1.442695, %v7100_v19 }
 0xba0   :  { %10724 = vpow2.f32 %v7115_v57  ;;  %v9051_v57 = vld [vmem:[%s12435_s5 + $0x70] sm:$0xff] }
 0xba1   :  { %10726 = vpow2.f32 %v7109_v25 }
 0xba2   :  { %v10723_v7 = vpop.eup %10722 }
 0xba3   :  { %v7095_v9 = vpop.xlane.xlu1 %7094  ;;  %v7086_v26 = vpop.xlane.xlu0 %7085  ;;  %v7129_v28 = vsel %vm2217_vm6, %v10723_v7, 0.0 }
 0xba4   :  { %v7105_v29 = vsub.f32 %v7073_v45, %v7095_v9  ;;  %v7102_v31 = vsub.f32 %v7070_v52, %v7086_v26  ;;  %7130 = vadd.xlane.f32.xlu1 %v7129_v28 }
 0xba6   :  { %v7119_v32 = vmul.f32 1.442695, %v7105_v29  ;;  %v7113_v35 = vmul.f32 1.442695, %v7102_v31  ;;  %v9050_v31 = vld [vmem:[%s12435_s5 + $0x68] sm:$0xff] }
 0xba8   :  { %10728 = vpow2.f32 %v7119_v32 }
 0xba9   :  { %10730 = vpow2.f32 %v7113_v35 }
 0xbaa   :  { %v10725_v36 = vpop.eup %10724 }
 0xbab   :  { %v10727_v37 = vpop.eup %10726  ;;  %v7092_v38 = vpop.xlane.xlu0 %7091  ;;  %v7135_v23 = vsel %vm2217_vm6, %v10725_v36, 0.0 }
 0xbac   :  { %v7104_v3 = vsub.f32 %v7072_v60, %v7092_v38  ;;  %7136 = vadd.xlane.f32.xlu1 %v7135_v23  ;;  %v7126_v24 = vsel %vm2217_vm6, %v10727_v37, 0.0 }
 0xbad   :  { %7127 = vadd.xlane.f32.xlu0 %v7126_v24 }
 0xbae   :  { %v7117_v39 = vmul.f32 1.442695, %v7104_v3 }
 0xbb0   :  { %10732 = vpow2.f32 %v7117_v39 }
 0xbb2   :  { %v10729_v40 = vpop.eup %10728 }
 0xbb3   :  { %v10731_v41 = vpop.eup %10730  ;;  %v7098_v17 = vpop.xlane.xlu0 %7097  ;;  %v7141_v42 = vsel %vm2217_vm6, %v10729_v40, 0.0 }
 0xbb4   :  { %v7106_v13 = vsub.f32 %v7074_v43, %v7098_v17  ;;  %7142 = vadd.xlane.f32.xlu1 %v7141_v42  ;;  %v7132_v44 = vsel %vm2217_vm6, %v10731_v41, 0.0 }
 0xbb5   :  { %7133 = vadd.xlane.f32.xlu0 %v7132_v44 }
 0xbb6   :  { %v7121_v46 = vmul.f32 1.442695, %v7106_v13 }
 0xbb8   :  { %10734 = vpow2.f32 %v7121_v46 }
 0xbba   :  { %v10733_v47 = vpop.eup %10732 }
 0xbbb   :  { %v7138_v49 = vsel %vm2217_vm6, %v10733_v47, 0.0 }
 0xbbc   :  { %7139 = vadd.xlane.f32.xlu0 %v7138_v49 }
 0xbc2   :  { %v10735_v50 = vpop.eup %10734 }
 0xbc3   :  { %v7144_v51 = vsel %vm2217_vm6, %v10735_v50, 0.0 }
 0xbc4   :  { %7145 = vadd.xlane.f32.xlu0 %v7144_v51 }
 0xc29   :  { %v7125_v52 = vpop.xlane.xlu1 %7124 }
 0xc2a   :  { %10736 = vrcp.f32 %v7125_v52 }
 0xc31   :  { %v7131_v45 = vpop.xlane.xlu1 %7130 }
 0xc32   :  { %10738 = vrcp.f32 %v7131_v45 }
 0xc34   :  { %v10737_v53 = vpop.eup %10736 }
 0xc35   :  { %v7155_v54 = vmul.f32 %v10737_v53, %v10721_v48  ;;  %v9047_v48 = vld [vmem:[%s12435_s5 + $0x50] sm:$0xff] }
 0xc37   :  { %10200 = vmatmul.mubr.msk.f32.vlgmr.msra.gmra.mrb[82].mxu1 %vm2217_vm6, %v7155_v54 }
 0xc38   :  { %10208 = vmatpush3.msra.mxu1 %v12180_v59  ;;  %10209 = vmatprep.mubr.msk.f32.mxu1 %vm10790_vm4, %v10789_v22 }
 0xc39   :  { %v7137_v30 = vpop.xlane.xlu1 %7136  ;;  %10217 = vmatprep.subr.mxu1 %v10789_v22 }
 0xc3a   :  { %10740 = vrcp.f32 %v7137_v30  ;;  %v7128_v55 = vpop.xlane.xlu0 %7127  ;;  %v9061_v30 = vld [vmem:[%s12439_s9 + $0x7] ss:$0 sm:$0xff] }
 0xc3b   :  { %10742 = vrcp.f32 %v7128_v55 }
 0xc3c   :  { %v10739_v58 = vpop.eup %10738 }
 0xc3d   :  { %v7157_v60 = vmul.f32 %v10739_v58, %v10723_v7  ;;  %v9048_v7 = vld [vmem:[%s12435_s5 + $0x58] sm:$0xff] }
 0xc3f   :  { %10210 = vmatmul.mubr.msk.f32.vlgmr.msra.gmra.mrb[84].mxu1 %vm2217_vm6, %v7157_v60 }
 0xc40   :  { %10218 = vmatpush3.msra.mxu1 %v12192_v2  ;;  %10219 = vmatprep.mubr.msk.f32.mxu1 %vm10790_vm4, %v10789_v22 }
 0xc41   :  { %v7143_v34 = vpop.xlane.xlu1 %7142  ;;  %10227 = vmatprep.subr.mxu1 %v10789_v22 }
 0xc42   :  { %10744 = vrcp.f32 %v7143_v34  ;;  %v7134_v59 = vpop.xlane.xlu0 %7133 }
 0xc43   :  { %10746 = vrcp.f32 %v7134_v59 }
 0xc44   :  { %v10741_v61 = vpop.eup %10740 }
 0xc45   :  { %v10743_v56 = vpop.eup %10742  ;;  %v7159_v43 = vmul.f32 %v10741_v61, %v10725_v36 }
 0xc46   :  { %v7156_v0 = vmul.f32 %v10743_v56, %v10727_v37  ;;  %v9052_v37 = vld [vmem:[%s12435_s5 + $0x78] sm:$0xff] }
 0xc47   :  { %10220 = vmatmul.mubr.msk.f32.vlgmr.msra.gmra.mrb[86].mxu1 %vm2217_vm6, %v7159_v43 }
 0xc48   :  { %10205 = vmatmul.mubr.msk.f32.vlgmr.msra.gmra.mrb[84].mxu0 %vm2217_vm6, %v7156_v0  ;;  %10228 = vmatpush3.msra.mxu1 %v12199_v14 }
 0xc49   :  { %10213 = vmatpush3.msra.mxu0 %v12197_v21  ;;  %v7140_v2 = vpop.xlane.xlu0 %7139  ;;  %10214 = vmatprep.mubr.msk.f32.mxu0 %vm10790_vm4, %v10789_v22 }
 0xc4a   :  { %10748 = vrcp.f32 %v7140_v2  ;;  %10222 = vmatprep.subr.mxu0 %v10789_v22  ;;  %10229 = vmatprep.mubr.msk.f32.mxu1 %vm10790_vm4, %v10789_v22 }
 0xc4b   :  { %10237 = vmatprep.subr.mxu1 %v10789_v22 }
 0xc4c   :  { %v10745_v62 = vpop.eup %10744 }
 0xc4d   :  { %v10747_v15 = vpop.eup %10746  ;;  %v7161_v1 = vmul.f32 %v10745_v62, %v10729_v40 }
 0xc4e   :  { %v7158_v20 = vmul.f32 %v10747_v15, %v10731_v41 }
 0xc4f   :  { %10230 = vmatmul.mubr.msk.f32.vlgmr.msra.gmra.mrb[88].mxu1 %vm2217_vm6, %v7161_v1 }
 0xc50   :  { %10215 = vmatmul.mubr.msk.f32.vlgmr.msra.gmra.mrb[86].mxu0 %vm2217_vm6, %v7158_v20  ;;  %10239 = vmatprep.mubr.msk.f32.mxu1 %vm10790_vm4, %v10789_v22 }
 0xc51   :  { %10223 = vmatpush3.msra.mxu0 %v12203_v27  ;;  %v7146_v21 = vpop.xlane.xlu0 %7145  ;;  %10224 = vmatprep.mubr.msk.f32.mxu0 %vm10790_vm4, %v10789_v22 }
 0xc52   :  { %10750 = vrcp.f32 %v7146_v21  ;;  %10232 = vmatprep.subr.mxu0 %v10789_v22  ;;  %10238 = vmatpush3.msra.mxu1 %v9045_v10 }
 0xc53   :  { %10247 = vmatprep.subr.mxu1 %v10789_v22 }
 0xc54   :  { %v10749_v14 = vpop.eup %10748 }
 0xc55   :  { %v7160_v4 = vmul.f32 %v10749_v14, %v10733_v47 }
 0xc57   :  { %10225 = vmatmul.mubr.msk.f32.vlgmr.msra.gmra.mrb[88].mxu0 %vm2217_vm6, %v7160_v4 }
 0xc58   :  { %10233 = vmatpush3.msra.mxu0 %v12206_v33  ;;  %10234 = vmatprep.mubr.msk.f32.mxu0 %vm10790_vm4, %v10789_v22  ;;  %v9046_v33 = vld [vmem:[%s12435_s5 + $0x48] sm:$0xff] }
 0xc59   :  { %10242 = vmatprep.subr.mxu0 %v10789_v22 }
 0xc5c   :  { %v10751_v63 = vpop.eup %10750 }
 0xc5d   :  { %v7162_v27 = vmul.f32 %v10751_v63, %v10735_v50 }
 0xc5f   :  { %10235 = vmatmul.mubr.msk.f32.vlgmr.msra.gmra.mrb[90].mxu0 %vm2217_vm6, %v7162_v27 }
 0xc60   :  { %10244 = vmatprep.mubr.msk.f32.mxu0 %vm10790_vm4, %v10789_v22  ;;  %10243 = vmatpush3.msra.mxu0 %v9046_v33 }
 0xc61   :  { %10252 = vmatprep.subr.mxu0 %v10789_v22 }
 0xd0a   :  { %v7232_v12 = vpop.f32.mrb[82].mxu1 }
 0xd0b   :  { %v10201_v6 = vpop.f32.mrb[83].mxu1  ;;  %10240 = vmatmul.mubr.msk.f32.vlgmr.msra.gmra.mrb[90].mxu1 %vm2217_vm6, %v7232_v12 }
 0xd0c   :  { %10248 = vmatpush3.msra.mxu1 %v9047_v48  ;;  %10249 = vmatprep.mubr.msk.f32.mxu1 %vm10790_vm4, %v10789_v22  ;;  %v9064_v6 = vld [vmem:[%s12436_s6 + $0x20] sm:$0xff] }
 0xd0d   :  { %10257 = vmatprep.subr.mxu1 %v10789_v22 }
 0xd12   :  { %v7378_v18 = vpop.f32.mrb[84].mxu1 }
 0xd13   :  { %v10211_v19 = vpop.f32.mrb[85].mxu1  ;;  %10250 = vmatmul.mubr.msk.f32.vlgmr.msra.gmra.mrb[92].mxu1 %vm2217_vm6, %v7378_v18 }
 0xd14   :  { %10258 = vmatpush3.msra.mxu1 %v9049_v16  ;;  %10259 = vmatprep.mubr.msk.f32.mxu1 %vm10790_vm4, %v10789_v22  ;;  %v9065_v16 = vld [vmem:[%s12436_s6 + $0x28] sm:$0xff]  ;;  %v9067_v19 = vld [vmem:[%s12436_s6 + $0x38] sm:$0xff] }
 0xd15   :  { %10267 = vmatprep.subr.mxu1 %v10789_v22  ;;  %v10638_v18 = vpack.c.bf16 %v9065_v16, %v9064_v6  ;;  %v8652_v16 = vld [vmem:[%s12438_s8] sm:$0xff] }
 0xd1a   :  { %v7524_v25 = vpop.f32.mrb[86].mxu1 }
 0xd1b   :  { %v7305_v9 = vpop.f32.mrb[84].mxu0  ;;  %v10221_v26 = vpop.f32.mrb[87].mxu1  ;;  %10260 = vmatmul.mubr.msk.f32.vlgmr.msra.gmra.mrb[94].mxu1 %vm2217_vm6, %v7524_v25  ;;  %v9071_v25 = vld [vmem:[%s12437_s7 + $0x40] sm:$0xff] }
 0xd1c   :  { %v10206_v28 = vpop.f32.mrb[85].mxu0  ;;  %10245 = vmatmul.mubr.msk.f32.vlgmr.msra.gmra.mrb[92].mxu0 %vm2217_vm6, %v7305_v9  ;;  %10268 = vmatpush3.msra.mxu1 %v9051_v57  ;;  %v9073_v9 = vld [vmem:[%s12437_s7 + $0x50] sm:$0xff] }
 0xd1d   :  { %10253 = vmatpush3.msra.mxu0 %v9048_v7  ;;  %10254 = vmatprep.mubr.msk.f32.mxu0 %vm10790_vm4, %v10789_v22  ;;  %v9072_v7 = vld [vmem:[%s12437_s7 + $0x48] sm:$0xff]  ;;  %v9074_v28 = vld [vmem:[%s12437_s7 + $0x58] sm:$0xff] }
 0xd1e   :  { %10269 = vmatprep.mubr.msk.f32.mxu1 %vm10790_vm4, %v10789_v22  ;;  %10262 = vmatprep.subr.mxu0 %v10789_v22  ;;  %v10646_v26 = vpack.c.bf16 %v9072_v7, %v9071_v25 }
 0xd1f   :  { %10639 = vmatprep.subr.bf16.mxu1 %v10638_v18 }
 0xd22   :  { %v7670_v29 = vpop.f32.mrb[88].mxu1 }
 0xd23   :  { %v7451_v32 = vpop.f32.mrb[86].mxu0  ;;  %v10231_v35 = vpop.f32.mrb[89].mxu1  ;;  %10270 = vmatmul.mubr.msk.f32.vlgmr.msra.gmra.mrb[96].mxu1 %vm2217_vm6, %v7670_v29  ;;  %v10650_v29 = vpack.c.bf16 %v9074_v28, %v9073_v9 }
 0xd24   :  { %v10216_v36 = vpop.f32.mrb[87].mxu0  ;;  %10255 = vmatmul.mubr.msk.f32.vlgmr.msra.gmra.mrb[94].mxu0 %vm2217_vm6, %v7451_v32  ;;  %10641 = vmatpush3.bf16.msra.mxu1 %v10638_v18  ;;  %v9076_v32 = vld [vmem:[%s12437_s7 + $0x68] sm:$0xff] }
 0xd25   :  { %10263 = vmatpush3.msra.mxu0 %v9050_v31  ;;  %10264 = vmatprep.mubr.msk.f32.mxu0 %vm10790_vm4, %v10789_v22  ;;  %v9075_v31 = vld [vmem:[%s12437_s7 + $0x60] sm:$0xff]  ;;  %v8653_v18 = vld [vmem:[%s12438_s8 + $0x8] sm:$0xff] }
 0xd26   :  { %10272 = vmatprep.subr.mxu0 %v10789_v22  ;;  %v10654_v35 = vpack.c.bf16 %v9076_v32, %v9075_v31 }
 0xd2a   :  { %v7597_v38 = vpop.f32.mrb[88].mxu0 }
 0xd2b   :  { %v10226_v23 = vpop.f32.mrb[89].mxu0  ;;  %10265 = vmatmul.mubr.msk.f32.vlgmr.msra.gmra.mrb[96].mxu0 %vm2217_vm6, %v7597_v38 }
 0xd2c   :  { %10273 = vmatpush3.msra.mxu0 %v9052_v37  ;;  %10274 = vmatprep.mubr.msk.f32.mxu0 %vm10790_vm4, %v10789_v22 }
 0xd2d   :  { %10647 = vmatprep.subr.bf16.mxu0 %v10646_v26 }
 0xd32   :  { %v7743_v3 = vpop.f32.mrb[90].mxu0 }
 0xd33   :  { %v10236_v24 = vpop.f32.mrb[91].mxu0  ;;  %10275 = vmatmul.mubr.msk.f32.vlgmr.msra.gmra.mrb[98].mxu0 %vm2217_vm6, %v7743_v3 }
 0xd34   :  { %10649 = vmatpush3.bf16.msra.mxu0 %v10646_v26 }
 0xd35   :  { %10651 = vmatprep.subr.bf16.mxu0 %v10650_v29 }
 0xd38   :  { %10653 = vmatpush3.bf16.msra.mxu0 %v10650_v29 }
 0xd39   :  { %10655 = vmatprep.subr.bf16.mxu0 %v10654_v35 }
 0xd3c   :  { %10657 = vmatpush3.bf16.msra.mxu0 %v10654_v35 }
 0xdde   :  { %v7825_v39 = vpop.f32.mrb[90].mxu1 }
 0xddf   :  { %v10241_v40 = vpop.f32.mrb[91].mxu1  ;;  %v8340_v46 = vsel %vm450_vm5, %v7825_v39, 0.0 }
 0xde6   :  { %v7971_v41 = vpop.f32.mrb[92].mxu1 }
 0xde7   :  { %v10251_v17 = vpop.f32.mrb[93].mxu1  ;;  %v8343_v51 = vsel %vm450_vm5, %v7971_v41, 0.0 }
 0xdee   :  { %v8117_v42 = vpop.f32.mrb[94].mxu1 }
 0xdef   :  { %v7898_v13 = vpop.f32.mrb[92].mxu0  ;;  %v10261_v44 = vpop.f32.mrb[95].mxu1  ;;  %v8347_v56 = vsel %vm450_vm5, %v8117_v42, 0.0 }
 0xdf0   :  { %v8341_v47 = vsel %vm450_vm5, %v7898_v13, 0.0  ;;  %v10246_v49 = vpop.f32.mrb[93].mxu0 }
 0xdf1   :  { %v8342_v50 = vadd.f32 %v8341_v47, %v8340_v46  ;;  %v9062_v47 = vld [vmem:[%s12439_s9 + $0x8] ss:$0 sm:$0xff] }
 0xdf3   :  { %v8344_v52 = vadd.f32 %v8343_v51, %v8342_v50  ;;  %v9063_v51 = vld [vmem:[%s12439_s9 + $0x9] ss:$0 sm:$0xff] }
 0xdf6   :  { %v8263_v45 = vpop.f32.mrb[96].mxu1 }
 0xdf7   :  { %v8044_v53 = vpop.f32.mrb[94].mxu0  ;;  %v10271_v54 = vpop.f32.mrb[97].mxu1  ;;  %v8350_v1 = vsel %vm450_vm5, %v8263_v45, 0.0 }
 0xdf8   :  { %v8345_v55 = vsel %vm450_vm5, %v8044_v53, 0.0  ;;  %v10256_v58 = vpop.f32.mrb[95].mxu0 }
 0xdf9   :  { %v8346_v60 = vadd.f32 %v8345_v55, %v8344_v52 }
 0xdfb   :  { %v8358_v34 = vadd.f32 %v9061_v30, %v8346_v60 }
 0xdfd   :  { %v12318_v59 = vadd.f32 %v8358_v34, %v11692_v5  ;;  %v9077_v34 = vld [vmem:[%s12437_s7 + $0x70] sm:$0xff] }
 0xdfe   :  { %v8190_v61 = vpop.f32.mrb[96].mxu0 }
 0xdff   :  { %v8348_v43 = vsel %vm450_vm5, %v8190_v61, 0.0  ;;  %v8362_v0 = vsel %vm450_vm5, %v12318_v59, 0.0  ;;  %v10266_v2 = vpop.f32.mrb[97].mxu0  ;;  %v8370_v62 = vmul.f32 %v12318_v59, %v12318_v59 }
 0xe00   :  { %v8349_v15 = vadd.f32 %v8348_v43, %v8347_v56  ;;  %8363 = vadd.xlane.f32.xlu1 %v8362_v0  ;;  %v9068_v56 = vld [vmem:[%s12439_s9 + $0xc] ss:$0 sm:$0xff] }
 0xe01   :  { %v8372_v5 = vsel %vm450_vm5, %v8370_v62, 0.0 }
 0xe02   :  { %v8351_v20 = vadd.f32 %v8350_v1, %v8349_v15  ;;  %v9079_v1 = vld [vmem:[%s12439_s9 + $0xd] ss:$0 sm:$0xff] }
 0xe04   :  { %8373 = vadd.xlane.f32.xlu1 %v8372_v5 }
 0xe06   :  { %v8336_v21 = vpop.f32.mrb[98].mxu0 }
 0xe07   :  { %v8352_v14 = vsel %vm450_vm5, %v8336_v21, 0.0  ;;  %v10276_v4 = vpop.f32.mrb[99].mxu0 }
 0xe08   :  { %v8353_v63 = vadd.f32 %v8352_v14, %v8351_v20 }
 0xe0a   :  { %v8359_v27 = vadd.f32 %v9061_v30, %v8353_v63 }
 0xe0c   :  { %v8361_v10 = vadd.f32 %v8359_v27, %v11728_v11  ;;  %v9066_v11 = vld [vmem:[%s12436_s6 + $0x30] sm:$0xff] }
 0xe0d   :  { %v10642_v57 = vpack.c.bf16 %v9067_v19, %v9066_v11  ;;  %v8654_v11 = vld [vmem:[%s12438_s8 + $0x10] sm:$0xff]  ;;  %v10663_v19 = vpack.c.bf16 %v8653_v18, %v8652_v16 }
 0xe0e   :  { %v8365_v33 = vsel %vm450_vm5, %v8361_v10, 0.0  ;;  %v8371_v48 = vmul.f32 %v8361_v10, %v8361_v10 }
 0xe0f   :  { %8366 = vadd.xlane.f32.xlu0 %v8365_v33  ;;  %10643 = vmatprep.subr.bf16.mxu1 %v10642_v57 }
 0xe10   :  { %v8375_v12 = vsel %vm450_vm5, %v8371_v48, 0.0  ;;  %10645 = vmatpush3.bf16.msra.mxu1 %v10642_v57  ;;  %v8655_v57 = vld [vmem:[%s12438_s8 + $0x18] sm:$0xff] }
 0xe11   :  { %10662 = vmatprep.subr.bf16.mxu1 %v10788_v8  ;;  %v10666_v25 = vpack.c.bf16 %v8655_v57, %v8654_v11 }
 0xe13   :  { %8376 = vadd.xlane.f32.xlu0 %v8375_v12 }
 0xe8d   :  { %v8364_v36 = vpop.xlane.xlu1 %8363 }
 0xe8e   :  { %v8368_v37 = vmul.f32 0.03125, %v8364_v36 }
 0xe90   :  { %v8380_v23 = vmul.f32 %v8368_v37, %v8368_v37  ;;  %v8384_v42 = vsub.f32 %v12318_v59, %v8368_v37  ;;  %v9078_v59 = vld [vmem:[%s12437_s7 + $0x78] sm:$0xff] }
 0xe91   :  { %v8374_v38 = vpop.xlane.xlu1 %8373  ;;  %v10658_v61 = vpack.c.bf16 %v9078_v59, %v9077_v34 }
 0xe92   :  { %v8378_v3 = vmul.f32 0.03125, %v8374_v38 }
 0xe93   :  { %10659 = vmatprep.subr.bf16.mxu0 %v10658_v61 }
 0xe94   :  { %v8382_v24 = vsub.f32 %v8378_v3, %v8380_v23  ;;  %10661 = vmatpush3.bf16.msra.mxu0 %v10658_v61 }
 0xe96   :  { %v8386_v39 = vadd.f32 1e-05, %v8382_v24 }
 0xe98   :  { %10752 = vrsqrt.f32 %v8386_v39 }
 0xe9c   :  { %v8367_v40 = vpop.xlane.xlu0 %8366 }
 0xe9d   :  { %v8369_v41 = vmul.f32 0.03125, %v8367_v40 }
 0xe9f   :  { %v8381_v13 = vmul.f32 %v8369_v41, %v8369_v41  ;;  %v8385_v54 = vsub.f32 %v8361_v10, %v8369_v41  ;;  %v9082_v41 = vld [vmem:[%s12439_s9 + $0xa] ss:$0 sm:$0xff] }
 0xea0   :  { %v8377_v17 = vpop.xlane.xlu0 %8376 }
 0xea1   :  { %v8379_v44 = vmul.f32 0.03125, %v8377_v17 }
 0xea2   :  { %v10753_v46 = vpop.eup %10752 }
 0xea3   :  { %v8383_v49 = vsub.f32 %v8379_v44, %v8381_v13  ;;  %v8390_v50 = vmul.f32 %v10753_v46, %v8384_v42  ;;  %v9083_v44 = vld [vmem:[%s12439_s9 + $0xb] ss:$0 sm:$0xff] }
 0xea5   :  { %v8387_v52 = vadd.f32 1e-05, %v8383_v49  ;;  %v8396_v45 = vmul.f32 %v9062_v47, %v8390_v50 }
 0xea7   :  { %10754 = vrsqrt.f32 %v8387_v52  ;;  %v8402_v53 = vadd.f32 %v9063_v51, %v8396_v45 }
 0xea9   :  { %10285 = vmatprep.mubr.msk.f32.mxu1 %vm450_vm5, %v8402_v53 }
 0xeb1   :  { %v10755_v30 = vpop.eup %10754 }
 0xeb2   :  { %v8391_v55 = vmul.f32 %v10755_v30, %v8385_v54 }
 0xeb4   :  { %v8397_v58 = vmul.f32 %v9062_v47, %v8391_v55 }
 0xeb6   :  { %v8403_v60 = vadd.f32 %v9063_v51, %v8397_v58 }
 0xeb8   :  { %10286 = vmatmul.mubr.msk.f32.vlgmr.msra.gmra.mrb[98].mxu1 %vm450_vm5, %v8403_v60 }
 0xeb9   :  { %10315 = vmatprep.mubr.msk.f32.mxu1 %vm10790_vm4, %v10789_v22  ;;  %10664 = vmatpush3.bf16.msra.mxu1 %v10663_v19 }
 0xeba   :  { %10665 = vmatprep.subr.bf16.mxu1 %v10788_v8 }
 0xebd   :  { %10667 = vmatpush3.bf16.msra.mxu1 %v10666_v25 }
 0xf8b   :  { %v10287_v43 = vpop.f32.mrb[98].mxu1 }
 0xf8c   :  { %v8491_v0 = vadd.f32 %v10287_v43, %v9068_v56  ;;  %v8485_v2 = vpop.f32.mrb[99].mxu1 }
 0xf8d   :  { %v8486_v62 = vadd.f32 %v9068_v56, %v8485_v2 }
 0xf8e   :  { %v8495_v15 = vmax.f32 %v8491_v0, 0.0 }
 0xf8f   :  { %v8494_v22 = vmax.f32 %v8486_v62, 0.0 }
 0xf91   :  { %10304 = vmatprep.mubr.msk.f32.mxu0 %vm4265_vm7, %v8494_v22  ;;  %v9084_v22 = vld [vmem:[%s12439_s9 + $0xe] ss:$0 sm:$0xff]  ;;  %s10764_s9 = scalar_lea.vmem %s8755_s28, 16 }
 0xf92   :  { %10305 = vmatmul.mubr.msk.f32.vlgmr.msra.gmra.mrb[100].mxu0 %vm4265_vm7, %v8495_v15  ;;  %p10765_p0 = scmp.ne.s32.totalorder %s8755_s28, %s10764_s9  ;;  %p10770_p2 = scmp.lt.s32.totalorder %s10768_s0, %s10764_s9 }
 0xf94   :  { %p10771_p3 = por %p10770_p2, %p10769_p1 }
 0xf96   :  { %p10772_p4 = pnand %p10771_p3, %p10765_p0 }
0x1065   :  { %v10306_v20 = vpop.f32.mrb[100].mxu0 }
0x1066   :  { %v8587_v5 = vadd.f32 %v10306_v20, %v9079_v1  ;;  %v8581_v21 = vpop.f32.mrb[101].mxu0 }
0x1067   :  { %v8582_v14 = vadd.f32 %v9079_v1, %v8581_v21 }
0x1068   :  { %v8591_v4 = vadd.f32 %v8587_v5, %v8403_v60 }
0x1069   :  { %v8590_v63 = vadd.f32 %v8582_v14, %v8402_v53 }
0x106a   :  { %v8595_v27 = vsel %vm450_vm5, %v8591_v4, 0.0  ;;  %v8601_v10 = vmul.f32 %v8591_v4, %v8591_v4 }
0x106b   :  { %8596 = vadd.xlane.f32.xlu0 %v8595_v27  ;;  %v8592_v33 = vsel %vm450_vm5, %v8590_v63, 0.0  ;;  %v8600_v48 = vmul.f32 %v8590_v63, %v8590_v63 }
0x106c   :  { %8593 = vadd.xlane.f32.xlu1 %v8592_v33  ;;  %v8605_v12 = vsel %vm450_vm5, %v8601_v10, 0.0 }
0x106d   :  { %v8602_v6 = vsel %vm450_vm5, %v8600_v48, 0.0 }
0x106f   :  { %8606 = vadd.xlane.f32.xlu0 %v8605_v12 }
0x1070   :  { %8603 = vadd.xlane.f32.xlu1 %v8602_v6 }
0x10f8   :  { %v8597_v7 = vpop.xlane.xlu0 %8596 }
0x10f9   :  { %v8599_v9 = vmul.f32 0.03125, %v8597_v7  ;;  %v8594_v26 = vpop.xlane.xlu1 %8593 }
0x10fa   :  { %v8598_v28 = vmul.f32 0.03125, %v8594_v26 }
0x10fb   :  { %v8611_v31 = vmul.f32 %v8599_v9, %v8599_v9  ;;  %v8615_v39 = vsub.f32 %v8591_v4, %v8599_v9 }
0x10fc   :  { %v8607_v29 = vpop.xlane.xlu0 %8606  ;;  %v8610_v36 = vmul.f32 %v8598_v28, %v8598_v28  ;;  %v8614_v8 = vsub.f32 %v8590_v63, %v8598_v28 }
0x10fd   :  { %v8609_v32 = vmul.f32 0.03125, %v8607_v29  ;;  %v8604_v35 = vpop.xlane.xlu1 %8603 }
0x10fe   :  { %v8608_v37 = vmul.f32 0.03125, %v8604_v35 }
0x10ff   :  { %v8613_v38 = vsub.f32 %v8609_v32, %v8611_v31 }
0x1100   :  { %v8612_v23 = vsub.f32 %v8608_v37, %v8610_v36 }
0x1101   :  { %v8617_v3 = vadd.f32 1e-05, %v8613_v38 }
0x1102   :  { %v8616_v24 = vadd.f32 1e-05, %v8612_v23 }
0x1103   :  { %10756 = vrsqrt.f32 %v8617_v3 }
0x1104   :  { %10758 = vrsqrt.f32 %v8616_v24 }
0x110d   :  { %v10757_v40 = vpop.eup %10756 }
0x110e   :  { %v10759_v17 = vpop.eup %10758  ;;  %v8621_v42 = vmul.f32 %v10757_v40, %v8615_v39 }
0x110f   :  { %v8620_v13 = vmul.f32 %v10759_v17, %v8614_v8 }
0x1110   :  { %v8627_v46 = vmul.f32 %v9082_v41, %v8621_v42 }
0x1111   :  { %v8626_v47 = vmul.f32 %v9082_v41, %v8620_v13 }
0x1112   :  { %v8633_v49 = vadd.f32 %v9083_v44, %v8627_v46 }
0x1113   :  { %v8632_v50 = vadd.f32 %v9083_v44, %v8626_v47 }
0x1114   :  { %v8641_v51 = vsel %vm450_vm5, %v8633_v49, 0.0 }
0x1115   :  { %v8634_v52 = vsel %vm450_vm5, %v8632_v50, 0.0  ;;  %v8642_v45 = vrot.slane %v8641_v51, 4 }
0x1116   :  { %v8635_v53 = vrot.slane %v8634_v52, 4 }
0x1117   :  { %v8643_v54 = vadd.f32 %v8642_v45, %v8641_v51 }
0x1118   :  { %v8636_v30 = vadd.f32 %v8635_v53, %v8634_v52 }
0x1119   :  { %v8644_v55 = vrot.slane %v8643_v54, 2 }
0x111a   :  { %v8637_v58 = vrot.slane %v8636_v30, 2 }
0x111b   :  { %v8645_v60 = vadd.f32 %v8644_v55, %v8643_v54 }
0x111c   :  { %v8638_v34 = vadd.f32 %v8637_v58, %v8636_v30 }
0x111d   :  { %v8646_v59 = vrot.slane %v8645_v60, 1 }
0x111e   :  { %v8639_v61 = vrot.slane %v8638_v34, 1 }
0x111f   :  { %v8647_v56 = vadd.f32 %v8646_v59, %v8645_v60 }
0x1120   :  { %v8640_v43 = vadd.f32 %v8639_v61, %v8638_v34 }
0x1121   :  { %v8650_v0 = vmul.f32 0.125, %v8647_v56 }
0x1122   :  { %v8649_v2 = vmul.f32 0.125, %v8640_v43 }
0x1124   :  { %v8663_v62 = vsel %vm8662_vm8, %v8650_v0, %v8649_v2 }
0x1125   :  { %10316 = vmatmul.mubr.msk.f32.vlgmr.msra.gmra.mrb[100].mxu1 %vm450_vm5, %v8663_v62 }
0x11f8   :  { %v8732_v15 = vpop.f32.mrb[100].mxu1 }
0x11f9   :  { %v8733_v1 = vadd.f32 %v9084_v22, %v8732_v15  ;;  %v10317_v20 = vpop.f32.mrb[101].mxu1 }
0x11fb   :  { %v8736_v5 = vsub.f32 0.0, %v8733_v1 }
0x11fd   :  { %v8737_v21 = vmul.f32 1.442695, %v8736_v5 }
0x11ff   :  { %10760 = vpow2.f32 %v8737_v21 }
0x1209   :  { %v10761_v14 = vpop.eup %10760 }
0x120a   :  { %v8739_v4 = vadd.f32 1.0, %v10761_v14 }
0x120c   :  { %10762 = vrcp.f32 %v8739_v4 }
0x1216   :  { %v10763_v63 = vpop.eup %10762 }
0x1217   :  { %v8742_v27 = vrot.slane %v10763_v63, 1 }
0x1219   :  { %8743 = vrot.lane.b32.xlu1 %v8742_v27, %s10792_s2 }
0x128b   :  { %v8744_v10 = vpop.permute.xlu1 %8743 }
0x128c   :  { %v8746_v33 = vsel %vm4265_vm7, %v10763_v63, %v8744_v10 }
0x128d   :  { %8747 = vst [vmem:[#allocation2] sm:$0x1] %v8746_v33 }
0x128e   :  { %10775 = shalt.err (!%p10772_p4)
}
0x128f   :  { %s10776_s30 = scalar_lea.hbm %s12440_s10, 16 }
0x1290   :  { %p10777_p5 = scmp.ne.s32.totalorder %s12440_s10, %s10776_s30  ;;  %p10780_p6 = scmp.lt.u32.totalorder %s10776_s30, %s12440_s10 }
0x1292   :  { %p10782_p7 = pnand %p10780_p6, %p10777_p5 }
0x1294   :  { %10785 = shalt.err (!%p10782_p7)
}
0x1295   :  { %8757 = dma.vmem_to_hbm [thread:$0]  %s8755_s28, 16, %s12440_s10, [#allocation3]  }
0x1296   :  { %10786 = dma.done.wait [#allocation3], 16  }
0x1297   :  { %10787 = vsyncadd [#allocation3], 4294967280 }
0x1298   :  { %8761 = vsyncpa [#allocation3], 1 }

</bundles_post_ra>
